<compile_context>
chip_gen: v5e
topology: v5e:2x2
jax: 0.10.0
libtpu: 0.0.40
codegen_flags: <defaults>
</compile_context>

<pallas_src>
import jax
import jax.numpy as jnp
from jax.experimental import pallas as pl
from jax.experimental.pallas import tpu as pltpu


# ----------------------------- kernel -------------------------------------

def _mish(x):
    # mish(x) = x * tanh(softplus(x)) == x - 2x / (u^2 + 2u + 2), u = exp(x)
    u = jnp.exp(x)
    return x - (2.0 * x) / (u * (u + 2.0) + 2.0)


def _linear(h, w_ref, b_ref):
    w = w_ref[...]
    # cast activations only at the MXU boundary; accumulate in f32
    return jnp.dot(h.astype(w.dtype), w, preferred_element_type=jnp.float32) + b_ref[...]


def _mlp4(h, layers):
    for w_ref, b_ref in layers:
        h = _mish(_linear(h, w_ref, b_ref))
    return h


def wsum_graph_kernel(x_ref, gmap_ref, valid_ref,
                      sw1, sb1, sw2, sb2, sw3, sb3, sw4, sb4,
                      tw1, tb1, tw2, tb2, tw3, tb3, tw4, tb4,
                      out_ref,
                      acc_a, acc_b, acc_c, acc_cnt, acc_m):
    i = pl.program_id(0)

    @pl.when(i == 0)
    def _init():
        acc_a[...] = jnp.zeros_like(acc_a)
        acc_b[...] = jnp.zeros_like(acc_b)
        acc_c[...] = jnp.zeros_like(acc_c)
        acc_cnt[...] = jnp.zeros_like(acc_cnt)
        acc_m[...] = jnp.full_like(acc_m, -jnp.inf)

    x = x_ref[...]            # (TN, FIN) f32
    gmap = gmap_ref[...]      # (1, TN) int32, padded entries = -1
    valid = valid_ref[...]    # (TN, 1) f32, padded rows = 0

    # scoring MLP (last layer pre-expanded to R lanes) and transformation MLP
    s_full = _mlp4(x, ((sw1, sb1), (sw2, sb2), (sw3, sb3), (sw4, sb4)))  # (TN, R)
    t_full = _mlp4(x, ((tw1, tb1), (tw2, tb2), (tw3, tb3), (tw4, tb4)))  # (TN, R)

    g = out_ref.shape[0]
    tn = x.shape[0]
    giota = jax.lax.broadcasted_iota(jnp.int32, (g, tn), 0)
    onehot = (giota == gmap).astype(jnp.float32)          # (G, TN); padded rows all-zero

    acc_a[...] += jnp.dot(onehot, s_full * t_full, preferred_element_type=jnp.float32)
    acc_b[...] += jnp.dot(onehot, t_full, preferred_element_type=jnp.float32)
    acc_c[...] += jnp.dot(onehot, s_full, preferred_element_type=jnp.float32)
    acc_cnt[...] += jnp.sum(onehot, axis=1, keepdims=True)

    s_masked = jnp.where(valid > 0.0, s_full, -jnp.inf)   # mask padded rows out of the max
    acc_m[...] = jnp.maximum(acc_m[...], jnp.max(s_masked, axis=0, keepdims=True))

    @pl.when(i == pl.num_programs(0) - 1)
    def _finalize():
        m = acc_m[...]                              # (1, R) global per-head max (expanded)
        numer = acc_a[...] - m * acc_b[...]         # (G, R)
        denom = acc_c[...] - m * acc_cnt[...]       # (G, R)  (per-graph, per-head constant)
        out_ref[...] = numer / denom


# ----------------------------- wrapper -------------------------------------

def weighted_sum_graph_representation(node_embeddings, node_to_graph_map, params,
                                      num_heads, graph_representation_size, num_graphs,
                                      *, tile_n=128, matmul_dtype=jnp.float32):
    """node_embeddings: (N, FIN) f32; node_to_graph_map: (N,) int32, dense 0..num_graphs-1."""
    n, fin = node_embeddings.shape
    r = graph_representation_size
    h = num_heads
    assert r % h == 0
    per_head = r // h

    num_tiles = int(pl.cdiv(n, tile_n))
    if num_tiles > 1:
        assert tile_n % 128 == 0, "tile_n must be a multiple of 128 when tiling N"
    n_pad = num_tiles * tile_n
    pad = n_pad - n

    x = jnp.pad(node_embeddings.astype(jnp.float32), ((0, pad), (0, 0)))
    gmap_row = jnp.pad(node_to_graph_map.astype(jnp.int32), (0, pad),
                       constant_values=-1).reshape(1, n_pad)
    valid_col = jnp.pad(jnp.ones((n, 1), jnp.float32), ((0, pad), (0, 0)))

    # Fold the head -> feature-slot expansion (exact column duplication) into the
    # scoring MLP's last layer: the kernel then works entirely in R-wide score space.
    expand = (jnp.repeat(jnp.arange(h), per_head)[None, :]
              == jnp.arange(h)[:, None]).astype(jnp.float32)             # (H, R)
    sw4e = params["sw4"] @ expand                                        # (FIN, R)
    sb4e = params["sb4"] @ expand                                        # (1, R)

    md = matmul_dtype
    wargs = (params["sw1"].astype(md), params["sb1"],
             params["sw2"].astype(md), params["sb2"],
             params["sw3"].astype(md), params["sb3"],
             sw4e.astype(md), sb4e,
             params["tw1"].astype(md), params["tb1"],
             params["tw2"].astype(md), params["tb2"],
             params["tw3"].astype(md), params["tb3"],
             params["tw4"].astype(md), params["tb4"])

    x_spec = pl.BlockSpec((tile_n, fin), lambda i: (i, 0))
    gmap_spec = pl.BlockSpec((1, tile_n), lambda i: (0, i))
    valid_spec = pl.BlockSpec((tile_n, 1), lambda i: (i, 0))
    w_specs = [pl.BlockSpec(w.shape, lambda i: (0, 0)) for w in wargs]    # resident weights

    grid_spec = pltpu.PrefetchScalarGridSpec(
        num_scalar_prefetch=0,
        grid=(num_tiles,),
        in_specs=[x_spec, gmap_spec, valid_spec, *w_specs],
        out_specs=pl.BlockSpec((num_graphs, r), lambda i: (0, 0)),
        scratch_shapes=[pltpu.VMEM((num_graphs, r), jnp.float32),   # acc_a = seg(s*t)
                        pltpu.VMEM((num_graphs, r), jnp.float32),   # acc_b = seg(t)
                        pltpu.VMEM((num_graphs, r), jnp.float32),   # acc_c = seg(s)
                        pltpu.VMEM((num_graphs, 1), jnp.float32),   # acc_cnt
                        pltpu.VMEM((1, r), jnp.float32)])           # acc_m (running max)

    flops = (2 * n_pad * 2 * (3 * fin * fin + fin * r)      # two 4-layer MLPs
             + 2 * 3 * n_pad * num_graphs * r)              # three segment matmuls
    transcendentals = 2 * n_pad * (3 * fin + r)             # one exp per activation
    bytes_accessed = int(4 * (x.size + gmap_row.size + valid_col.size + num_graphs * r)
                         + sum(int(w.size) * w.dtype.itemsize for w in wargs))

    return pl.pallas_call(
        wsum_graph_kernel,
        out_shape=jax.ShapeDtypeStruct((num_graphs, r), jnp.float32),
        grid_spec=grid_spec,
        compiler_params=pltpu.CompilerParams(
            dimension_semantics=("arbitrary",),   # output accumulates across node tiles
            vmem_limit_bytes=32 * 1024 * 1024),
        cost_estimate=pl.CostEstimate(flops=flops,
                                      transcendentals=transcendentals,
                                      bytes_accessed=bytes_accessed),
    )(x, gmap_row, valid_col, *wargs)


# ----------------------------- reference (plain JAX) -----------------------

def _reference(node_embeddings, node_to_graph_map, params, num_heads, rep_size, num_graphs):
    def mlp(hh, pre):
        for i in (1, 2, 3, 4):
            hh = hh @ params[f"{pre}w{i}"] + params[f"{pre}b{i}"]
            hh = hh * jnp.tanh(jnp.logaddexp(hh, 0.0))   # Mish
        return hh

    scores = mlp(node_embeddings, "s")
    scores = scores - jnp.max(scores, axis=0, keepdims=True)
    seg = jax.ops.segment_sum(scores, node_to_graph_map, num_segments=num_graphs)
    weights = scores / seg[node_to_graph_map]
    nodes_repr = mlp(node_embeddings, "t")
    nodes_repr = nodes_repr.reshape(-1, num_heads, rep_size // num_heads)
    weighted = (weights[..., None] * nodes_repr).reshape(-1, rep_size)
    return jax.ops.segment_sum(weighted, node_to_graph_map, num_segments=num_graphs)


# ----------------------------- main -----------------------------------------

if __name__ == "__main__":
    FIN, H, R = 32, 4, 32

    key = jax.random.PRNGKey(0)
    keys = jax.random.split(key, 24)

    def lin(kw, kb, fan_in, fan_out):
        scale = 1.0 / jnp.sqrt(jnp.float32(fan_in))
        w = jax.random.uniform(kw, (fan_in, fan_out), jnp.float32, -scale, scale)
        b = jax.random.uniform(kb, (1, fan_out), jnp.float32, -scale, scale)
        return w, b

    params = {}
    dims_s = [(FIN, FIN), (FIN, FIN), (FIN, FIN), (FIN, H)]   # scoring MLP
    dims_t = [(FIN, FIN), (FIN, FIN), (FIN, FIN), (FIN, R)]   # transformation MLP
    k = 0
    for i, (fi, fo) in enumerate(dims_s, start=1):
        params[f"sw{i}"], params[f"sb{i}"] = lin(keys[k], keys[k + 1], fi, fo); k += 2
    for i, (fi, fo) in enumerate(dims_t, start=1):
        params[f"tw{i}"], params[f"tb{i}"] = lin(keys[k], keys[k + 1], fi, fo); k += 2

    # --- test 1: 64 nodes, 4 equal graphs (single node tile) ---
    N1, G1 = 64, 4
    x1 = jax.random.normal(keys[k], (N1, FIN), jnp.float32); k += 1
    map1 = jnp.repeat(jnp.arange(G1, dtype=jnp.int32), N1 // G1)
    out1 = jax.block_until_ready(
        weighted_sum_graph_representation(x1, map1, params, H, R, G1))
    ref1 = _reference(x1, map1, params, H, R, G1)
    assert out1.shape == (G1, R)
    assert jnp.allclose(out1, ref1, atol=5e-4, rtol=5e-4), (
        f"test1 max abs diff {jnp.max(jnp.abs(out1 - ref1))}")

    # --- test 2: 200 nodes, 5 uneven/unsorted graphs, 2 node tiles
    #     (exercises padding mask + cross-tile accumulation) ---
    N2, G2 = 200, 5
    x2 = jax.random.normal(keys[k], (N2, FIN), jnp.float32); k += 1
    map2 = jax.random.permutation(keys[k], jnp.arange(N2, dtype=jnp.int32) % G2); k += 1
    out2 = jax.block_until_ready(
        weighted_sum_graph_representation(x2, map2, params, H, R, G2))
    ref2 = _reference(x2, map2, params, H, R, G2)
    assert out2.shape == (G2, R)
    assert jnp.allclose(out2, ref2, atol=5e-4, rtol=5e-4), (
        f"test2 max abs diff {jnp.max(jnp.abs(out2 - ref2))}")

    # --- bf16-matmul variant (per-target perf option from the review); MXU inputs
    #     bf16, accumulation and elementwise math f32.  Just check it runs clean. ---
    out_bf16 = jax.block_until_ready(
        weighted_sum_graph_representation(x1, map1, params, H, R, G1,
                                          matmul_dtype=jnp.bfloat16))
    assert bool(jnp.all(jnp.isfinite(out_bf16)))

    print("KERNEL_OK")
</pallas_src>

<mosaic_0001>
module attributes {stable_mosaic.version = 11 : i64} {
  func.func @wsum_graph_kernel(%arg0: i32, %arg1: memref<128x32xf32, #tpu.memory_space<vmem>>, %arg2: memref<1x128xi32, #tpu.memory_space<vmem>>, %arg3: memref<128x1xf32, #tpu.memory_space<vmem>>, %arg4: memref<32x32xf32, #tpu.memory_space<vmem>>, %arg5: memref<1x32xf32, #tpu.memory_space<vmem>>, %arg6: memref<32x32xf32, #tpu.memory_space<vmem>>, %arg7: memref<1x32xf32, #tpu.memory_space<vmem>>, %arg8: memref<32x32xf32, #tpu.memory_space<vmem>>, %arg9: memref<1x32xf32, #tpu.memory_space<vmem>>, %arg10: memref<32x32xf32, #tpu.memory_space<vmem>>, %arg11: memref<1x32xf32, #tpu.memory_space<vmem>>, %arg12: memref<32x32xf32, #tpu.memory_space<vmem>>, %arg13: memref<1x32xf32, #tpu.memory_space<vmem>>, %arg14: memref<32x32xf32, #tpu.memory_space<vmem>>, %arg15: memref<1x32xf32, #tpu.memory_space<vmem>>, %arg16: memref<32x32xf32, #tpu.memory_space<vmem>>, %arg17: memref<1x32xf32, #tpu.memory_space<vmem>>, %arg18: memref<32x32xf32, #tpu.memory_space<vmem>>, %arg19: memref<1x32xf32, #tpu.memory_space<vmem>>, %arg20: memref<4x32xf32, #tpu.memory_space<vmem>>, %arg21: memref<4x32xf32, #tpu.memory_space<vmem>>, %arg22: memref<4x32xf32, #tpu.memory_space<vmem>>, %arg23: memref<4x32xf32, #tpu.memory_space<vmem>>, %arg24: memref<4x1xf32, #tpu.memory_space<vmem>>, %arg25: memref<1x32xf32, #tpu.memory_space<vmem>>) attributes {dimension_semantics = [#tpu.dimension_semantics<arbitrary>], iteration_bounds = array<i64: 1>, scalar_prefetch = 0 : i64, scratch_operands = 5 : i64, tpu.core_type = #tpu.core_type<tc>, window_params = [{transform_indices = @transform_0, window_bounds = array<i64: 128, 32>}, {transform_indices = @transform_1, window_bounds = array<i64: 1, 128>}, {transform_indices = @transform_2, window_bounds = array<i64: 128, 1>}, {pipeline_mode = #tpu.pipeline_mode<synchronous>, transform_indices = @transform_3, window_bounds = array<i64: 32, 32>}, {pipeline_mode = #tpu.pipeline_mode<synchronous>, transform_indices = @transform_4, window_bounds = array<i64: 1, 32>}, {pipeline_mode = #tpu.pipeline_mode<synchronous>, transform_indices = @transform_5, window_bounds = array<i64: 32, 32>}, {pipeline_mode = #tpu.pipeline_mode<synchronous>, transform_indices = @transform_6, window_bounds = array<i64: 1, 32>}, {pipeline_mode = #tpu.pipeline_mode<synchronous>, transform_indices = @transform_7, window_bounds = array<i64: 32, 32>}, {pipeline_mode = #tpu.pipeline_mode<synchronous>, transform_indices = @transform_8, window_bounds = array<i64: 1, 32>}, {pipeline_mode = #tpu.pipeline_mode<synchronous>, transform_indices = @transform_9, window_bounds = array<i64: 32, 32>}, {pipeline_mode = #tpu.pipeline_mode<synchronous>, transform_indices = @transform_10, window_bounds = array<i64: 1, 32>}, {pipeline_mode = #tpu.pipeline_mode<synchronous>, transform_indices = @transform_11, window_bounds = array<i64: 32, 32>}, {pipeline_mode = #tpu.pipeline_mode<synchronous>, transform_indices = @transform_12, window_bounds = array<i64: 1, 32>}, {pipeline_mode = #tpu.pipeline_mode<synchronous>, transform_indices = @transform_13, window_bounds = array<i64: 32, 32>}, {pipeline_mode = #tpu.pipeline_mode<synchronous>, transform_indices = @transform_14, window_bounds = array<i64: 1, 32>}, {pipeline_mode = #tpu.pipeline_mode<synchronous>, transform_indices = @transform_15, window_bounds = array<i64: 32, 32>}, {pipeline_mode = #tpu.pipeline_mode<synchronous>, transform_indices = @transform_16, window_bounds = array<i64: 1, 32>}, {pipeline_mode = #tpu.pipeline_mode<synchronous>, transform_indices = @transform_17, window_bounds = array<i64: 32, 32>}, {pipeline_mode = #tpu.pipeline_mode<synchronous>, transform_indices = @transform_18, window_bounds = array<i64: 1, 32>}, {pipeline_mode = #tpu.pipeline_mode<synchronous>, transform_indices = @transform_19, window_bounds = array<i64: 4, 32>}]} {
    %c0_i32 = arith.constant 0 : i32
    %0 = arith.cmpi eq, %arg0, %c0_i32 : i32
    %1 = arith.extui %0 : i1 to i32
    %c0_i32_0 = arith.constant 0 : i32
    %2 = arith.cmpi ne, %1, %c0_i32_0 : i32
    scf.if %2 {
      %cst_98 = arith.constant 0.000000e+00 : f32
      %163 = vector.broadcast %cst_98 : f32 to vector<4x32xf32>
      %c0_99 = arith.constant 0 : index
      %c0_100 = arith.constant 0 : index
      %164 = vector.load %arg21[%c0_99, %c0_100] : memref<4x32xf32, #tpu.memory_space<vmem>>, vector<4x32xf32>
      tpu.vector_store %arg21[%c0_99, %c0_100], %163 {strides = array<i32>} : memref<4x32xf32, #tpu.memory_space<vmem>>, vector<4x32xf32>,
      %cst_101 = arith.constant 0.000000e+00 : f32
      %165 = vector.broadcast %cst_101 : f32 to vector<4x32xf32>
      %c0_102 = arith.constant 0 : index
      %c0_103 = arith.constant 0 : index
      %166 = vector.load %arg22[%c0_102, %c0_103] : memref<4x32xf32, #tpu.memory_space<vmem>>, vector<4x32xf32>
      tpu.vector_store %arg22[%c0_102, %c0_103], %165 {strides = array<i32>} : memref<4x32xf32, #tpu.memory_space<vmem>>, vector<4x32xf32>,
      %cst_104 = arith.constant 0.000000e+00 : f32
      %167 = vector.broadcast %cst_104 : f32 to vector<4x32xf32>
      %c0_105 = arith.constant 0 : index
      %c0_106 = arith.constant 0 : index
      %168 = vector.load %arg23[%c0_105, %c0_106] : memref<4x32xf32, #tpu.memory_space<vmem>>, vector<4x32xf32>
      tpu.vector_store %arg23[%c0_105, %c0_106], %167 {strides = array<i32>} : memref<4x32xf32, #tpu.memory_space<vmem>>, vector<4x32xf32>,
      %cst_107 = arith.constant 0.000000e+00 : f32
      %169 = vector.broadcast %cst_107 : f32 to vector<4x1xf32>
      %c0_108 = arith.constant 0 : index
      %c0_109 = arith.constant 0 : index
      %170 = vector.load %arg24[%c0_108, %c0_109] : memref<4x1xf32, #tpu.memory_space<vmem>>, vector<4x1xf32>
      tpu.vector_store %arg24[%c0_108, %c0_109], %169 {strides = array<i32>} : memref<4x1xf32, #tpu.memory_space<vmem>>, vector<4x1xf32>,
      %cst_110 = arith.constant 0xFF800000 : f32
      %171 = vector.broadcast %cst_110 : f32 to vector<1x32xf32>
      %c0_111 = arith.constant 0 : index
      %c0_112 = arith.constant 0 : index
      %172 = vector.load %arg25[%c0_111, %c0_112] : memref<1x32xf32, #tpu.memory_space<vmem>>, vector<1x32xf32>
      tpu.vector_store %arg25[%c0_111, %c0_112], %171 {strides = array<i32>} : memref<1x32xf32, #tpu.memory_space<vmem>>, vector<1x32xf32>,
    } else {
    }
    %c0 = arith.constant 0 : index
    %c0_1 = arith.constant 0 : index
    %3 = vector.load %arg1[%c0, %c0_1] : memref<128x32xf32, #tpu.memory_space<vmem>>, vector<128x32xf32>
    %c0_2 = arith.constant 0 : index
    %c0_3 = arith.constant 0 : index
    %4 = vector.load %arg2[%c0_2, %c0_3] : memref<1x128xi32, #tpu.memory_space<vmem>>, vector<1x128xi32>
    %c0_4 = arith.constant 0 : index
    %c0_5 = arith.constant 0 : index
    %5 = vector.load %arg3[%c0_4, %c0_5] : memref<128x1xf32, #tpu.memory_space<vmem>>, vector<128x1xf32>
    %c0_6 = arith.constant 0 : index
    %c0_7 = arith.constant 0 : index
    %6 = vector.load %arg4[%c0_6, %c0_7] : memref<32x32xf32, #tpu.memory_space<vmem>>, vector<32x32xf32>
    %cst = arith.constant dense<0.000000e+00> : vector<128x32xf32>
    %7 = tpu.matmul %3, %6, %cst {dimension_numbers = #tpu.dot_dimension_numbers<[1], [0], [0], [1], [0, 0, 1, 1], [], []>} : vector<128x32xf32>, vector<32x32xf32>, vector<128x32xf32> -> vector<128x32xf32>
    %c0_8 = arith.constant 0 : index
    %c0_9 = arith.constant 0 : index
    %8 = vector.load %arg5[%c0_8, %c0_9] : memref<1x32xf32, #tpu.memory_space<vmem>>, vector<1x32xf32>
    %9 = vector.broadcast %8 : vector<1x32xf32> to vector<128x32xf32>
    %10 = arith.addf %7, %9 : vector<128x32xf32>
    %11 = math.exp %10 : vector<128x32xf32>
    %cst_10 = arith.constant 2.000000e+00 : f32
    %12 = vector.broadcast %cst_10 : f32 to vector<128x32xf32>
    %13 = arith.mulf %12, %10 : vector<128x32xf32>
    %cst_11 = arith.constant 2.000000e+00 : f32
    %14 = vector.broadcast %cst_11 : f32 to vector<128x32xf32>
    %15 = arith.addf %11, %14 : vector<128x32xf32>
    %16 = arith.mulf %11, %15 : vector<128x32xf32>
    %cst_12 = arith.constant 2.000000e+00 : f32
    %17 = vector.broadcast %cst_12 : f32 to vector<128x32xf32>
    %18 = arith.addf %16, %17 : vector<128x32xf32>
    %19 = arith.divf %13, %18 : vector<128x32xf32>
    %20 = arith.subf %10, %19 : vector<128x32xf32>
    %c0_13 = arith.constant 0 : index
    %c0_14 = arith.constant 0 : index
    %21 = vector.load %arg6[%c0_13, %c0_14] : memref<32x32xf32, #tpu.memory_space<vmem>>, vector<32x32xf32>
    %cst_15 = arith.constant dense<0.000000e+00> : vector<128x32xf32>
    %22 = tpu.matmul %20, %21, %cst_15 {dimension_numbers = #tpu.dot_dimension_numbers<[1], [0], [0], [1], [0, 0, 1, 1], [], []>} : vector<128x32xf32>, vector<32x32xf32>, vector<128x32xf32> -> vector<128x32xf32>
    %c0_16 = arith.constant 0 : index
    %c0_17 = arith.constant 0 : index
    %23 = vector.load %arg7[%c0_16, %c0_17] : memref<1x32xf32, #tpu.memory_space<vmem>>, vector<1x32xf32>
    %24 = vector.broadcast %23 : vector<1x32xf32> to vector<128x32xf32>
    %25 = arith.addf %22, %24 : vector<128x32xf32>
    %26 = math.exp %25 : vector<128x32xf32>
    %cst_18 = arith.constant 2.000000e+00 : f32
    %27 = vector.broadcast %cst_18 : f32 to vector<128x32xf32>
    %28 = arith.mulf %27, %25 : vector<128x32xf32>
    %cst_19 = arith.constant 2.000000e+00 : f32
    %29 = vector.broadcast %cst_19 : f32 to vector<128x32xf32>
    %30 = arith.addf %26, %29 : vector<128x32xf32>
    %31 = arith.mulf %26, %30 : vector<128x32xf32>
    %cst_20 = arith.constant 2.000000e+00 : f32
    %32 = vector.broadcast %cst_20 : f32 to vector<128x32xf32>
    %33 = arith.addf %31, %32 : vector<128x32xf32>
    %34 = arith.divf %28, %33 : vector<128x32xf32>
    %35 = arith.subf %25, %34 : vector<128x32xf32>
    %c0_21 = arith.constant 0 : index
    %c0_22 = arith.constant 0 : index
    %36 = vector.load %arg8[%c0_21, %c0_22] : memref<32x32xf32, #tpu.memory_space<vmem>>, vector<32x32xf32>
    %cst_23 = arith.constant dense<0.000000e+00> : vector<128x32xf32>
    %37 = tpu.matmul %35, %36, %cst_23 {dimension_numbers = #tpu.dot_dimension_numbers<[1], [0], [0], [1], [0, 0, 1, 1], [], []>} : vector<128x32xf32>, vector<32x32xf32>, vector<128x32xf32> -> vector<128x32xf32>
    %c0_24 = arith.constant 0 : index
    %c0_25 = arith.constant 0 : index
    %38 = vector.load %arg9[%c0_24, %c0_25] : memref<1x32xf32, #tpu.memory_space<vmem>>, vector<1x32xf32>
    %39 = vector.broadcast %38 : vector<1x32xf32> to vector<128x32xf32>
    %40 = arith.addf %37, %39 : vector<128x32xf32>
    %41 = math.exp %40 : vector<128x32xf32>
    %cst_26 = arith.constant 2.000000e+00 : f32
    %42 = vector.broadcast %cst_26 : f32 to vector<128x32xf32>
    %43 = arith.mulf %42, %40 : vector<128x32xf32>
    %cst_27 = arith.constant 2.000000e+00 : f32
    %44 = vector.broadcast %cst_27 : f32 to vector<128x32xf32>
    %45 = arith.addf %41, %44 : vector<128x32xf32>
    %46 = arith.mulf %41, %45 : vector<128x32xf32>
    %cst_28 = arith.constant 2.000000e+00 : f32
    %47 = vector.broadcast %cst_28 : f32 to vector<128x32xf32>
    %48 = arith.addf %46, %47 : vector<128x32xf32>
    %49 = arith.divf %43, %48 : vector<128x32xf32>
    %50 = arith.subf %40, %49 : vector<128x32xf32>
    %c0_29 = arith.constant 0 : index
    %c0_30 = arith.constant 0 : index
    %51 = vector.load %arg10[%c0_29, %c0_30] : memref<32x32xf32, #tpu.memory_space<vmem>>, vector<32x32xf32>
    %cst_31 = arith.constant dense<0.000000e+00> : vector<128x32xf32>
    %52 = tpu.matmul %50, %51, %cst_31 {dimension_numbers = #tpu.dot_dimension_numbers<[1], [0], [0], [1], [0, 0, 1, 1], [], []>} : vector<128x32xf32>, vector<32x32xf32>, vector<128x32xf32> -> vector<128x32xf32>
    %c0_32 = arith.constant 0 : index
    %c0_33 = arith.constant 0 : index
    %53 = vector.load %arg11[%c0_32, %c0_33] : memref<1x32xf32, #tpu.memory_space<vmem>>, vector<1x32xf32>
    %54 = vector.broadcast %53 : vector<1x32xf32> to vector<128x32xf32>
    %55 = arith.addf %52, %54 : vector<128x32xf32>
    %56 = math.exp %55 : vector<128x32xf32>
    %cst_34 = arith.constant 2.000000e+00 : f32
    %57 = vector.broadcast %cst_34 : f32 to vector<128x32xf32>
    %58 = arith.mulf %57, %55 : vector<128x32xf32>
    %cst_35 = arith.constant 2.000000e+00 : f32
    %59 = vector.broadcast %cst_35 : f32 to vector<128x32xf32>
    %60 = arith.addf %56, %59 : vector<128x32xf32>
    %61 = arith.mulf %56, %60 : vector<128x32xf32>
    %cst_36 = arith.constant 2.000000e+00 : f32
    %62 = vector.broadcast %cst_36 : f32 to vector<128x32xf32>
    %63 = arith.addf %61, %62 : vector<128x32xf32>
    %64 = arith.divf %58, %63 : vector<128x32xf32>
    %65 = arith.subf %55, %64 : vector<128x32xf32>
    %c0_37 = arith.constant 0 : index
    %c0_38 = arith.constant 0 : index
    %66 = vector.load %arg12[%c0_37, %c0_38] : memref<32x32xf32, #tpu.memory_space<vmem>>, vector<32x32xf32>
    %cst_39 = arith.constant dense<0.000000e+00> : vector<128x32xf32>
    %67 = tpu.matmul %3, %66, %cst_39 {dimension_numbers = #tpu.dot_dimension_numbers<[1], [0], [0], [1], [0, 0, 1, 1], [], []>} : vector<128x32xf32>, vector<32x32xf32>, vector<128x32xf32> -> vector<128x32xf32>
    %c0_40 = arith.constant 0 : index
    %c0_41 = arith.constant 0 : index
    %68 = vector.load %arg13[%c0_40, %c0_41] : memref<1x32xf32, #tpu.memory_space<vmem>>, vector<1x32xf32>
    %69 = vector.broadcast %68 : vector<1x32xf32> to vector<128x32xf32>
    %70 = arith.addf %67, %69 : vector<128x32xf32>
    %71 = math.exp %70 : vector<128x32xf32>
    %cst_42 = arith.constant 2.000000e+00 : f32
    %72 = vector.broadcast %cst_42 : f32 to vector<128x32xf32>
    %73 = arith.mulf %72, %70 : vector<128x32xf32>
    %cst_43 = arith.constant 2.000000e+00 : f32
    %74 = vector.broadcast %cst_43 : f32 to vector<128x32xf32>
    %75 = arith.addf %71, %74 : vector<128x32xf32>
    %76 = arith.mulf %71, %75 : vector<128x32xf32>
    %cst_44 = arith.constant 2.000000e+00 : f32
    %77 = vector.broadcast %cst_44 : f32 to vector<128x32xf32>
    %78 = arith.addf %76, %77 : vector<128x32xf32>
    %79 = arith.divf %73, %78 : vector<128x32xf32>
    %80 = arith.subf %70, %79 : vector<128x32xf32>
    %c0_45 = arith.constant 0 : index
    %c0_46 = arith.constant 0 : index
    %81 = vector.load %arg14[%c0_45, %c0_46] : memref<32x32xf32, #tpu.memory_space<vmem>>, vector<32x32xf32>
    %cst_47 = arith.constant dense<0.000000e+00> : vector<128x32xf32>
    %82 = tpu.matmul %80, %81, %cst_47 {dimension_numbers = #tpu.dot_dimension_numbers<[1], [0], [0], [1], [0, 0, 1, 1], [], []>} : vector<128x32xf32>, vector<32x32xf32>, vector<128x32xf32> -> vector<128x32xf32>
    %c0_48 = arith.constant 0 : index
    %c0_49 = arith.constant 0 : index
    %83 = vector.load %arg15[%c0_48, %c0_49] : memref<1x32xf32, #tpu.memory_space<vmem>>, vector<1x32xf32>
    %84 = vector.broadcast %83 : vector<1x32xf32> to vector<128x32xf32>
    %85 = arith.addf %82, %84 : vector<128x32xf32>
    %86 = math.exp %85 : vector<128x32xf32>
    %cst_50 = arith.constant 2.000000e+00 : f32
    %87 = vector.broadcast %cst_50 : f32 to vector<128x32xf32>
    %88 = arith.mulf %87, %85 : vector<128x32xf32>
    %cst_51 = arith.constant 2.000000e+00 : f32
    %89 = vector.broadcast %cst_51 : f32 to vector<128x32xf32>
    %90 = arith.addf %86, %89 : vector<128x32xf32>
    %91 = arith.mulf %86, %90 : vector<128x32xf32>
    %cst_52 = arith.constant 2.000000e+00 : f32
    %92 = vector.broadcast %cst_52 : f32 to vector<128x32xf32>
    %93 = arith.addf %91, %92 : vector<128x32xf32>
    %94 = arith.divf %88, %93 : vector<128x32xf32>
    %95 = arith.subf %85, %94 : vector<128x32xf32>
    %c0_53 = arith.constant 0 : index
    %c0_54 = arith.constant 0 : index
    %96 = vector.load %arg16[%c0_53, %c0_54] : memref<32x32xf32, #tpu.memory_space<vmem>>, vector<32x32xf32>
    %cst_55 = arith.constant dense<0.000000e+00> : vector<128x32xf32>
    %97 = tpu.matmul %95, %96, %cst_55 {dimension_numbers = #tpu.dot_dimension_numbers<[1], [0], [0], [1], [0, 0, 1, 1], [], []>} : vector<128x32xf32>, vector<32x32xf32>, vector<128x32xf32> -> vector<128x32xf32>
    %c0_56 = arith.constant 0 : index
    %c0_57 = arith.constant 0 : index
    %98 = vector.load %arg17[%c0_56, %c0_57] : memref<1x32xf32, #tpu.memory_space<vmem>>, vector<1x32xf32>
    %99 = vector.broadcast %98 : vector<1x32xf32> to vector<128x32xf32>
    %100 = arith.addf %97, %99 : vector<128x32xf32>
    %101 = math.exp %100 : vector<128x32xf32>
    %cst_58 = arith.constant 2.000000e+00 : f32
    %102 = vector.broadcast %cst_58 : f32 to vector<128x32xf32>
    %103 = arith.mulf %102, %100 : vector<128x32xf32>
    %cst_59 = arith.constant 2.000000e+00 : f32
    %104 = vector.broadcast %cst_59 : f32 to vector<128x32xf32>
    %105 = arith.addf %101, %104 : vector<128x32xf32>
    %106 = arith.mulf %101, %105 : vector<128x32xf32>
    %cst_60 = arith.constant 2.000000e+00 : f32
    %107 = vector.broadcast %cst_60 : f32 to vector<128x32xf32>
    %108 = arith.addf %106, %107 : vector<128x32xf32>
    %109 = arith.divf %103, %108 : vector<128x32xf32>
    %110 = arith.subf %100, %109 : vector<128x32xf32>
    %c0_61 = arith.constant 0 : index
    %c0_62 = arith.constant 0 : index
    %111 = vector.load %arg18[%c0_61, %c0_62] : memref<32x32xf32, #tpu.memory_space<vmem>>, vector<32x32xf32>
    %cst_63 = arith.constant dense<0.000000e+00> : vector<128x32xf32>
    %112 = tpu.matmul %110, %111, %cst_63 {dimension_numbers = #tpu.dot_dimension_numbers<[1], [0], [0], [1], [0, 0, 1, 1], [], []>} : vector<128x32xf32>, vector<32x32xf32>, vector<128x32xf32> -> vector<128x32xf32>
    %c0_64 = arith.constant 0 : index
    %c0_65 = arith.constant 0 : index
    %113 = vector.load %arg19[%c0_64, %c0_65] : memref<1x32xf32, #tpu.memory_space<vmem>>, vector<1x32xf32>
    %114 = vector.broadcast %113 : vector<1x32xf32> to vector<128x32xf32>
    %115 = arith.addf %112, %114 : vector<128x32xf32>
    %116 = math.exp %115 : vector<128x32xf32>
    %cst_66 = arith.constant 2.000000e+00 : f32
    %117 = vector.broadcast %cst_66 : f32 to vector<128x32xf32>
    %118 = arith.mulf %117, %115 : vector<128x32xf32>
    %cst_67 = arith.constant 2.000000e+00 : f32
    %119 = vector.broadcast %cst_67 : f32 to vector<128x32xf32>
    %120 = arith.addf %116, %119 : vector<128x32xf32>
    %121 = arith.mulf %116, %120 : vector<128x32xf32>
    %cst_68 = arith.constant 2.000000e+00 : f32
    %122 = vector.broadcast %cst_68 : f32 to vector<128x32xf32>
    %123 = arith.addf %121, %122 : vector<128x32xf32>
    %124 = arith.divf %118, %123 : vector<128x32xf32>
    %125 = arith.subf %115, %124 : vector<128x32xf32>
    %126 = tpu.iota {dimensions = array<i32: 0>} : vector<4x128xi32>
    %127 = vector.broadcast %4 : vector<1x128xi32> to vector<4x128xi32>
    %128 = arith.cmpi eq, %126, %127 : vector<4x128xi32>
    %129 = arith.extui %128 : vector<4x128xi1> to vector<4x128xi32>
    %130 = arith.sitofp %129 : vector<4x128xi32> to vector<4x128xf32>
    %c0_69 = arith.constant 0 : index
    %c0_70 = arith.constant 0 : index
    %131 = vector.load %arg21[%c0_69, %c0_70] : memref<4x32xf32, #tpu.memory_space<vmem>>, vector<4x32xf32>
    %132 = arith.mulf %65, %125 : vector<128x32xf32>
    %cst_71 = arith.constant dense<0.000000e+00> : vector<4x32xf32>
    %133 = tpu.matmul %130, %132, %cst_71 {dimension_numbers = #tpu.dot_dimension_numbers<[1], [0], [0], [1], [0, 0, 1, 1], [], []>} : vector<4x128xf32>, vector<128x32xf32>, vector<4x32xf32> -> vector<4x32xf32>
    %134 = arith.addf %131, %133 : vector<4x32xf32>
    %c0_72 = arith.constant 0 : index
    %c0_73 = arith.constant 0 : index
    %135 = vector.load %arg21[%c0_72, %c0_73] : memref<4x32xf32, #tpu.memory_space<vmem>>, vector<4x32xf32>
    tpu.vector_store %arg21[%c0_72, %c0_73], %134 {strides = array<i32>} : memref<4x32xf32, #tpu.memory_space<vmem>>, vector<4x32xf32>,
    %c0_74 = arith.constant 0 : index
    %c0_75 = arith.constant 0 : index
    %136 = vector.load %arg22[%c0_74, %c0_75] : memref<4x32xf32, #tpu.memory_space<vmem>>, vector<4x32xf32>
    %cst_76 = arith.constant dense<0.000000e+00> : vector<4x32xf32>
    %137 = tpu.matmul %130, %125, %cst_76 {dimension_numbers = #tpu.dot_dimension_numbers<[1], [0], [0], [1], [0, 0, 1, 1], [], []>} : vector<4x128xf32>, vector<128x32xf32>, vector<4x32xf32> -> vector<4x32xf32>
    %138 = arith.addf %136, %137 : vector<4x32xf32>
    %c0_77 = arith.constant 0 : index
    %c0_78 = arith.constant 0 : index
    %139 = vector.load %arg22[%c0_77, %c0_78] : memref<4x32xf32, #tpu.memory_space<vmem>>, vector<4x32xf32>
    tpu.vector_store %arg22[%c0_77, %c0_78], %138 {strides = array<i32>} : memref<4x32xf32, #tpu.memory_space<vmem>>, vector<4x32xf32>,
    %c0_79 = arith.constant 0 : index
    %c0_80 = arith.constant 0 : index
    %140 = vector.load %arg23[%c0_79, %c0_80] : memref<4x32xf32, #tpu.memory_space<vmem>>, vector<4x32xf32>
    %cst_81 = arith.constant dense<0.000000e+00> : vector<4x32xf32>
    %141 = tpu.matmul %130, %65, %cst_81 {dimension_numbers = #tpu.dot_dimension_numbers<[1], [0], [0], [1], [0, 0, 1, 1], [], []>} : vector<4x128xf32>, vector<128x32xf32>, vector<4x32xf32> -> vector<4x32xf32>
    %142 = arith.addf %140, %141 : vector<4x32xf32>
    %c0_82 = arith.constant 0 : index
    %c0_83 = arith.constant 0 : index
    %143 = vector.load %arg23[%c0_82, %c0_83] : memref<4x32xf32, #tpu.memory_space<vmem>>, vector<4x32xf32>
    tpu.vector_store %arg23[%c0_82, %c0_83], %142 {strides = array<i32>} : memref<4x32xf32, #tpu.memory_space<vmem>>, vector<4x32xf32>,
    %c0_84 = arith.constant 0 : index
    %c0_85 = arith.constant 0 : index
    %144 = vector.load %arg24[%c0_84, %c0_85] : memref<4x1xf32, #tpu.memory_space<vmem>>, vector<4x1xf32>
    %cst_86 = arith.constant dense<0.000000e+00> : vector<4xf32>
    %145 = vector.multi_reduction <add>, %130, %cst_86 [1] : vector<4x128xf32> to vector<4xf32>
    %146 = vector.shape_cast %145 : vector<4xf32> to vector<4x1xf32>
    %147 = arith.addf %144, %146 : vector<4x1xf32>
    %c0_87 = arith.constant 0 : index
    %c0_88 = arith.constant 0 : index
    %148 = vector.load %arg24[%c0_87, %c0_88] : memref<4x1xf32, #tpu.memory_space<vmem>>, vector<4x1xf32>
    tpu.vector_store %arg24[%c0_87, %c0_88], %147 {strides = array<i32>} : memref<4x1xf32, #tpu.memory_space<vmem>>, vector<4x1xf32>,
    %cst_89 = arith.constant 0.000000e+00 : f32
    %149 = vector.broadcast %cst_89 : f32 to vector<128x1xf32>
    %150 = arith.cmpf ogt, %5, %149 : vector<128x1xf32>
    %cst_90 = arith.constant 0xFF800000 : f32
    %151 = vector.shape_cast %150 : vector<128x1xi1> to vector<128x1xi1>
    %152 = vector.broadcast %151 : vector<128x1xi1> to vector<128x32xi1>
    %153 = vector.broadcast %cst_90 : f32 to vector<128x32xf32>
    %154 = arith.select %152, %65, %153 : vector<128x32xi1>, vector<128x32xf32>
    %c0_91 = arith.constant 0 : index
    %c0_92 = arith.constant 0 : index
    %155 = vector.load %arg25[%c0_91, %c0_92] : memref<1x32xf32, #tpu.memory_space<vmem>>, vector<1x32xf32>
    %cst_93 = arith.constant dense<0xFF800000> : vector<32xf32>
    %156 = vector.multi_reduction <maximumf>, %154, %cst_93 [0] : vector<128x32xf32> to vector<32xf32>
    %157 = vector.shape_cast %156 : vector<32xf32> to vector<1x32xf32>
    %158 = arith.maximumf %155, %157 : vector<1x32xf32>
    %c0_94 = arith.constant 0 : index
    %c0_95 = arith.constant 0 : index
    %159 = vector.load %arg25[%c0_94, %c0_95] : memref<1x32xf32, #tpu.memory_space<vmem>>, vector<1x32xf32>
    tpu.vector_store %arg25[%c0_94, %c0_95], %158 {strides = array<i32>} : memref<1x32xf32, #tpu.memory_space<vmem>>, vector<1x32xf32>,
    %c0_i32_96 = arith.constant 0 : i32
    %160 = arith.cmpi eq, %arg0, %c0_i32_96 : i32
    %161 = arith.extui %160 : i1 to i32
    %c0_i32_97 = arith.constant 0 : i32
    %162 = arith.cmpi ne, %161, %c0_i32_97 : i32
    scf.if %162 {
      %c0_98 = arith.constant 0 : index
      %c0_99 = arith.constant 0 : index
      %163 = vector.load %arg25[%c0_98, %c0_99] : memref<1x32xf32, #tpu.memory_space<vmem>>, vector<1x32xf32>
      %c0_100 = arith.constant 0 : index
      %c0_101 = arith.constant 0 : index
      %164 = vector.load %arg21[%c0_100, %c0_101] : memref<4x32xf32, #tpu.memory_space<vmem>>, vector<4x32xf32>
      %c0_102 = arith.constant 0 : index
      %c0_103 = arith.constant 0 : index
      %165 = vector.load %arg22[%c0_102, %c0_103] : memref<4x32xf32, #tpu.memory_space<vmem>>, vector<4x32xf32>
      %166 = vector.broadcast %163 : vector<1x32xf32> to vector<4x32xf32>
      %167 = arith.mulf %166, %165 : vector<4x32xf32>
      %168 = arith.subf %164, %167 : vector<4x32xf32>
      %c0_104 = arith.constant 0 : index
      %c0_105 = arith.constant 0 : index
      %169 = vector.load %arg23[%c0_104, %c0_105] : memref<4x32xf32, #tpu.memory_space<vmem>>, vector<4x32xf32>
      %c0_106 = arith.constant 0 : index
      %c0_107 = arith.constant 0 : index
      %170 = vector.load %arg24[%c0_106, %c0_107] : memref<4x1xf32, #tpu.memory_space<vmem>>, vector<4x1xf32>
      %171 = vector.broadcast %163 : vector<1x32xf32> to vector<4x32xf32>
      %172 = vector.broadcast %170 : vector<4x1xf32> to vector<4x32xf32>
      %173 = arith.mulf %171, %172 : vector<4x32xf32>
      %174 = arith.subf %169, %173 : vector<4x32xf32>
      %175 = arith.divf %168, %174 : vector<4x32xf32>
      %c0_108 = arith.constant 0 : index
      %c0_109 = arith.constant 0 : index
      %176 = vector.load %arg20[%c0_108, %c0_109] : memref<4x32xf32, #tpu.memory_space<vmem>>, vector<4x32xf32>
      tpu.vector_store %arg20[%c0_108, %c0_109], %175 {strides = array<i32>} : memref<4x32xf32, #tpu.memory_space<vmem>>, vector<4x32xf32>,
    } else {
    }
    return
  }
  func.func @transform_0(%arg0: i32) -> (i32, i32) {
    %c0_i32 = arith.constant 0 : i32
    %c0_i32_0 = arith.constant 0 : i32
    return %arg0, %c0_i32 : i32, i32
  }
  func.func @transform_1(%arg0: i32) -> (i32, i32) {
    %c0_i32 = arith.constant 0 : i32
    %c0_i32_0 = arith.constant 0 : i32
    return %c0_i32, %arg0 : i32, i32
  }
  func.func @transform_2(%arg0: i32) -> (i32, i32) {
    %c0_i32 = arith.constant 0 : i32
    %c0_i32_0 = arith.constant 0 : i32
    return %arg0, %c0_i32 : i32, i32
  }
  func.func @transform_3(%arg0: i32) -> (i32, i32) {
    %c0_i32 = arith.constant 0 : i32
    %c0_i32_0 = arith.constant 0 : i32
    %c0_i32_1 = arith.constant 0 : i32
    return %c0_i32, %c0_i32_0 : i32, i32
  }
  func.func @transform_4(%arg0: i32) -> (i32, i32) {
    %c0_i32 = arith.constant 0 : i32
    %c0_i32_0 = arith.constant 0 : i32
    %c0_i32_1 = arith.constant 0 : i32
    return %c0_i32, %c0_i32_0 : i32, i32
  }
  func.func @transform_5(%arg0: i32) -> (i32, i32) {
    %c0_i32 = arith.constant 0 : i32
    %c0_i32_0 = arith.constant 0 : i32
    %c0_i32_1 = arith.constant 0 : i32
    return %c0_i32, %c0_i32_0 : i32, i32
  }
  func.func @transform_6(%arg0: i32) -> (i32, i32) {
    %c0_i32 = arith.constant 0 : i32
    %c0_i32_0 = arith.constant 0 : i32
    %c0_i32_1 = arith.constant 0 : i32
    return %c0_i32, %c0_i32_0 : i32, i32
  }
  func.func @transform_7(%arg0: i32) -> (i32, i32) {
    %c0_i32 = arith.constant 0 : i32
    %c0_i32_0 = arith.constant 0 : i32
    %c0_i32_1 = arith.constant 0 : i32
    return %c0_i32, %c0_i32_0 : i32, i32
  }
  func.func @transform_8(%arg0: i32) -> (i32, i32) {
    %c0_i32 = arith.constant 0 : i32
    %c0_i32_0 = arith.constant 0 : i32
    %c0_i32_1 = arith.constant 0 : i32
    return %c0_i32, %c0_i32_0 : i32, i32
  }
  func.func @transform_9(%arg0: i32) -> (i32, i32) {
    %c0_i32 = arith.constant 0 : i32
    %c0_i32_0 = arith.constant 0 : i32
    %c0_i32_1 = arith.constant 0 : i32
    return %c0_i32, %c0_i32_0 : i32, i32
  }
  func.func @transform_10(%arg0: i32) -> (i32, i32) {
    %c0_i32 = arith.constant 0 : i32
    %c0_i32_0 = arith.constant 0 : i32
    %c0_i32_1 = arith.constant 0 : i32
    return %c0_i32, %c0_i32_0 : i32, i32
  }
  func.func @transform_11(%arg0: i32) -> (i32, i32) {
    %c0_i32 = arith.constant 0 : i32
    %c0_i32_0 = arith.constant 0 : i32
    %c0_i32_1 = arith.constant 0 : i32
    return %c0_i32, %c0_i32_0 : i32, i32
  }
  func.func @transform_12(%arg0: i32) -> (i32, i32) {
    %c0_i32 = arith.constant 0 : i32
    %c0_i32_0 = arith.constant 0 : i32
    %c0_i32_1 = arith.constant 0 : i32
    return %c0_i32, %c0_i32_0 : i32, i32
  }
  func.func @transform_13(%arg0: i32) -> (i32, i32) {
    %c0_i32 = arith.constant 0 : i32
    %c0_i32_0 = arith.constant 0 : i32
    %c0_i32_1 = arith.constant 0 : i32
    return %c0_i32, %c0_i32_0 : i32, i32
  }
  func.func @transform_14(%arg0: i32) -> (i32, i32) {
    %c0_i32 = arith.constant 0 : i32
    %c0_i32_0 = arith.constant 0 : i32
    %c0_i32_1 = arith.constant 0 : i32
    return %c0_i32, %c0_i32_0 : i32, i32
  }
  func.func @transform_15(%arg0: i32) -> (i32, i32) {
    %c0_i32 = arith.constant 0 : i32
    %c0_i32_0 = arith.constant 0 : i32
    %c0_i32_1 = arith.constant 0 : i32
    return %c0_i32, %c0_i32_0 : i32, i32
  }
  func.func @transform_16(%arg0: i32) -> (i32, i32) {
    %c0_i32 = arith.constant 0 : i32
    %c0_i32_0 = arith.constant 0 : i32
    %c0_i32_1 = arith.constant 0 : i32
    return %c0_i32, %c0_i32_0 : i32, i32
  }
  func.func @transform_17(%arg0: i32) -> (i32, i32) {
    %c0_i32 = arith.constant 0 : i32
    %c0_i32_0 = arith.constant 0 : i32
    %c0_i32_1 = arith.constant 0 : i32
    return %c0_i32, %c0_i32_0 : i32, i32
  }
  func.func @transform_18(%arg0: i32) -> (i32, i32) {
    %c0_i32 = arith.constant 0 : i32
    %c0_i32_0 = arith.constant 0 : i32
    %c0_i32_1 = arith.constant 0 : i32
    return %c0_i32, %c0_i32_0 : i32, i32
  }
  func.func @transform_19(%arg0: i32) -> (i32, i32) {
    %c0_i32 = arith.constant 0 : i32
    %c0_i32_0 = arith.constant 0 : i32
    %c0_i32_1 = arith.constant 0 : i32
    return %c0_i32, %c0_i32_0 : i32, i32
  }
}

</mosaic_0001>

<bundles_post_ra>
// kernel: tpu_custom_call.1
= control target key start
LH: loop header
LB: loop body
LE: loop exit
PB: predicated region body
PF: predicated region fallthrough
CT: control target
= control target key end

     0   :  { %s9050_s0 = inlined_call_operand.vmem [shape: f32[128,32], index: 0, kind: input, shape index: {}]   ;;  %s9051_s1 = inlined_call_operand.vmem [shape: s32[1,128], index: 1, kind: input, shape index: {}]   ;;  %s9052_s2 = inlined_call_operand.vmem [shape: f32[128,1], index: 2, kind: input, shape index: {}]   ;;  %s9053_s3 = inlined_call_operand.vmem [shape: f32[32,32], index: 3, kind: input, shape index: {}]   ;;  %s9054_s4 = inlined_call_operand.vmem [shape: f32[1,32], index: 4, kind: input, shape index: {}]   ;;  %s9055_s5 = inlined_call_operand.vmem [shape: f32[32,32], index: 5, kind: input, shape index: {}]   ;;  %s9056_s6 = inlined_call_operand.vmem [shape: f32[1,32], index: 6, kind: input, shape index: {}]   ;;  %s9057_s7 = inlined_call_operand.vmem [shape: f32[32,32], index: 7, kind: input, shape index: {}]   ;;  %s9058_s8 = inlined_call_operand.vmem [shape: f32[1,32], index: 8, kind: input, shape index: {}]   ;;  %s9059_s9 = inlined_call_operand.vmem [shape: f32[32,32], index: 9, kind: input, shape index: {}]   ;;  %s9060_s10 = inlined_call_operand.vmem [shape: f32[1,32], index: 10, kind: input, shape index: {}]   ;;  %s9061_s11 = inlined_call_operand.vmem [shape: f32[32,32], index: 11, kind: input, shape index: {}]   ;;  %s9062_s12 = inlined_call_operand.vmem [shape: f32[1,32], index: 12, kind: input, shape index: {}]   ;;  %s9063_s13 = inlined_call_operand.vmem [shape: f32[32,32], index: 13, kind: input, shape index: {}]   ;;  %s9064_s14 = inlined_call_operand.vmem [shape: f32[1,32], index: 14, kind: input, shape index: {}]   ;;  %s9065_s15 = inlined_call_operand.vmem [shape: f32[32,32], index: 15, kind: input, shape index: {}]   ;;  %s9066_s16 = inlined_call_operand.vmem [shape: f32[1,32], index: 16, kind: input, shape index: {}]   ;;  %s9067_s17 = inlined_call_operand.vmem [shape: f32[32,32], index: 17, kind: input, shape index: {}]   ;;  %s9068_s18 = inlined_call_operand.vmem [shape: f32[1,32], index: 18, kind: input, shape index: {}]   ;;  %s9069_s19 = inlined_call_operand.hbm [shape: f32[4,32], index: 19, kind: output, shape index: {}]  }
   0x1   :  { %9112 = sst [smem:[#allocation45_spill]] %s9050_s0 }
   0x2   :  { %9113 = sst [smem:[#allocation46_spill]] %s9051_s1 }
   0x3   :  { %9114 = sst [smem:[#allocation47_spill]] %s9052_s2 }
   0x4   :  { %9115 = sst [smem:[#allocation48_spill]] %s9053_s3 }
   0x5   :  { %s9116_s20 = sld [smem:[#allocation48_spill]]  ;;  %vm116_vm0 = vcmask 261120  }
   0x6   :  { %s9117_s26 = sld [smem:[#allocation45_spill]] }
   0xb   :  { %v111_v0 = vld [vmem:[%s9116_s20 + $0x18] sm:$0xff]  ;;  %v110_v1 = vld [vmem:[%s9116_s20 + $0x10] sm:$0xff]  ;;  %v109_v2 = vld [vmem:[%s9116_s20 + $0x8] sm:$0xff] }
   0xc   :  { %177 = vmatpush.msra.mxu0 %v111_v0  ;;  %v108_v3 = vld [vmem:[%s9116_s20] sm:$0xff] }
   0xd   :  { %v75_v4 = vld [vmem:[%s9117_s26] sm:$0xff] }
   0xe   :  { %178 = vmatpush.msra.mxu0 %v110_v1 }
  0x10   :  { %179 = vmatpush.msra.mxu0 %v109_v2 }
  0x11   :  { %24 = vsyncpa [#allocation8], 0  ;;  %v76_v5 = vld [vmem:[%s9117_s26 + $0x8] sm:$0xff]  ;;  %v4974_v6 = vld [vmem:[%s9117_s26 + $0x10] sm:$0xff]  ;;  %s9213_s1 = sld [smem:[#allocation47_spill]] }
  0x12   :  { %180 = vmatpush.msra.mxu0 %v108_v3  ;;  %v4981_v7 = vld [vmem:[%s9117_s26 + $0x18] sm:$0xff]  ;;  %v4988_v8 = vld [vmem:[%s9117_s26 + $0x20] sm:$0xff]  ;;  %v4995_v9 = vld [vmem:[%s9117_s26 + $0x28] sm:$0xff] }
  0x13   :  { %4150 = vmatmul.msk.f32.vlgmr.msra.gmra.mxu0 %vm116_vm0, %v75_v4  ;;  %v5002_v10 = vld [vmem:[%s9117_s26 + $0x30] sm:$0xff]  ;;  %v5009_v11 = vld [vmem:[%s9117_s26 + $0x38] sm:$0xff]  ;;  %v5016_v12 = vld [vmem:[%s9117_s26 + $0x40] sm:$0xff] }
  0x14   :  { %v2004_v13 = vld [vmem:[%s9061_s11 + $0x18] sm:$0xff]  ;;  %v5026_v14 = vld [vmem:[%s9117_s26 + $0x48] sm:$0xff]  ;;  %v5033_v15 = vld [vmem:[%s9117_s26 + $0x50] sm:$0xff] }
  0x15   :  { %2021 = vmatpush.msrb.mxu0 %v2004_v13  ;;  %v5040_v16 = vld [vmem:[%s9117_s26 + $0x58] sm:$0xff]  ;;  %v2003_v17 = vld [vmem:[%s9061_s11 + $0x10] sm:$0xff]  ;;  %v2002_v18 = vld [vmem:[%s9061_s11 + $0x8] sm:$0xff] }
  0x16   :  { %v5053_v19 = vld [vmem:[%s9117_s26 + $0x60] sm:$0xff]  ;;  %v5063_v21 = vld [vmem:[%s9117_s26 + $0x68] sm:$0xff]  ;;  %v5070_v22 = vld [vmem:[%s9117_s26 + $0x70] sm:$0xff] }
  0x17   :  { %2022 = vmatpush.msrb.mxu0 %v2003_v17  ;;  %v2001_v20 = vld [vmem:[%s9061_s11] sm:$0xff]  ;;  %v5077_v23 = vld [vmem:[%s9117_s26 + $0x78] sm:$0xff]  ;;  %v584_v28 = vld [vmem:[%s9055_s5 + $0x10] sm:$0xff] }
  0x18   :  { %v5084_v24 = vld [vmem:[%s9054_s4] ss:$0 sm:$0xff]  ;;  %v585_v25 = vld [vmem:[%s9055_s5 + $0x18] sm:$0xff]  ;;  %v583_v30 = vld [vmem:[%s9055_s5 + $0x8] sm:$0xff] }
  0x19   :  { %2023 = vmatpush.msrb.mxu0 %v2002_v18  ;;  %650 = vmatpush.msra.mxu1 %v585_v25  ;;  %v582_v31 = vld [vmem:[%s9055_s5] sm:$0xff] }
  0x1b   :  { %4151 = vmatmul.msk.f32.gmra.mxu0 %vm116_vm0, %v76_v5  ;;  %651 = vmatpush.msra.mxu1 %v584_v28 }
  0x1c   :  { %2024 = vmatpush.msrb.mxu0 %v2001_v20 }
  0x1d   :  { %652 = vmatpush.msra.mxu1 %v583_v30 }
  0x1f   :  { %653 = vmatpush.msra.mxu1 %v582_v31 }
  0x23   :  { %4152 = vmatmul.msk.f32.gmra.mxu0 %vm116_vm0, %v4974_v6 }
  0x2b   :  { %4153 = vmatmul.msk.f32.gmra.mxu0 %vm116_vm0, %v4981_v7 }
  0x33   :  { %4154 = vmatmul.msk.f32.gmra.mxu0 %vm116_vm0, %v4988_v8 }
  0x3b   :  { %4155 = vmatmul.msk.f32.gmra.mxu0 %vm116_vm0, %v4995_v9 }
  0x43   :  { %4156 = vmatmul.msk.f32.gmra.mxu0 %vm116_vm0, %v5002_v10 }
  0x4b   :  { %4157 = vmatmul.msk.f32.gmra.mxu0 %vm116_vm0, %v5009_v11 }
  0x53   :  { %4158 = vmatmul.msk.f32.gmra.mxu0 %vm116_vm0, %v5016_v12 }
  0x5b   :  { %4159 = vmatmul.msk.f32.gmra.mxu0 %vm116_vm0, %v5026_v14 }
  0x63   :  { %4160 = vmatmul.msk.f32.gmra.mxu0 %vm116_vm0, %v5033_v15 }
  0x6b   :  { %4161 = vmatmul.msk.f32.gmra.mxu0 %vm116_vm0, %v5040_v16 }
  0x73   :  { %4162 = vmatmul.msk.f32.gmra.mxu0 %vm116_vm0, %v5053_v19 }
  0x7b   :  { %4163 = vmatmul.msk.f32.gmra.mxu0 %vm116_vm0, %v5063_v21 }
  0x83   :  { %4164 = vmatmul.msk.f32.gmra.mxu0 %vm116_vm0, %v5070_v22 }
  0x8b   :  { %4165 = vmatmul.msk.f32.gmra.mxu0 %vm116_vm0, %v5077_v23 }
  0x90   :  { %v182_v26 = vpop.f32.mrf.mxu0 }
  0x91   :  { %v5090_v27 = vadd.f32 %v5084_v24, %v182_v26 }
  0x93   :  { %v230_v29 = vmul.f32 1.442695, %v5090_v27  ;;  %4214 = vmatmul.msk.f32.vlgmr.msrb.gmra.mxu0 %vm116_vm0, %v75_v4  ;;  %v262_v60 = vmul.f32 2.0, %v5090_v27 }
  0x95   :  { %4300 = vpow2.f32 %v230_v29 }
  0x98   :  { %v185_v32 = vpop.f32.mrf.mxu0 }
  0x99   :  { %v5104_v33 = vadd.f32 %v5084_v24, %v185_v32 }
  0x9b   :  { %v4301_v34 = vpop.eup %4300  ;;  %v232_v35 = vmul.f32 1.442695, %v5104_v33  ;;  %4215 = vmatmul.msk.f32.gmra.mxu0 %vm116_vm0, %v76_v5  ;;  %v263_v30 = vmul.f32 2.0, %v5104_v33 }
  0x9c   :  { %v278_v36 = vadd.f32 2.0, %v4301_v34 }
  0x9d   :  { %4302 = vpow2.f32 %v232_v35 }
  0x9e   :  { %v294_v37 = vmul.f32 %v4301_v34, %v278_v36 }
  0xa0   :  { %v310_v38 = vadd.f32 2.0, %v294_v37  ;;  %v188_v39 = vpop.f32.mrf.mxu0 }
  0xa1   :  { %v5109_v40 = vadd.f32 %v5084_v24, %v188_v39 }
  0xa2   :  { %4304 = vrcp.f32 %v310_v38  ;;  %v337_v54 = vand.u32 2147483648, %v310_v38  ;;  %v335_v56 = vand.u32 2147483647, %v310_v38  ;;  %vm331_vm2 = vweird.f32 %v310_v38 }
  0xa3   :  { %v4303_v41 = vpop.eup %4302  ;;  %v234_v42 = vmul.f32 1.442695, %v5109_v40  ;;  %4216 = vmatmul.msk.f32.gmra.mxu0 %vm116_vm0, %v4974_v6 }
  0xa4   :  { %v279_v43 = vadd.f32 2.0, %v4303_v41  ;;  %v338_v63 = vor.u32 1.1754944e-38, %v337_v54  ;;  %vm336_vm4 = vcmp.eq.f32.partialorder %v335_v56, 8.507059e+37 }
  0xa5   :  { %4306 = vpow2.f32 %v234_v42 }
  0xa6   :  { %v295_v44 = vmul.f32 %v4303_v41, %v279_v43 }
  0xa8   :  { %v4305_v45 = vpop.eup %4304  ;;  %v311_v46 = vadd.f32 2.0, %v295_v44  ;;  %v191_v47 = vpop.f32.mrf.mxu0 }
  0xa9   :  { %v5115_v48 = vadd.f32 %v5084_v24, %v191_v47  ;;  %v327_v49 = vmul.f32 %v4305_v45, %v310_v38  ;;  %vm332_vm1 = vweird.f32 %v4305_v45 }
  0xaa   :  { %4308 = vrcp.f32 %v311_v46  ;;  %vm333_vm3 = vmor %vm331_vm2, %vm332_vm1  ;;  %v350_v17 = vand.u32 2147483647, %v311_v46  ;;  %v352_v18 = vand.u32 2147483648, %v311_v46  ;;  %vm346_vm6 = vweird.f32 %v311_v46 }
  0xab   :  { %v4307_v50 = vpop.eup %4306  ;;  %v236_v51 = vmul.f32 1.442695, %v5115_v48  ;;  %4217 = vmatmul.msk.f32.gmra.mxu0 %vm116_vm0, %v4981_v7  ;;  %v328_v52 = vsub.f32 1.0, %v327_v49 }
  0xac   :  { %v280_v53 = vadd.f32 2.0, %v4307_v50  ;;  %v353_v32 = vor.u32 1.1754944e-38, %v352_v18  ;;  %vm351_vm8 = vcmp.eq.f32.partialorder %v350_v17, 8.507059e+37 }
  0xad   :  { %4310 = vpow2.f32 %v236_v51  ;;  %v329_v55 = vmul.f32 %v4305_v45, %v328_v52 }
  0xae   :  { %v296_v57 = vmul.f32 %v4307_v50, %v280_v53 }
  0xaf   :  { %v330_v58 = vadd.f32 %v4305_v45, %v329_v55 }
  0xb0   :  { %v4309_v59 = vpop.eup %4308  ;;  %v5121_v61 = vadd.f32 2.0, %v296_v57  ;;  %v194_v62 = vpop.f32.mrf.mxu0 }
  0xb1   :  { %v5124_v0 = vadd.f32 %v5084_v24, %v194_v62  ;;  %v334_v1 = vsel %vm333_vm3, %v4305_v45, %v330_v58  ;;  %v342_v2 = vmul.f32 %v4309_v59, %v311_v46  ;;  %vm347_vm5 = vweird.f32 %v4309_v59 }
  0xb2   :  { %4312 = vrcp.f32 %v5121_v61  ;;  %v339_v3 = vsel %vm336_vm4, %v338_v63, %v334_v1  ;;  %vm348_vm7 = vmor %vm346_vm6, %vm347_vm5  ;;  %v365_v43 = vand.u32 2147483647, %v5121_v61  ;;  %v367_v44 = vand.u32 2147483648, %v5121_v61 }
  0xb3   :  { %v4311_v4 = vpop.eup %4310  ;;  %v238_v5 = vmul.f32 1.442695, %v5124_v0  ;;  %4218 = vmatmul.msk.f32.gmra.mxu0 %vm116_vm0, %v4988_v8  ;;  %v340_v6 = vmul.f32 %v339_v3, %v262_v60  ;;  %v343_v7 = vsub.f32 1.0, %v342_v2  ;;  %vm361_vm10 = vweird.f32 %v5121_v61 }
  0xb4   :  { %v281_v13 = vadd.f32 2.0, %v4311_v4  ;;  %v368_v53 = vor.u32 1.1754944e-38, %v367_v44  ;;  %vm366_vm12 = vcmp.eq.f32.partialorder %v365_v43, 8.507059e+37 }
  0xb5   :  { %4314 = vpow2.f32 %v238_v5  ;;  %v566_v20 = vsub.f32 %v5090_v27, %v340_v6  ;;  %v344_v25 = vmul.f32 %v4309_v59, %v343_v7 }
  0xb6   :  { %v297_v26 = vmul.f32 %v4311_v4, %v281_v13 }
  0xb7   :  { %4166 = vmatmul.msk.f32.vlgmr.msra.gmra.mxu1 %vm116_vm0, %v566_v20  ;;  %v345_v28 = vadd.f32 %v4309_v59, %v344_v25 }
  0xb8   :  { %v4313_v29 = vpop.eup %4312  ;;  %v5133_v31 = vadd.f32 2.0, %v297_v26  ;;  %v197_v8 = vpop.f32.mrf.mxu0 }
  0xb9   :  { %v5136_v34 = vadd.f32 %v5084_v24, %v197_v8  ;;  %v349_v35 = vsel %vm348_vm7, %v4309_v59, %v345_v28  ;;  %v357_v27 = vmul.f32 %v4313_v29, %v5121_v61  ;;  %vm362_vm9 = vweird.f32 %v4313_v29 }
  0xba   :  { %4316 = vrcp.f32 %v5133_v31  ;;  %v354_v36 = vsel %vm351_vm8, %v353_v32, %v349_v35  ;;  %vm363_vm11 = vmor %vm361_vm10, %vm362_vm9  ;;  %v380_v62 = vand.u32 2147483647, %v5133_v31  ;;  %v382_v63 = vand.u32 2147483648, %v5133_v31 }
  0xbb   :  { %v4315_v37 = vpop.eup %4314  ;;  %v240_v38 = vmul.f32 1.442695, %v5136_v34  ;;  %4219 = vmatmul.msk.f32.gmra.mxu0 %vm116_vm0, %v4995_v9  ;;  %v355_v39 = vmul.f32 %v354_v36, %v263_v30  ;;  %v358_v41 = vsub.f32 1.0, %v357_v27  ;;  %v264_v9 = vmul.f32 2.0, %v5109_v40 }
  0xbc   :  { %v282_v42 = vadd.f32 2.0, %v4315_v37  ;;  %vm376_vm14 = vweird.f32 %v5133_v31  ;;  %v383_v13 = vor.u32 1.1754944e-38, %v382_v63  ;;  %vm381_vm1 = vcmp.eq.f32.partialorder %v380_v62, 8.507059e+37 }
  0xbd   :  { %4318 = vpow2.f32 %v240_v38  ;;  %v567_v45 = vsub.f32 %v5104_v33, %v355_v39  ;;  %v359_v46 = vmul.f32 %v4313_v29, %v358_v41 }
  0xbe   :  { %v298_v47 = vmul.f32 %v4315_v37, %v282_v42 }
  0xbf   :  { %4167 = vmatmul.msk.f32.gmra.mxu1 %vm116_vm0, %v567_v45  ;;  %v360_v49 = vadd.f32 %v4313_v29, %v359_v46 }
  0xc0   :  { %v4317_v50 = vpop.eup %4316  ;;  %v5149_v51 = vadd.f32 2.0, %v298_v47  ;;  %v200_v52 = vpop.f32.mrf.mxu0 }
  0xc1   :  { %v5152_v54 = vadd.f32 %v5084_v24, %v200_v52  ;;  %v364_v33 = vsel %vm363_vm11, %v4313_v29, %v360_v49  ;;  %v372_v55 = vmul.f32 %v4317_v50, %v5133_v31  ;;  %vm377_vm13 = vweird.f32 %v4317_v50 }
  0xc2   :  { %4320 = vrcp.f32 %v5149_v51  ;;  %v369_v56 = vsel %vm366_vm12, %v368_v53, %v364_v33  ;;  %vm378_vm15 = vmor %vm376_vm14, %vm377_vm13  ;;  %v395_v31 = vand.u32 2147483647, %v5149_v51  ;;  %v397_v8 = vand.u32 2147483648, %v5149_v51 }
  0xc3   :  { %v4319_v57 = vpop.eup %4318  ;;  %v242_v58 = vmul.f32 1.442695, %v5152_v54  ;;  %4220 = vmatmul.msk.f32.gmra.mxu0 %vm116_vm0, %v5002_v10  ;;  %v370_v59 = vmul.f32 %v369_v56, %v264_v9  ;;  %v373_v60 = vsub.f32 1.0, %v372_v55  ;;  %v265_v10 = vmul.f32 2.0, %v5115_v48 }
  0xc4   :  { %v283_v61 = vadd.f32 2.0, %v4319_v57  ;;  %vm391_vm3 = vweird.f32 %v5149_v51  ;;  %v398_v41 = vor.u32 1.1754944e-38, %v397_v8  ;;  %vm396_vm5 = vcmp.eq.f32.partialorder %v395_v31, 8.507059e+37 }
  0xc5   :  { %4322 = vpow2.f32 %v242_v58  ;;  %v568_v1 = vsub.f32 %v5109_v40, %v370_v59  ;;  %v374_v2 = vmul.f32 %v4317_v50, %v373_v60 }
  0xc6   :  { %v299_v3 = vmul.f32 %v4319_v57, %v283_v61 }
  0xc7   :  { %4168 = vmatmul.msk.f32.gmra.mxu1 %vm116_vm0, %v568_v1  ;;  %v375_v4 = vadd.f32 %v4317_v50, %v374_v2 }
  0xc8   :  { %v4321_v5 = vpop.eup %4320  ;;  %v5165_v6 = vadd.f32 2.0, %v299_v3  ;;  %v203_v7 = vpop.f32.mrf.mxu0 }
  0xc9   :  { %v5168_v17 = vadd.f32 %v5084_v24, %v203_v7  ;;  %v379_v40 = vsel %vm378_vm15, %v4317_v50, %v375_v4  ;;  %v387_v18 = vmul.f32 %v4321_v5, %v5149_v51  ;;  %vm392_vm2 = vweird.f32 %v4321_v5 }
  0xca   :  { %4324 = vrcp.f32 %v5165_v6  ;;  %v384_v20 = vsel %vm381_vm1, %v383_v13, %v379_v40  ;;  %vm393_vm4 = vmor %vm391_vm3, %vm392_vm2  ;;  %v410_v9 = vand.u32 2147483647, %v5165_v6  ;;  %v412_v51 = vand.u32 2147483648, %v5165_v6 }
  0xcb   :  { %v4323_v25 = vpop.eup %4322  ;;  %v244_v26 = vmul.f32 1.442695, %v5168_v17  ;;  %4221 = vmatmul.msk.f32.gmra.mxu0 %vm116_vm0, %v5009_v11  ;;  %v385_v28 = vmul.f32 %v384_v20, %v265_v10  ;;  %v388_v29 = vsub.f32 1.0, %v387_v18  ;;  %v266_v11 = vmul.f32 2.0, %v5124_v0 }
  0xcc   :  { %v284_v30 = vadd.f32 2.0, %v4323_v25  ;;  %vm406_vm7 = vweird.f32 %v5165_v6  ;;  %v413_v59 = vor.u32 1.1754944e-38, %v412_v51  ;;  %vm411_vm9 = vcmp.eq.f32.partialorder %v410_v9, 8.507059e+37 }
  0xcd   :  { %4326 = vpow2.f32 %v244_v26  ;;  %v569_v32 = vsub.f32 %v5115_v48, %v385_v28  ;;  %v389_v35 = vmul.f32 %v4321_v5, %v388_v29 }
  0xce   :  { %v300_v27 = vmul.f32 %v4323_v25, %v284_v30 }
  0xcf   :  { %4169 = vmatmul.msk.f32.gmra.mxu1 %vm116_vm0, %v569_v32  ;;  %v390_v36 = vadd.f32 %v4321_v5, %v389_v35 }
  0xd0   :  { %v4325_v37 = vpop.eup %4324  ;;  %v5181_v38 = vadd.f32 2.0, %v300_v27  ;;  %v206_v39 = vpop.f32.mrf.mxu0 }
  0xd1   :  { %v5184_v42 = vadd.f32 %v5084_v24, %v206_v39  ;;  %v394_v48 = vsel %vm393_vm4, %v4321_v5, %v390_v36  ;;  %v402_v43 = vmul.f32 %v4325_v37, %v5165_v6  ;;  %vm407_vm6 = vweird.f32 %v4325_v37 }
  0xd2   :  { %4328 = vrcp.f32 %v5181_v38  ;;  %v399_v44 = vsel %vm396_vm5, %v398_v41, %v394_v48  ;;  %vm408_vm8 = vmor %vm406_vm7, %vm407_vm6  ;;  %v425_v5 = vand.u32 2147483647, %v5181_v38  ;;  %v427_v10 = vand.u32 2147483648, %v5181_v38 }
  0xd3   :  { %v4327_v45 = vpop.eup %4326  ;;  %v246_v46 = vmul.f32 1.442695, %v5184_v42  ;;  %4222 = vmatmul.msk.f32.gmra.mxu0 %vm116_vm0, %v5016_v12  ;;  %v400_v47 = vmul.f32 %v399_v44, %v266_v11  ;;  %v403_v49 = vsub.f32 1.0, %v402_v43  ;;  %v267_v12 = vmul.f32 2.0, %v5136_v34 }
  0xd4   :  { %v285_v50 = vadd.f32 2.0, %v4327_v45  ;;  %vm421_vm11 = vweird.f32 %v5181_v38  ;;  %v428_v26 = vor.u32 1.1754944e-38, %v427_v10  ;;  %vm426_vm13 = vcmp.eq.f32.partialorder %v425_v5, 8.507059e+37 }
  0xd5   :  { %4330 = vpow2.f32 %v246_v46  ;;  %v570_v52 = vsub.f32 %v5124_v0, %v400_v47  ;;  %v404_v53 = vmul.f32 %v4325_v37, %v403_v49 }
  0xd6   :  { %v301_v33 = vmul.f32 %v4327_v45, %v285_v50 }
  0xd7   :  { %4170 = vmatmul.msk.f32.gmra.mxu1 %vm116_vm0, %v570_v52  ;;  %v405_v55 = vadd.f32 %v4325_v37, %v404_v53 }
  0xd8   :  { %v4329_v56 = vpop.eup %4328  ;;  %v5197_v57 = vadd.f32 2.0, %v301_v33  ;;  %v209_v58 = vpop.f32.mrf.mxu0 }
  0xd9   :  { %v5200_v60 = vadd.f32 %v5084_v24, %v209_v58  ;;  %v409_v0 = vsel %vm408_vm8, %v4325_v37, %v405_v55  ;;  %v417_v61 = vmul.f32 %v4329_v56, %v5181_v38  ;;  %vm422_vm10 = vweird.f32 %v4329_v56 }
  0xda   :  { %4332 = vrcp.f32 %v5197_v57  ;;  %v414_v62 = vsel %vm411_vm9, %v413_v59, %v409_v0  ;;  %vm423_vm12 = vmor %vm421_vm11, %vm422_vm10  ;;  %v440_v36 = vand.u32 2147483647, %v5197_v57  ;;  %v442_v37 = vand.u32 2147483648, %v5197_v57 }
  0xdb   :  { %v4331_v63 = vpop.eup %4330  ;;  %v248_v1 = vmul.f32 1.442695, %v5200_v60  ;;  %4223 = vmatmul.msk.f32.gmra.mxu0 %vm116_vm0, %v5026_v14  ;;  %v415_v2 = vmul.f32 %v414_v62, %v267_v12  ;;  %v418_v3 = vsub.f32 1.0, %v417_v61  ;;  %v268_v14 = vmul.f32 2.0, %v5152_v54 }
  0xdc   :  { %v286_v4 = vadd.f32 2.0, %v4331_v63  ;;  %vm436_vm15 = vweird.f32 %v5197_v57  ;;  %v443_v45 = vor.u32 1.1754944e-38, %v442_v37  ;;  %vm441_vm2 = vcmp.eq.f32.partialorder %v440_v36, 8.507059e+37 }
  0xdd   :  { %4334 = vpow2.f32 %v248_v1  ;;  %v571_v6 = vsub.f32 %v5136_v34, %v415_v2  ;;  %v419_v7 = vmul.f32 %v4329_v56, %v418_v3 }
  0xde   :  { %v302_v13 = vmul.f32 %v4331_v63, %v286_v4 }
  0xdf   :  { %4171 = vmatmul.msk.f32.gmra.mxu1 %vm116_vm0, %v571_v6  ;;  %v420_v40 = vadd.f32 %v4329_v56, %v419_v7 }
  0xe0   :  { %v4333_v18 = vpop.eup %4332  ;;  %v5213_v20 = vadd.f32 2.0, %v302_v13  ;;  %v212_v25 = vpop.f32.mrf.mxu0 }
  0xe1   :  { %v5216_v28 = vadd.f32 %v5084_v24, %v212_v25  ;;  %v424_v34 = vsel %vm423_vm12, %v4329_v56, %v420_v40  ;;  %v432_v29 = vmul.f32 %v4333_v18, %v5197_v57  ;;  %vm437_vm14 = vweird.f32 %v4333_v18 }
  0xe2   :  { %4336 = vrcp.f32 %v5213_v20  ;;  %v429_v30 = vsel %vm426_vm13, %v428_v26, %v424_v34  ;;  %vm438_vm1 = vmor %vm436_vm15, %vm437_vm14  ;;  %v455_v33 = vand.u32 2147483647, %v5213_v20  ;;  %v457_v55 = vand.u32 2147483648, %v5213_v20 }
  0xe3   :  { %v4335_v31 = vpop.eup %4334  ;;  %v250_v8 = vmul.f32 1.442695, %v5216_v28  ;;  %4224 = vmatmul.msk.f32.gmra.mxu0 %vm116_vm0, %v5033_v15  ;;  %v430_v32 = vmul.f32 %v429_v30, %v268_v14  ;;  %v433_v35 = vsub.f32 1.0, %v432_v29  ;;  %v269_v15 = vmul.f32 2.0, %v5168_v17 }
  0xe4   :  { %v287_v27 = vadd.f32 2.0, %v4335_v31  ;;  %vm451_vm4 = vweird.f32 %v5213_v20  ;;  %v458_v62 = vor.u32 1.1754944e-38, %v457_v55  ;;  %vm456_vm6 = vcmp.eq.f32.partialorder %v455_v33, 8.507059e+37 }
  0xe5   :  { %4338 = vpow2.f32 %v250_v8  ;;  %v572_v11 = vsub.f32 %v5152_v54, %v430_v32  ;;  %v434_v38 = vmul.f32 %v4333_v18, %v433_v35 }
  0xe6   :  { %v303_v39 = vmul.f32 %v4335_v31, %v287_v27 }
  0xe7   :  { %4172 = vmatmul.msk.f32.gmra.mxu1 %vm116_vm0, %v572_v11  ;;  %v435_v41 = vadd.f32 %v4333_v18, %v434_v38 }
  0xe8   :  { %v4337_v48 = vpop.eup %4336  ;;  %v5229_v43 = vadd.f32 2.0, %v303_v39  ;;  %v215_v44 = vpop.f32.mrf.mxu0 }
  0xe9   :  { %v5232_v46 = vadd.f32 %v5084_v24, %v215_v44  ;;  %v439_v54 = vsel %vm438_vm1, %v4333_v18, %v435_v41  ;;  %v447_v47 = vmul.f32 %v4337_v48, %v5213_v20  ;;  %vm452_vm3 = vweird.f32 %v4337_v48 }
  0xea   :  { %4340 = vrcp.f32 %v5229_v43  ;;  %v444_v49 = vsel %vm441_vm2, %v443_v45, %v439_v54  ;;  %vm453_vm5 = vmor %vm451_vm4, %vm452_vm3  ;;  %v470_v7 = vand.u32 2147483647, %v5229_v43  ;;  %v472_v13 = vand.u32 2147483648, %v5229_v43 }
  0xeb   :  { %v4339_v50 = vpop.eup %4338  ;;  %v252_v9 = vmul.f32 1.442695, %v5232_v46  ;;  %4225 = vmatmul.msk.f32.gmra.mxu0 %vm116_vm0, %v5040_v16  ;;  %v445_v51 = vmul.f32 %v444_v49, %v269_v15  ;;  %v448_v52 = vsub.f32 1.0, %v447_v47  ;;  %v270_v16 = vmul.f32 2.0, %v5184_v42 }
  0xec   :  { %v288_v53 = vadd.f32 2.0, %v4339_v50  ;;  %vm466_vm8 = vweird.f32 %v5229_v43  ;;  %v473_v29 = vor.u32 1.1754944e-38, %v472_v13  ;;  %vm471_vm10 = vcmp.eq.f32.partialorder %v470_v7, 8.507059e+37 }
  0xed   :  { %4342 = vpow2.f32 %v252_v9  ;;  %v573_v56 = vsub.f32 %v5168_v17, %v445_v51  ;;  %v449_v12 = vmul.f32 %v4337_v48, %v448_v52 }
  0xee   :  { %v304_v57 = vmul.f32 %v4339_v50, %v288_v53 }
  0xef   :  { %4173 = vmatmul.msk.f32.gmra.mxu1 %vm116_vm0, %v573_v56  ;;  %v450_v58 = vadd.f32 %v4337_v48, %v449_v12 }
  0xf0   :  { %v4341_v59 = vpop.eup %4340  ;;  %v5245_v0 = vadd.f32 2.0, %v304_v57  ;;  %v218_v61 = vpop.f32.mrf.mxu0 }
  0xf1   :  { %v5248_v63 = vadd.f32 %v5084_v24, %v218_v61  ;;  %v454_v17 = vsel %vm453_vm5, %v4337_v48, %v450_v58  ;;  %v462_v1 = vmul.f32 %v4341_v59, %v5229_v43  ;;  %vm467_vm7 = vweird.f32 %v4341_v59 }
  0xf2   :  { %4344 = vrcp.f32 %v5245_v0  ;;  %v459_v2 = vsel %vm456_vm6, %v458_v62, %v454_v17  ;;  %vm468_vm9 = vmor %vm466_vm8, %vm467_vm7  ;;  %v485_v11 = vand.u32 2147483647, %v5245_v0  ;;  %v487_v38 = vand.u32 2147483648, %v5245_v0 }
  0xf3   :  { %v4343_v3 = vpop.eup %4342  ;;  %v254_v4 = vmul.f32 1.442695, %v5248_v63  ;;  %4226 = vmatmul.msk.f32.gmra.mxu0 %vm116_vm0, %v5053_v19  ;;  %v460_v5 = vmul.f32 %v459_v2, %v270_v16  ;;  %v463_v10 = vsub.f32 1.0, %v462_v1  ;;  %v271_v19 = vmul.f32 2.0, %v5200_v60 }
  0xf4   :  { %v289_v6 = vadd.f32 2.0, %v4343_v3  ;;  %vm481_vm12 = vweird.f32 %v5245_v0  ;;  %v488_v54 = vor.u32 1.1754944e-38, %v487_v38  ;;  %vm486_vm14 = vcmp.eq.f32.partialorder %v485_v11, 8.507059e+37 }
  0xf5   :  { %4346 = vpow2.f32 %v254_v4  ;;  %v574_v40 = vsub.f32 %v5184_v42, %v460_v5  ;;  %v464_v18 = vmul.f32 %v4341_v59, %v463_v10 }
  0xf6   :  { %v305_v14 = vmul.f32 %v4343_v3, %v289_v6 }
  0xf7   :  { %4174 = vmatmul.msk.f32.gmra.mxu1 %vm116_vm0, %v574_v40  ;;  %v465_v20 = vadd.f32 %v4341_v59, %v464_v18  ;;  %v5309_v40 = vld [vmem:[%s9062_s12] ss:$0 sm:$0xff] }
  0xf8   :  { %v4345_v25 = vpop.eup %4344  ;;  %v5261_v26 = vadd.f32 2.0, %v305_v14  ;;  %v221_v34 = vpop.f32.mrf.mxu0 }
  0xf9   :  { %v5264_v30 = vadd.f32 %v5084_v24, %v221_v34  ;;  %v469_v42 = vsel %vm468_vm9, %v4341_v59, %v465_v20  ;;  %v477_v31 = vmul.f32 %v4345_v25, %v5245_v0  ;;  %vm482_vm11 = vweird.f32 %v4345_v25 }
  0xfa   :  { %4348 = vrcp.f32 %v5261_v26  ;;  %v474_v8 = vsel %vm471_vm10, %v473_v29, %v469_v42  ;;  %vm483_vm13 = vmor %vm481_vm12, %vm482_vm11  ;;  %v500_v55 = vand.u32 2147483647, %v5261_v26  ;;  %v502_v56 = vand.u32 2147483648, %v5261_v26  ;;  %v2429_v42 = vld [vmem:[%s9063_s13 + $0x18] sm:$0xff] }
  0xfb   :  { %v4347_v32 = vpop.eup %4346  ;;  %v256_v35 = vmul.f32 1.442695, %v5264_v30  ;;  %4227 = vmatmul.msk.f32.gmra.mxu0 %vm116_vm0, %v5063_v21  ;;  %v475_v27 = vmul.f32 %v474_v8, %v271_v19  ;;  %v478_v36 = vsub.f32 1.0, %v477_v31  ;;  %v272_v21 = vmul.f32 2.0, %v5216_v28  ;;  %2494 = vmatpush.msrb.mxu1 %v2429_v42 }
  0xfc   :  { %v290_v37 = vadd.f32 2.0, %v4347_v32  ;;  %vm496_vm1 = vweird.f32 %v5261_v26  ;;  %v503_v62 = vor.u32 1.1754944e-38, %v502_v56  ;;  %vm501_vm3 = vcmp.eq.f32.partialorder %v500_v55, 8.507059e+37 }
  0xfd   :  { %4350 = vpow2.f32 %v256_v35  ;;  %v575_v39 = vsub.f32 %v5200_v60, %v475_v27  ;;  %v479_v41 = vmul.f32 %v4345_v25, %v478_v36 }
  0xfe   :  { %v306_v48 = vmul.f32 %v4347_v32, %v290_v37  ;;  %v2428_v37 = vld [vmem:[%s9063_s13 + $0x10] sm:$0xff] }
  0xff   :  { %4175 = vmatmul.msk.f32.gmra.mxu1 %vm116_vm0, %v575_v39  ;;  %v480_v15 = vadd.f32 %v4345_v25, %v479_v41 }
 0x100   :  { %v4349_v43 = vpop.eup %4348  ;;  %v5277_v44 = vadd.f32 2.0, %v306_v48  ;;  %v224_v45 = vpop.f32.mrf.mxu0  ;;  %2495 = vmatpush.msrb.mxu1 %v2428_v37 }
 0x101   :  { %v5280_v47 = vadd.f32 %v5084_v24, %v224_v45  ;;  %v484_v60 = vsel %vm483_vm13, %v4345_v25, %v480_v15  ;;  %v492_v49 = vmul.f32 %v4349_v43, %v5261_v26  ;;  %vm497_vm15 = vweird.f32 %v4349_v43  ;;  %v2427_v15 = vld [vmem:[%s9063_s13 + $0x8] sm:$0xff] }
 0x102   :  { %4352 = vrcp.f32 %v5277_v44  ;;  %v489_v50 = vsel %vm486_vm14, %v488_v54, %v484_v60  ;;  %vm498_vm2 = vmor %vm496_vm1, %vm497_vm15  ;;  %v515_v7 = vand.u32 2147483647, %v5277_v44  ;;  %vm511_vm5 = vweird.f32 %v5277_v44  ;;  %2496 = vmatpush.msrb.mxu1 %v2427_v15 }
 0x103   :  { %v4351_v9 = vpop.eup %4350  ;;  %v258_v51 = vmul.f32 1.442695, %v5280_v47  ;;  %4228 = vmatmul.msk.f32.gmra.mxu0 %vm116_vm0, %v5070_v22  ;;  %v490_v52 = vmul.f32 %v489_v50, %v272_v21  ;;  %v493_v53 = vsub.f32 1.0, %v492_v49  ;;  %v273_v22 = vmul.f32 2.0, %v5232_v46 }
 0x104   :  { %v291_v33 = vadd.f32 2.0, %v4351_v9  ;;  %v274_v25 = vmul.f32 2.0, %v5248_v63  ;;  %vm516_vm7 = vcmp.eq.f32.partialorder %v515_v7, 8.507059e+37 }
 0x105   :  { %4354 = vpow2.f32 %v258_v51  ;;  %v576_v12 = vsub.f32 %v5216_v28, %v490_v52  ;;  %v494_v57 = vmul.f32 %v4349_v43, %v493_v53 }
 0x106   :  { %v307_v58 = vmul.f32 %v4351_v9, %v291_v33 }
 0x107   :  { %4176 = vmatmul.msk.f32.gmra.mxu1 %vm116_vm0, %v576_v12  ;;  %v495_v59 = vadd.f32 %v4349_v43, %v494_v57 }
 0x108   :  { %v4353_v16 = vpop.eup %4352  ;;  %v5293_v0 = vadd.f32 2.0, %v307_v58  ;;  %v227_v61 = vpop.f32.mrf.mxu0 }
 0x109   :  { %v5296_v17 = vadd.f32 %v5084_v24, %v227_v61  ;;  %v499_v28 = vsel %vm498_vm2, %v4349_v43, %v495_v59  ;;  %v507_v1 = vmul.f32 %v4353_v16, %v5277_v44  ;;  %v517_v24 = vand.u32 2147483648, %v5277_v44  ;;  %v2426_v44 = vld [vmem:[%s9063_s13] sm:$0xff] }
 0x10a   :  { %4356 = vrcp.f32 %v5293_v0  ;;  %v504_v2 = vsel %vm501_vm3, %v503_v62, %v499_v28  ;;  %vm512_vm4 = vweird.f32 %v4353_v16  ;;  %v530_v38 = vand.u32 2147483647, %v5293_v0  ;;  %2497 = vmatpush.msrb.mxu1 %v2426_v44 }
 0x10b   :  { %v4355_v3 = vpop.eup %4354  ;;  %v260_v4 = vmul.f32 1.442695, %v5296_v17  ;;  %4229 = vmatmul.msk.f32.gmra.mxu0 %vm116_vm0, %v5077_v23  ;;  %v505_v5 = vmul.f32 %v504_v2, %v273_v22  ;;  %v508_v10 = vsub.f32 1.0, %v507_v1  ;;  %vm513_vm6 = vmor %vm511_vm5, %vm512_vm4  ;;  %v532_v39 = vand.u32 2147483648, %v5293_v0 }
 0x10c   :  { %v292_v6 = vadd.f32 2.0, %v4355_v3  ;;  %vm526_vm9 = vweird.f32 %v5293_v0  ;;  %vm531_vm11 = vcmp.eq.f32.partialorder %v530_v38, 8.507059e+37 }
 0x10d   :  { %4358 = vpow2.f32 %v260_v4  ;;  %v577_v13 = vsub.f32 %v5232_v46, %v505_v5  ;;  %v509_v18 = vmul.f32 %v4353_v16, %v508_v10  ;;  %v518_v46 = vor.u32 1.1754944e-38, %v517_v24 }
 0x10e   :  { %v308_v14 = vmul.f32 %v4355_v3, %v292_v6  ;;  %v533_v49 = vor.u32 1.1754944e-38, %v532_v39  ;;  %v276_v4 = vmul.f32 2.0, %v5280_v47 }
 0x10f   :  { %4177 = vmatmul.msk.f32.gmra.mxu1 %vm116_vm0, %v577_v13  ;;  %v510_v23 = vadd.f32 %v4353_v16, %v509_v18 }
 0x110   :  { %v4357_v20 = vpop.eup %4356  ;;  %v5314_v19 = vadd.f32 2.0, %v308_v14  ;;  %v2026_v26 = vpop.f32.mrf.mxu0 }
 0x111   :  { %v5317_v34 = vadd.f32 %v5309_v40, %v2026_v26  ;;  %v514_v29 = vsel %vm513_vm6, %v4353_v16, %v510_v23  ;;  %v522_v31 = vmul.f32 %v4357_v20, %v5293_v0  ;;  %vm527_vm8 = vweird.f32 %v4357_v20 }
 0x112   :  { %4360 = vrcp.f32 %v5314_v19  ;;  %v519_v8 = vsel %vm516_vm7, %v518_v46, %v514_v29  ;;  %vm528_vm10 = vmor %vm526_vm9, %vm527_vm8  ;;  %v547_v57 = vand.u32 2147483648, %v5314_v19  ;;  %v545_v22 = vand.u32 2147483647, %v5314_v19 }
 0x113   :  { %v4359_v32 = vpop.eup %4358  ;;  %v2074_v35 = vmul.f32 1.442695, %v5317_v34  ;;  %v520_v27 = vmul.f32 %v519_v8, %v274_v25  ;;  %v523_v36 = vsub.f32 1.0, %v522_v31  ;;  %vm541_vm13 = vweird.f32 %v5314_v19 }
 0x114   :  { %v293_v11 = vadd.f32 2.0, %v4359_v32  ;;  %v548_v3 = vor.u32 1.1754944e-38, %v547_v57  ;;  %vm546_vm15 = vcmp.eq.f32.partialorder %v545_v22, 8.507059e+37  ;;  %v277_v46 = vmul.f32 2.0, %v5296_v17 }
 0x115   :  { %4362 = vpow2.f32 %v2074_v35  ;;  %v578_v41 = vsub.f32 %v5248_v63, %v520_v27  ;;  %v524_v48 = vmul.f32 %v4357_v20, %v523_v36  ;;  %v275_v63 = vmul.f32 2.0, %v5264_v30 }
 0x116   :  { %v309_v43 = vmul.f32 %v4359_v32, %v293_v11 }
 0x117   :  { %4178 = vmatmul.msk.f32.gmra.mxu1 %vm116_vm0, %v578_v41  ;;  %v525_v21 = vadd.f32 %v4357_v20, %v524_v48 }
 0x118   :  { %v4361_v45 = vpop.eup %4360  ;;  %v5340_v54 = vadd.f32 2.0, %v309_v43  ;;  %v2029_v60 = vpop.f32.mrf.mxu0 }
 0x119   :  { %v5343_v50 = vadd.f32 %v5309_v40, %v2029_v60  ;;  %v529_v9 = vsel %vm528_vm10, %v4357_v20, %v525_v21  ;;  %v537_v51 = vmul.f32 %v4361_v45, %v5314_v19  ;;  %vm542_vm12 = vweird.f32 %v4361_v45 }
 0x11a   :  { %4364 = vrcp.f32 %v5340_v54  ;;  %v534_v52 = vsel %vm531_vm11, %v533_v49, %v529_v9  ;;  %vm543_vm14 = vmor %vm541_vm13, %vm542_vm12  ;;  %v562_v18 = vand.u32 2147483648, %v5340_v54  ;;  %v560_v23 = vand.u32 2147483647, %v5340_v54 }
 0x11b   :  { %v4363_v53 = vpop.eup %4362  ;;  %v2076_v33 = vmul.f32 1.442695, %v5343_v50  ;;  %v535_v55 = vmul.f32 %v534_v52, %v275_v63  ;;  %v538_v56 = vsub.f32 1.0, %v537_v51  ;;  %vm556_vm2 = vweird.f32 %v5340_v54 }
 0x11c   :  { %v2122_v12 = vadd.f32 2.0, %v4363_v53  ;;  %v563_v31 = vor.u32 1.1754944e-38, %v562_v18  ;;  %vm561_vm4 = vcmp.eq.f32.partialorder %v560_v23, 8.507059e+37 }
 0x11d   :  { %4366 = vpow2.f32 %v2076_v33  ;;  %v579_v58 = vsub.f32 %v5264_v30, %v535_v55  ;;  %v539_v59 = vmul.f32 %v4361_v45, %v538_v56 }
 0x11e   :  { %v2138_v16 = vmul.f32 %v4363_v53, %v2122_v12 }
 0x11f   :  { %4179 = vmatmul.msk.f32.gmra.mxu1 %vm116_vm0, %v579_v58  ;;  %v540_v0 = vadd.f32 %v4361_v45, %v539_v59 }
 0x120   :  { %v4365_v61 = vpop.eup %4364  ;;  %v2154_v62 = vadd.f32 2.0, %v2138_v16  ;;  %v2032_v28 = vpop.f32.mrf.mxu0 }
 0x121   :  { %v5354_v1 = vadd.f32 %v5309_v40, %v2032_v28  ;;  %v544_v2 = vsel %vm543_vm14, %v4361_v45, %v540_v0  ;;  %v552_v30 = vmul.f32 %v4365_v61, %v5340_v54  ;;  %vm557_vm1 = vweird.f32 %v4365_v61 }
 0x122   :  { %4368 = vrcp.f32 %v2154_v62  ;;  %v549_v6 = vsel %vm546_vm15, %v548_v3, %v544_v2  ;;  %vm558_vm3 = vmor %vm556_vm2, %vm557_vm1  ;;  %v2179_v38 = vand.u32 2147483647, %v2154_v62  ;;  %v2181_v39 = vand.u32 2147483648, %v2154_v62 }
 0x123   :  { %v4367_v5 = vpop.eup %4366  ;;  %v2078_v10 = vmul.f32 1.442695, %v5354_v1  ;;  %v553_v7 = vsub.f32 1.0, %v552_v30  ;;  %v550_v13 = vmul.f32 %v549_v6, %v276_v4  ;;  %vm2175_vm6 = vweird.f32 %v2154_v62 }
 0x124   :  { %v2123_v24 = vadd.f32 2.0, %v4367_v5  ;;  %v2106_v45 = vmul.f32 2.0, %v5317_v34  ;;  %v2182_v63 = vor.u32 1.1754944e-38, %v2181_v39  ;;  %vm2180_vm8 = vcmp.eq.f32.partialorder %v2179_v38, 8.507059e+37 }
 0x125   :  { %4370 = vpow2.f32 %v2078_v10  ;;  %v554_v14 = vmul.f32 %v4365_v61, %v553_v7  ;;  %v580_v25 = vsub.f32 %v5280_v47, %v550_v13  ;;  %v2107_v30 = vmul.f32 2.0, %v5343_v50 }
 0x126   :  { %v2139_v20 = vmul.f32 %v4367_v5, %v2123_v24 }
 0x127   :  { %v555_v19 = vadd.f32 %v4365_v61, %v554_v14  ;;  %4180 = vmatmul.msk.f32.gmra.mxu1 %vm116_vm0, %v580_v25  ;;  %v1056_v25 = vld [vmem:[%s9057_s7 + $0x8] sm:$0xff] }
 0x128   :  { %v4369_v26 = vpop.eup %4368  ;;  %v5364_v29 = vadd.f32 2.0, %v2139_v20  ;;  %v2035_v42 = vpop.f32.mrf.mxu0 }
 0x129   :  { %v2171_v8 = vmul.f32 %v4369_v26, %v2154_v62  ;;  %v5368_v32 = vadd.f32 %v5309_v40, %v2035_v42  ;;  %v559_v35 = vsel %vm558_vm3, %v4365_v61, %v555_v19  ;;  %vm2176_vm5 = vweird.f32 %v4369_v26  ;;  %v1058_v61 = vld [vmem:[%s9057_s7 + $0x18] sm:$0xff] }
 0x12a   :  { %4372 = vrcp.f32 %v5364_v29  ;;  %v564_v47 = vsel %vm561_vm4, %v563_v31, %v559_v35  ;;  %vm2177_vm7 = vmor %vm2175_vm6, %vm2176_vm5  ;;  %v2194_v58 = vand.u32 2147483647, %v5364_v29  ;;  %v2196_v59 = vand.u32 2147483648, %v5364_v29  ;;  %1123 = vmatpush.msra.mxu2 %v1058_v61  ;;  %v1055_v35 = vld [vmem:[%s9057_s7] sm:$0xff] }
 0x12b   :  { %v4371_v27 = vpop.eup %4370  ;;  %v2172_v36 = vsub.f32 1.0, %v2171_v8  ;;  %v2080_v37 = vmul.f32 1.442695, %v5368_v32  ;;  %v565_v11 = vmul.f32 %v564_v47, %v277_v46  ;;  %vm2190_vm10 = vweird.f32 %v5364_v29 }
 0x12c   :  { %v2124_v41 = vadd.f32 2.0, %v4371_v27  ;;  %vm2195_vm12 = vcmp.eq.f32.partialorder %v2194_v58, 8.507059e+37  ;;  %v2197_v10 = vor.u32 1.1754944e-38, %v2196_v59 }
 0x12d   :  { %v2173_v48 = vmul.f32 %v4369_v26, %v2172_v36  ;;  %4374 = vpow2.f32 %v2080_v37  ;;  %v581_v15 = vsub.f32 %v5296_v17, %v565_v11  ;;  %v5383_v17 = vld [vmem:[%s9056_s6] ss:$0 sm:$0xff]  ;;  %v2108_v36 = vmul.f32 2.0, %v5354_v1 }
 0x12e   :  { %v2140_v43 = vmul.f32 %v4371_v27, %v2124_v41 }
 0x12f   :  { %v2174_v21 = vadd.f32 %v4369_v26, %v2173_v48  ;;  %4181 = vmatmul.msk.f32.gmra.mxu1 %vm116_vm0, %v581_v15 }
 0x130   :  { %v4373_v44 = vpop.eup %4372  ;;  %v5374_v54 = vadd.f32 2.0, %v2140_v43  ;;  %v2038_v60 = vpop.f32.mrf.mxu0 }
 0x131   :  { %v2178_v49 = vsel %vm2177_vm7, %v4369_v26, %v2174_v21  ;;  %v5378_v9 = vadd.f32 %v5309_v40, %v2038_v60  ;;  %v2186_v51 = vmul.f32 %v4373_v44, %v5364_v29  ;;  %vm2191_vm9 = vweird.f32 %v4373_v44 }
 0x132   :  { %v2183_v52 = vsel %vm2180_vm8, %v2182_v63, %v2178_v49  ;;  %4376 = vrcp.f32 %v5374_v54  ;;  %vm2192_vm11 = vmor %vm2190_vm10, %vm2191_vm9  ;;  %v2209_v46 = vand.u32 2147483647, %v5374_v54  ;;  %v2211_v29 = vand.u32 2147483648, %v5374_v54 }
 0x133   :  { %v4375_v53 = vpop.eup %4374  ;;  %v2184_v33 = vmul.f32 %v2183_v52, %v2106_v45  ;;  %v2082_v55 = vmul.f32 1.442695, %v5378_v9  ;;  %v2187_v56 = vsub.f32 1.0, %v2186_v51  ;;  %vm2205_vm14 = vweird.f32 %v5374_v54 }
 0x134   :  { %v2125_v12 = vadd.f32 2.0, %v4375_v53  ;;  %v655_v57 = vpop.f32.mrf.mxu1  ;;  %vm2210_vm1 = vcmp.eq.f32.partialorder %v2209_v46, 8.507059e+37  ;;  %v2212_v48 = vor.u32 1.1754944e-38, %v2211_v29 }
 0x135   :  { %v2410_v16 = vsub.f32 %v5317_v34, %v2184_v33  ;;  %4378 = vpow2.f32 %v2082_v55  ;;  %v5392_v22 = vadd.f32 %v5383_v17, %v655_v57  ;;  %v2188_v0 = vmul.f32 %v4373_v44, %v2187_v56  ;;  %v1057_v34 = vld [vmem:[%s9057_s7 + $0x10] sm:$0xff] }
 0x136   :  { %v2141_v62 = vmul.f32 %v4375_v53, %v2125_v12  ;;  %1124 = vmatpush.msra.mxu2 %v1057_v34  ;;  %v2109_v57 = vmul.f32 2.0, %v5368_v32 }
 0x137   :  { %v703_v28 = vmul.f32 1.442695, %v5392_v22  ;;  %v2189_v2 = vadd.f32 %v4373_v44, %v2188_v0  ;;  %4230 = vmatmul.msk.f32.vlgmr.msrb.gmra.mxu1 %vm116_vm0, %v2410_v16  ;;  %v2110_v0 = vmul.f32 2.0, %v5378_v9  ;;  %v5450_v61 = vmul.f32 2.0, %v5392_v22 }
 0x138   :  { %v4377_v3 = vpop.eup %4376  ;;  %v5403_v4 = vadd.f32 2.0, %v2141_v62  ;;  %v2041_v5 = vpop.f32.mrf.mxu0  ;;  %1125 = vmatpush.msra.mxu2 %v1056_v25 }
 0x139   :  { %4380 = vpow2.f32 %v703_v28  ;;  %v5408_v6 = vadd.f32 %v5309_v40, %v2041_v5  ;;  %v2193_v7 = vsel %vm2192_vm11, %v4373_v44, %v2189_v2  ;;  %v2201_v24 = vmul.f32 %v4377_v3, %v5374_v54 }
 0x13a   :  { %4382 = vrcp.f32 %v5403_v4  ;;  %v2198_v13 = vsel %vm2195_vm12, %v2197_v10, %v2193_v7  ;;  %vm2206_vm13 = vweird.f32 %v4377_v3  ;;  %1126 = vmatpush.msra.mxu2 %v1055_v35  ;;  %v2224_v33 = vand.u32 2147483647, %v5403_v4 }
 0x13b   :  { %v4379_v18 = vpop.eup %4378  ;;  %v2084_v14 = vmul.f32 1.442695, %v5408_v6  ;;  %v2199_v23 = vmul.f32 %v2198_v13, %v2107_v30  ;;  %v2202_v20 = vsub.f32 1.0, %v2201_v24  ;;  %vm2207_vm15 = vmor %vm2205_vm14, %vm2206_vm13  ;;  %v2226_v55 = vand.u32 2147483648, %v5403_v4 }
 0x13c   :  { %v2126_v19 = vadd.f32 2.0, %v4379_v18  ;;  %v658_v26 = vpop.f32.mrf.mxu1  ;;  %vm2220_vm3 = vweird.f32 %v5403_v4  ;;  %vm2225_vm5 = vcmp.eq.f32.partialorder %v2224_v33, 8.507059e+37 }
 0x13d   :  { %4384 = vpow2.f32 %v2084_v14  ;;  %v5419_v42 = vadd.f32 %v5383_v17, %v658_v26  ;;  %v2411_v31 = vsub.f32 %v5343_v50, %v2199_v23  ;;  %v2203_v8 = vmul.f32 %v4377_v3, %v2202_v20 }
 0x13e   :  { %v2142_v47 = vmul.f32 %v4379_v18, %v2126_v19  ;;  %v5467_v26 = vmul.f32 2.0, %v5408_v6 }
 0x13f   :  { %v4381_v27 = vpop.eup %4380  ;;  %v705_v37 = vmul.f32 1.442695, %v5419_v42  ;;  %v2204_v11 = vadd.f32 %v4377_v3, %v2203_v8  ;;  %4231 = vmatmul.msk.f32.gmra.mxu1 %vm116_vm0, %v2411_v31  ;;  %v5470_v46 = vmul.f32 2.0, %v5419_v42 }
 0x140   :  { %v4383_v38 = vpop.eup %4382  ;;  %v5428_v39 = vadd.f32 2.0, %v2142_v47  ;;  %v751_v41 = vadd.f32 2.0, %v4381_v27  ;;  %v2044_v50 = vpop.f32.mrf.mxu0 }
 0x141   :  { %4386 = vpow2.f32 %v705_v37  ;;  %v5433_v15 = vadd.f32 %v5309_v40, %v2044_v50  ;;  %v2208_v43 = vsel %vm2207_vm15, %v4377_v3, %v2204_v11  ;;  %v2216_v21 = vmul.f32 %v4383_v38, %v5403_v4 }
 0x142   :  { %4388 = vrcp.f32 %v5428_v39  ;;  %v767_v44 = vmul.f32 %v4381_v27, %v751_v41  ;;  %v2213_v45 = vsel %vm2210_vm1, %v2212_v48, %v2208_v43  ;;  %vm2221_vm2 = vweird.f32 %v4383_v38 }
 0x143   :  { %v4385_v63 = vpop.eup %4384  ;;  %v2086_v54 = vmul.f32 1.442695, %v5433_v15  ;;  %v2214_v60 = vmul.f32 %v2213_v45, %v2108_v36  ;;  %v2217_v49 = vsub.f32 1.0, %v2216_v21  ;;  %vm2222_vm4 = vmor %vm2220_vm3, %vm2221_vm2  ;;  %v2227_v3 = vor.u32 1.1754944e-38, %v2226_v55 }
 0x144   :  { %v5438_v51 = vadd.f32 2.0, %v767_v44  ;;  %v2127_v52 = vadd.f32 2.0, %v4385_v63  ;;  %v661_v53 = vpop.f32.mrf.mxu1  ;;  %v2239_v7 = vand.u32 2147483647, %v5428_v39  ;;  %v2241_v25 = vand.u32 2147483648, %v5428_v39 }
 0x145   :  { %4390 = vpow2.f32 %v2086_v54  ;;  %v2412_v56 = vsub.f32 %v5354_v1, %v2214_v60  ;;  %v2218_v12 = vmul.f32 %v4383_v38, %v2217_v49  ;;  %v5446_v59 = vadd.f32 %v5383_v17, %v661_v53 }
 0x146   :  { %4392 = vrcp.f32 %v5438_v51  ;;  %v2143_v58 = vmul.f32 %v4385_v63, %v2127_v52  ;;  %vm2235_vm7 = vweird.f32 %v5428_v39  ;;  %vm5479_vm8 = vcmp.eq.f32.partialorder %v2239_v7, 8.507059e+37 }
 0x147   :  { %v4387_v16 = vpop.eup %4386  ;;  %v2219_v62 = vadd.f32 %v4383_v38, %v2218_v12  ;;  %4232 = vmatmul.msk.f32.gmra.mxu1 %vm116_vm0, %v2412_v56  ;;  %v707_v24 = vmul.f32 1.442695, %v5446_v59  ;;  %v2242_v41 = vor.u32 1.1754944e-38, %v2241_v25  ;;  %v810_v43 = vand.u32 2147483648, %v5438_v51 }
 0x148   :  { %v4389_v1 = vpop.eup %4388  ;;  %v5453_v28 = vadd.f32 2.0, %v2143_v58  ;;  %v752_v2 = vadd.f32 2.0, %v4387_v16  ;;  %v2047_v34 = vpop.f32.mrf.mxu0  ;;  %v808_v60 = vand.u32 2147483647, %v5438_v51  ;;  %v5499_v49 = vmul.f32 2.0, %v5433_v15 }
 0x149   :  { %v5458_v30 = vadd.f32 %v5309_v40, %v2047_v34  ;;  %v2223_v5 = vsel %vm2222_vm4, %v4383_v38, %v2219_v62  ;;  %v2231_v10 = vmul.f32 %v4389_v1, %v5428_v39  ;;  %vm2236_vm6 = vweird.f32 %v4389_v1 }
 0x14a   :  { %4394 = vrcp.f32 %v5453_v28  ;;  %v768_v4 = vmul.f32 %v4387_v16, %v752_v2  ;;  %v2228_v13 = vsel %vm2225_vm5, %v2227_v3, %v2223_v5  ;;  %vm2237_vm9 = vmor %vm2235_vm7, %vm2236_vm6  ;;  %vm804_vm11 = vweird.f32 %v5438_v51 }
 0x14b   :  { %v4391_v18 = vpop.eup %4390  ;;  %v2088_v14 = vmul.f32 1.442695, %v5458_v30  ;;  %v2229_v23 = vmul.f32 %v2228_v13, %v2109_v57  ;;  %v2232_v20 = vsub.f32 1.0, %v2231_v10  ;;  %4396 = vpow2.f32 %v707_v24 }
 0x14c   :  { %v4393_v19 = vpop.eup %4392  ;;  %v5472_v29 = vadd.f32 2.0, %v768_v4  ;;  %v2128_v31 = vadd.f32 2.0, %v4391_v18  ;;  %v664_v8 = vpop.f32.mrf.mxu1  ;;  %v811_v58 = vor.u32 1.1754944e-38, %v810_v43  ;;  %v5514_v34 = vmul.f32 2.0, %v5446_v59 }
 0x14d   :  { %v5475_v35 = vadd.f32 %v5383_v17, %v664_v8  ;;  %v2413_v47 = vsub.f32 %v5368_v32, %v2229_v23  ;;  %v2233_v27 = vmul.f32 %v4389_v1, %v2232_v20  ;;  %v800_v37 = vmul.f32 %v4393_v19, %v5438_v51 }
 0x14e   :  { %4398 = vpow2.f32 %v2088_v14  ;;  %v2144_v32 = vmul.f32 %v4391_v18, %v2128_v31  ;;  %vm805_vm10 = vweird.f32 %v4393_v19  ;;  %vm809_vm13 = vcmp.eq.f32.partialorder %v808_v60, 8.507059e+37 }
 0x14f   :  { %v709_v11 = vmul.f32 1.442695, %v5475_v35  ;;  %v2234_v38 = vadd.f32 %v4389_v1, %v2233_v27  ;;  %4400 = vrcp.f32 %v5472_v29  ;;  %4233 = vmatmul.msk.f32.gmra.mxu1 %vm116_vm0, %v2413_v47  ;;  %v801_v39 = vsub.f32 1.0, %v800_v37  ;;  %vm806_vm12 = vmor %vm804_vm11, %vm805_vm10 }
 0x150   :  { %v5485_v50 = vpop.eup %4394  ;;  %v2050_v48 = vpop.f32.mrf.mxu0  ;;  %v5502_v56 = vadd.f32 2.0, %v2144_v32  ;;  %vm2250_vm15 = vweird.f32 %v5453_v28  ;;  %v2254_v13 = vand.u32 2147483647, %v5453_v28  ;;  %v2256_v20 = vand.u32 2147483648, %v5453_v28 }
 0x151   :  { %4402 = vpow2.f32 %v709_v11  ;;  %v5491_v21 = vadd.f32 %v5309_v40, %v2050_v48  ;;  %v2238_v44 = vsel %vm2237_vm9, %v4389_v1, %v2234_v38  ;;  %v2246_v45 = vmul.f32 %v5485_v50, %v5453_v28  ;;  %v4397_v55 = vpop.eup %4396 }
 0x152   :  { %v2243_v63 = vsel %vm5479_vm8, %v2242_v41, %v2238_v44  ;;  %v802_v54 = vmul.f32 %v4393_v19, %v801_v39  ;;  %vm2251_vm14 = vweird.f32 %v5485_v50  ;;  %v753_v5 = vadd.f32 2.0, %v4397_v55 }
 0x153   :  { %v2090_v52 = vmul.f32 1.442695, %v5491_v21  ;;  %v2244_v53 = vmul.f32 %v2243_v63, %v2110_v0  ;;  %v2247_v33 = vsub.f32 1.0, %v2246_v45  ;;  %vm5529_vm1 = vmor %vm2250_vm15, %vm2251_vm14  ;;  %v5541_v47 = vmul.f32 2.0, %v5458_v30 }
 0x154   :  { %v667_v12 = vpop.f32.mrf.mxu1  ;;  %v803_v57 = vadd.f32 %v4393_v19, %v802_v54  ;;  %v4399_v16 = vpop.eup %4398  ;;  %v5544_v27 = vmul.f32 2.0, %v5475_v35  ;;  %v2257_v28 = vor.u32 1.1754944e-38, %v2256_v20  ;;  %v769_v37 = vmul.f32 %v4397_v55, %v753_v5 }
 0x155   :  { %4404 = vpow2.f32 %v2090_v52  ;;  %v5506_v62 = vadd.f32 %v5383_v17, %v667_v12  ;;  %v2414_v1 = vsub.f32 %v5378_v9, %v2244_v53  ;;  %v2248_v0 = vmul.f32 %v5485_v50, %v2247_v33  ;;  %v5511_v2 = vpop.eup %4400 }
 0x156   :  { %v807_v3 = vsel %vm806_vm12, %v4393_v19, %v803_v57  ;;  %4406 = vrcp.f32 %v5502_v56  ;;  %v2129_v18 = vadd.f32 2.0, %v4399_v16  ;;  %v815_v31 = vmul.f32 %v5511_v2, %v5472_v29 }
 0x157   :  { %v4403_v51 = vpop.eup %4402  ;;  %v711_v10 = vmul.f32 1.442695, %v5506_v62  ;;  %v812_v7 = vsel %vm809_vm13, %v811_v58, %v807_v3  ;;  %v2249_v9 = vadd.f32 %v5485_v50, %v2248_v0  ;;  %4234 = vmatmul.msk.f32.gmra.mxu1 %vm116_vm0, %v2414_v1  ;;  %vm2255_vm2 = vcmp.eq.f32.partialorder %v2254_v13, 8.507059e+37 }
 0x158   :  { %v2053_v4 = vpop.f32.mrf.mxu0  ;;  %v813_v24 = vmul.f32 %v812_v7, %v5450_v61  ;;  %v754_v25 = vadd.f32 2.0, %v4403_v51  ;;  %v816_v38 = vsub.f32 1.0, %v815_v31  ;;  %v2145_v41 = vmul.f32 %v4399_v16, %v2129_v18 }
 0x159   :  { %4408 = vpow2.f32 %v711_v10  ;;  %v5525_v14 = vadd.f32 %v5309_v40, %v2053_v4  ;;  %v2253_v19 = vsel %vm5529_vm1, %v5485_v50, %v2249_v9  ;;  %vm820_vm3 = vweird.f32 %v5511_v2 }
 0x15a   :  { %v1039_v61 = vsub.f32 %v5392_v22, %v813_v24  ;;  %v2258_v32 = vsel %vm2255_vm2, %v2257_v28, %v2253_v19  ;;  %v770_v39 = vmul.f32 %v4403_v51, %v754_v25  ;;  %v817_v45 = vmul.f32 %v5511_v2, %v816_v38 }
 0x15b   :  { %v4405_v8 = vpop.eup %4404  ;;  %v2092_v36 = vmul.f32 1.442695, %v5525_v14  ;;  %v2259_v44 = vmul.f32 %v2258_v32, %v5467_v26  ;;  %v823_v60 = vand.u32 2147483647, %v5472_v29  ;;  %v825_v52 = vand.u32 2147483648, %v5472_v29 }
 0x15c   :  { %v2130_v11 = vadd.f32 2.0, %v4405_v8  ;;  %4182 = vmatmul.msk.f32.vlgmr.msra.gmra.mxu2 %vm116_vm0, %v1039_v61  ;;  %v670_v22 = vpop.f32.mrf.mxu1  ;;  %v5551_v48 = vpop.eup %4406  ;;  %v5559_v53 = vadd.f32 2.0, %v769_v37  ;;  %v818_v26 = vadd.f32 %v5511_v2, %v817_v45  ;;  %v5565_v57 = vadd.f32 2.0, %v2145_v41 }
 0x15d   :  { %4410 = vpow2.f32 %v2092_v36  ;;  %v5549_v50 = vadd.f32 %v5383_v17, %v670_v22  ;;  %v2415_v55 = vsub.f32 %v5408_v6, %v2259_v44  ;;  %vm819_vm4 = vweird.f32 %v5472_v29 }
 0x15e   :  { %v2146_v43 = vmul.f32 %v4405_v8, %v2130_v11  ;;  %vm821_vm5 = vmor %vm819_vm4, %vm820_vm3  ;;  %v826_v6 = vor.u32 1.1754944e-38, %v825_v52  ;;  %v2261_v1 = vmul.f32 %v5551_v48, %v5502_v56  ;;  %v5577_v3 = vadd.f32 2.0, %v770_v39 }
 0x15f   :  { %v4409_v63 = vpop.eup %4408  ;;  %v713_v54 = vmul.f32 1.442695, %v5549_v50  ;;  %4235 = vmatmul.msk.f32.gmra.mxu1 %vm116_vm0, %v2415_v55  ;;  %v822_v5 = vsel %vm821_vm5, %v5511_v2, %v818_v26  ;;  %vm824_vm6 = vcmp.eq.f32.partialorder %v823_v60, 8.507059e+37  ;;  %v5583_v29 = vmul.f32 2.0, %v5491_v21 }
 0x160   :  { %v5561_v33 = vadd.f32 2.0, %v2146_v43  ;;  %v2056_v12 = vpop.f32.mrf.mxu0  ;;  %v755_v16 = vadd.f32 2.0, %v4409_v63  ;;  %v827_v7 = vsel %vm824_vm6, %v826_v6, %v822_v5  ;;  %v5586_v4 = vmul.f32 2.0, %v5506_v62 }
 0x161   :  { %4412 = vpow2.f32 %v713_v54  ;;  %v5568_v58 = vadd.f32 %v5309_v40, %v2056_v12  ;;  %v828_v24 = vmul.f32 %v827_v7, %v5470_v46  ;;  %v2262_v23 = vsub.f32 1.0, %v2261_v1 }
 0x162   :  { %4414 = vrcp.f32 %v5561_v33  ;;  %v771_v2 = vmul.f32 %v4409_v63, %v755_v16  ;;  %v5595_v25 = vmul.f32 2.0, %v5525_v14  ;;  %v5598_v61 = vmul.f32 2.0, %v5549_v50 }
 0x163   :  { %v4411_v0 = vpop.eup %4410  ;;  %v2094_v51 = vmul.f32 1.442695, %v5568_v58  ;;  %4416 = vrcp.f32 %v5559_v53  ;;  %v1040_v19 = vsub.f32 %v5419_v42, %v828_v24  ;;  %vm2295_vm7 = vweird.f32 %v5561_v33 }
 0x164   :  { %v2131_v10 = vadd.f32 2.0, %v4411_v0  ;;  %v673_v9 = vpop.f32.mrf.mxu1  ;;  %v2299_v31 = vand.u32 2147483647, %v5561_v33  ;;  %v2263_v28 = vmul.f32 %v5551_v48, %v2262_v23  ;;  %vm2266_vm8 = vweird.f32 %v5551_v48 }
 0x165   :  { %4418 = vpow2.f32 %v2094_v51  ;;  %v5590_v13 = vadd.f32 %v5383_v17, %v673_v9  ;;  %4183 = vmatmul.msk.f32.gmra.mxu2 %vm116_vm0, %v1040_v19  ;;  %v2269_v42 = vand.u32 2147483647, %v5502_v56  ;;  %v2271_v11 = vand.u32 2147483648, %v5502_v56 }
 0x166   :  { %4420 = vrcp.f32 %v5565_v57  ;;  %v2147_v18 = vmul.f32 %v4411_v0, %v2131_v10  ;;  %v2301_v38 = vand.u32 2147483648, %v5561_v33  ;;  %v5618_v41 = vadd.f32 2.0, %v771_v2 }
 0x167   :  { %v4413_v20 = vpop.eup %4412  ;;  %4422 = vrcp.f32 %v5577_v3  ;;  %v715_v36 = vmul.f32 1.442695, %v5590_v13  ;;  %v5622_v32 = vmul.f32 2.0, %v5568_v58  ;;  %v2264_v63 = vadd.f32 %v5551_v48, %v2263_v28 }
 0x168   :  { %v5601_v46 = vpop.eup %4414  ;;  %v5605_v8 = vadd.f32 2.0, %v2147_v18  ;;  %v2059_v39 = vpop.f32.mrf.mxu0  ;;  %v756_v45 = vadd.f32 2.0, %v4413_v20  ;;  %vm2265_vm9 = vweird.f32 %v5502_v56  ;;  %v2272_v52 = vor.u32 1.1754944e-38, %v2271_v11 }
 0x169   :  { %v2291_v37 = vmul.f32 %v5601_v46, %v5561_v33  ;;  %v5615_v22 = vpop.eup %4416  ;;  %vm2296_vm10 = vweird.f32 %v5601_v46  ;;  %vm2267_vm11 = vmor %vm2265_vm9, %vm2266_vm8  ;;  %vm2270_vm12 = vcmp.eq.f32.partialorder %v2269_v42, 8.507059e+37  ;;  %v5636_v16 = vadd.f32 %v5309_v40, %v2059_v39 }
 0x16a   :  { %4424 = vrcp.f32 %v5605_v8  ;;  %v2268_v26 = vsel %vm2267_vm11, %v5551_v48, %v2264_v63  ;;  %v2314_v56 = vand.u32 2147483647, %v5605_v8  ;;  %v830_v0 = vmul.f32 %v5615_v22, %v5559_v53  ;;  %vm5655_vm14 = vmor %vm2295_vm7, %vm2296_vm10 }
 0x16b   :  { %v4419_v43 = vpop.eup %4418  ;;  %v2292_v44 = vsub.f32 1.0, %v2291_v37  ;;  %4426 = vpow2.f32 %v715_v36  ;;  %v2273_v1 = vsel %vm2270_vm12, %v2272_v52, %v2268_v26  ;;  %v2316_v5 = vand.u32 2147483648, %v5605_v8 }
 0x16c   :  { %v5626_v54 = vpop.eup %4420  ;;  %v2132_v60 = vadd.f32 2.0, %v4419_v43  ;;  %v772_v10 = vmul.f32 %v4413_v20, %v756_v45  ;;  %v2274_v7 = vmul.f32 %v2273_v1, %v5499_v49  ;;  %vm5644_vm13 = vcmp.eq.f32.partialorder %v2299_v31, 8.507059e+37 }
 0x16d   :  { %v5631_v55 = vpop.eup %4422  ;;  %v2293_v12 = vmul.f32 %v5601_v46, %v2292_v44  ;;  %v2096_v2 = vmul.f32 1.442695, %v5636_v16  ;;  %v831_v18 = vsub.f32 1.0, %v830_v0  ;;  %v2302_v20 = vor.u32 1.1754944e-38, %v2301_v38 }
 0x16e   :  { %v2148_v6 = vmul.f32 %v4419_v43, %v2132_v60  ;;  %4428 = vrcp.f32 %v5618_v41  ;;  %v2416_v19 = vsub.f32 %v5433_v15, %v2274_v7  ;;  %vm2310_vm15 = vweird.f32 %v5605_v8  ;;  %v676_v15 = vpop.f32.mrf.mxu1 }
 0x16f   :  { %v2294_v51 = vadd.f32 %v5601_v46, %v2293_v12  ;;  %v5668_v33 = vmul.f32 2.0, %v5590_v13  ;;  %vm5670_vm1 = vcmp.eq.f32.partialorder %v2314_v56, 8.507059e+37  ;;  %v2317_v42 = vor.u32 1.1754944e-38, %v2316_v5 }
 0x170   :  { %v4425_v9 = vpop.eup %4424  ;;  %v5648_v24 = vadd.f32 2.0, %v2148_v6  ;;  %v5674_v11 = vadd.f32 2.0, %v772_v10  ;;  %4236 = vmatmul.msk.f32.gmra.mxu1 %vm116_vm0, %v2416_v19  ;;  %vm834_vm2 = vweird.f32 %v5559_v53  ;;  %vm835_vm3 = vweird.f32 %v5615_v22  ;;  %v2062_v7 = vpop.f32.mrf.mxu0 }
 0x171   :  { %v2306_v49 = vmul.f32 %v4425_v9, %v5605_v8  ;;  %v4427_v31 = vpop.eup %4426  ;;  %v2298_v36 = vsel %vm5655_vm14, %v5601_v46, %v2294_v51  ;;  %v832_v46 = vmul.f32 %v5615_v22, %v831_v18  ;;  %vm2311_vm4 = vweird.f32 %v4425_v9  ;;  %vm5694_vm5 = vmor %vm834_vm2, %vm835_vm3 }
 0x172   :  { %4430 = vrcp.f32 %v5648_v24  ;;  %v2303_v38 = vsel %vm5644_vm13, %v2302_v20, %v2298_v36  ;;  %v757_v43 = vadd.f32 2.0, %v4427_v31  ;;  %v838_v45 = vand.u32 2147483647, %v5559_v53  ;;  %vm5704_vm6 = vmor %vm2310_vm15, %vm2311_vm4 }
 0x173   :  { %v2307_v28 = vsub.f32 1.0, %v2306_v49  ;;  %4432 = vpow2.f32 %v2096_v2  ;;  %v833_v44 = vadd.f32 %v5615_v22, %v832_v46  ;;  %v840_v63 = vand.u32 2147483648, %v5559_v53 }
 0x174   :  { %v5686_v60 = vadd.f32 %v5383_v17, %v676_v15  ;;  %v5688_v52 = vpop.eup %4428  ;;  %4434 = vrcp.f32 %v5674_v11  ;;  %v5692_v26 = vmul.f32 2.0, %v5636_v16  ;;  %v2276_v6 = vmul.f32 %v5626_v54, %v5565_v57 }
 0x175   :  { %v2308_v39 = vmul.f32 %v4425_v9, %v2307_v28  ;;  %v2329_v0 = vand.u32 2147483647, %v5648_v24  ;;  %v837_v51 = vsel %vm5694_vm5, %v5615_v22, %v833_v44  ;;  %v841_v5 = vor.u32 1.1754944e-38, %v840_v63 }
 0x176   :  { %v717_v10 = vmul.f32 1.442695, %v5686_v60  ;;  %v5714_v48 = vmul.f32 %v2303_v38, %v5583_v29  ;;  %vm2325_vm7 = vweird.f32 %v5648_v24  ;;  %vm839_vm8 = vcmp.eq.f32.partialorder %v838_v45, 8.507059e+37 }
 0x177   :  { %v2309_v12 = vadd.f32 %v4425_v9, %v2308_v39  ;;  %v2331_v23 = vand.u32 2147483648, %v5648_v24  ;;  %v773_v22 = vmul.f32 %v4427_v31, %v757_v43  ;;  %v842_v20 = vsel %vm839_vm8, %v841_v5, %v837_v51 }
 0x178   :  { %v5700_v1 = vpop.eup %4430  ;;  %v2277_v49 = vsub.f32 1.0, %v2276_v6  ;;  %v843_v29 = vmul.f32 %v842_v20, %v5514_v34  ;;  %4436 = vpow2.f32 %v717_v10  ;;  %vm2281_vm9 = vweird.f32 %v5626_v54  ;;  %v679_v34 = vpop.f32.mrf.mxu1 }
 0x179   :  { %v2313_v8 = vsel %vm5704_vm6, %v4425_v9, %v2309_v12  ;;  %v2321_v2 = vmul.f32 %v5700_v1, %v5648_v24  ;;  %v4433_v18 = vpop.eup %4432  ;;  %v2286_v15 = vand.u32 2147483648, %v5565_v57  ;;  %v2284_v43 = vand.u32 2147483647, %v5565_v57 }
 0x17a   :  { %v2133_v36 = vadd.f32 2.0, %v4433_v18  ;;  %v2318_v9 = vsel %vm5670_vm1, %v2317_v42, %v2313_v8  ;;  %v2278_v28 = vmul.f32 %v5626_v54, %v2277_v49  ;;  %v5728_v46 = vpop.eup %4434  ;;  %v1041_v39 = vsub.f32 %v5446_v59, %v843_v29 }
 0x17b   :  { %v2322_v19 = vsub.f32 1.0, %v2321_v2  ;;  %v5733_v44 = vadd.f32 2.0, %v773_v22  ;;  %vm2280_vm10 = vweird.f32 %v5565_v57  ;;  %v5738_v42 = vadd.f32 %v5309_v40, %v2062_v7 }
 0x17c   :  { %v2149_v38 = vmul.f32 %v4433_v18, %v2133_v36  ;;  %v2279_v37 = vadd.f32 %v5626_v54, %v2278_v28  ;;  %v5741_v45 = vmul.f32 %v2318_v9, %v5595_v25  ;;  %vm2326_vm11 = vweird.f32 %v5700_v1  ;;  %4184 = vmatmul.msk.f32.gmra.mxu2 %vm116_vm0, %v1041_v39  ;;  %vm2282_vm12 = vmor %vm2280_vm10, %vm2281_vm9 }
 0x17d   :  { %v2323_v31 = vmul.f32 %v5700_v1, %v2322_v19  ;;  %v2287_v57 = vor.u32 1.1754944e-38, %v2286_v15  ;;  %v2098_v40 = vmul.f32 1.442695, %v5738_v42  ;;  %v845_v25 = vmul.f32 %v5631_v55, %v5577_v3  ;;  %vm5763_vm15 = vmor %vm2325_vm7, %vm2326_vm11 }
 0x17e   :  { %v5745_v59 = vadd.f32 2.0, %v2149_v38  ;;  %v2283_v12 = vsel %vm2282_vm12, %v5626_v54, %v2279_v37  ;;  %v4437_v56 = vpop.eup %4436  ;;  %v2418_v6 = vsub.f32 %v5491_v21, %v5714_v48  ;;  %vm5756_vm13 = vcmp.eq.f32.partialorder %v2329_v0, 8.507059e+37  ;;  %v2065_v0 = vpop.f32.mrf.mxu0 }
 0x17f   :  { %v2324_v63 = vadd.f32 %v5700_v1, %v2323_v31  ;;  %vm2285_vm14 = vcmp.eq.f32.partialorder %v2284_v43, 8.507059e+37  ;;  %v2332_v51 = vor.u32 1.1754944e-38, %v2331_v23  ;;  %v5769_v5 = vmul.f32 2.0, %v5686_v60 }
 0x180   :  { %4438 = vrcp.f32 %v5745_v59  ;;  %v2288_v10 = vsel %vm2285_vm14, %v2287_v57, %v2283_v12  ;;  %v2419_v7 = vsub.f32 %v5525_v14, %v5741_v45  ;;  %v2344_v2 = vand.u32 2147483647, %v5745_v59  ;;  %v682_v31 = vpop.f32.mrf.mxu1 }
 0x181   :  { %4440 = vrcp.f32 %v5733_v44  ;;  %v2328_v8 = vsel %vm5763_vm15, %v5700_v1, %v2324_v63  ;;  %v2289_v24 = vmul.f32 %v2288_v10, %v5541_v47  ;;  %v758_v18 = vadd.f32 2.0, %v4437_v56  ;;  %v5791_v1 = vld [vmem:[%s9062_s12] ss:$0 sm:$0xff] }
 0x182   :  { %4442 = vpow2.f32 %v2098_v40  ;;  %v846_v23 = vsub.f32 1.0, %v845_v25  ;;  %v853_v22 = vand.u32 2147483647, %v5577_v3  ;;  %vm849_vm1 = vweird.f32 %v5577_v3 }
 0x183   :  { %v2417_v20 = vsub.f32 %v5458_v30, %v2289_v24  ;;  %v855_v49 = vand.u32 2147483648, %v5577_v3  ;;  %v5783_v19 = vadd.f32 %v5383_v17, %v679_v34  ;;  %vm2340_vm2 = vweird.f32 %v5745_v59 }
 0x184   :  { %v847_v47 = vmul.f32 %v5631_v55, %v846_v23  ;;  %vm850_vm3 = vweird.f32 %v5631_v55  ;;  %v5794_v30 = vadd.f32 %v5791_v1, %v2065_v0  ;;  %v2333_v29 = vsel %vm5756_vm13, %v2332_v51, %v2328_v8 }
 0x185   :  { %v2346_v9 = vand.u32 2147483648, %v5745_v59  ;;  %4237 = vmatmul.msk.f32.gmra.mxu1 %vm116_vm0, %v2417_v20  ;;  %v719_v28 = vmul.f32 1.442695, %v5783_v19  ;;  %v860_v15 = vmul.f32 %v5688_v52, %v5618_v41  ;;  %vm5806_vm4 = vcmp.eq.f32.partialorder %v2344_v2, 8.507059e+37  ;;  %vm851_vm6 = vmor %vm849_vm1, %vm850_vm3 }
 0x186   :  { %v4439_v36 = vpop.eup %4438  ;;  %v774_v34 = vmul.f32 %v4437_v56, %v758_v18  ;;  %v848_v37 = vadd.f32 %v5631_v55, %v847_v47  ;;  %vm854_vm5 = vcmp.eq.f32.partialorder %v853_v22, 8.507059e+37  ;;  %v856_v12 = vor.u32 1.1754944e-38, %v855_v49  ;;  %v2068_v24 = vpop.f32.mrf.mxu0 }
 0x187   :  { %v5803_v38 = vpop.eup %4440  ;;  %v2336_v39 = vmul.f32 %v4439_v36, %v5745_v59  ;;  %4444 = vpow2.f32 %v719_v28  ;;  %v2100_v57 = vmul.f32 1.442695, %v5794_v30  ;;  %v861_v40 = vsub.f32 1.0, %v860_v15 }
 0x188   :  { %v4443_v63 = vpop.eup %4442  ;;  %vm2341_vm7 = vweird.f32 %v4439_v36  ;;  %v852_v54 = vsel %vm851_vm6, %v5631_v55, %v848_v37  ;;  %vm865_vm8 = vweird.f32 %v5688_v52  ;;  %v868_v8 = vand.u32 2147483647, %v5618_v41 }
 0x189   :  { %v2337_v25 = vsub.f32 1.0, %v2336_v39  ;;  %v2134_v53 = vadd.f32 2.0, %v4443_v63  ;;  %v857_v56 = vsel %vm854_vm5, %v856_v12, %v852_v54  ;;  %4446 = vpow2.f32 %v2100_v57  ;;  %vm2342_vm11 = vmor %vm2340_vm2, %vm2341_vm7  ;;  %v685_v39 = vpop.f32.mrf.mxu1 }
 0x18a   :  { %v862_v51 = vmul.f32 %v5688_v52, %v861_v40  ;;  %v858_v3 = vmul.f32 %v857_v56, %v5544_v27  ;;  %vm864_vm9 = vweird.f32 %v5618_v41  ;;  %v870_v18 = vand.u32 2147483648, %v5618_v41 }
 0x18b   :  { %v2338_v10 = vmul.f32 %v4439_v36, %v2337_v25  ;;  %v2150_v0 = vmul.f32 %v4443_v63, %v2134_v53  ;;  %v5825_v55 = vadd.f32 %v5383_v17, %v682_v31  ;;  %v2347_v22 = vor.u32 1.1754944e-38, %v2346_v9  ;;  %vm5830_vm10 = vmor %vm864_vm9, %vm865_vm8 }
 0x18c   :  { %v863_v2 = vadd.f32 %v5688_v52, %v862_v51  ;;  %v1042_v49 = vsub.f32 %v5475_v35, %v858_v3  ;;  %v871_v9 = vor.u32 1.1754944e-38, %v870_v18  ;;  %v5846_v28 = vadd.f32 %v5791_v1, %v2068_v24 }
 0x18d   :  { %v2339_v23 = vadd.f32 %v4439_v36, %v2338_v10  ;;  %v5827_v20 = vadd.f32 2.0, %v2150_v0  ;;  %v4445_v47 = vpop.eup %4444  ;;  %4238 = vmatmul.msk.f32.gmra.mxu1 %vm116_vm0, %v2418_v6  ;;  %v721_v35 = vmul.f32 1.442695, %v5825_v55  ;;  %v5848_v31 = vadd.f32 2.0, %v774_v34 }
 0x18e   :  { %v867_v41 = vsel %vm5830_vm10, %v5688_v52, %v863_v2  ;;  %4185 = vmatmul.msk.f32.gmra.mxu2 %vm116_vm0, %v1042_v49  ;;  %vm869_vm12 = vcmp.eq.f32.partialorder %v868_v8, 8.507059e+37  ;;  %v5853_v48 = vmul.f32 %v2333_v29, %v5622_v32  ;;  %v759_v59 = vadd.f32 2.0, %v4445_v47  ;;  %v2071_v2 = vpop.f32.mrf.mxu0 }
 0x18f   :  { %v2343_v15 = vsel %vm2342_vm11, %v4439_v36, %v2339_v23  ;;  %4448 = vrcp.f32 %v5827_v20  ;;  %v4447_v21 = vpop.eup %4446  ;;  %v872_v6 = vsel %vm869_vm12, %v871_v9, %v867_v41  ;;  %v5858_v37 = vmul.f32 2.0, %v5738_v42 }
 0x190   :  { %v2348_v52 = vsel %vm5806_vm4, %v2347_v22, %v2343_v15  ;;  %v2359_v36 = vand.u32 2147483647, %v5827_v20  ;;  %v2135_v34 = vadd.f32 2.0, %v4447_v21  ;;  %v873_v63 = vmul.f32 %v872_v6, %v5586_v4 }
 0x191   :  { %v5863_v12 = vmul.f32 %v2348_v52, %v5692_v26  ;;  %v2361_v32 = vand.u32 2147483648, %v5827_v20  ;;  %4450 = vpow2.f32 %v721_v35  ;;  %v2102_v29 = vmul.f32 1.442695, %v5846_v28 }
 0x192   :  { %4452 = vrcp.f32 %v5848_v31  ;;  %v775_v43 = vmul.f32 %v4445_v47, %v759_v59  ;;  %v2151_v57 = vmul.f32 %v4447_v21, %v2135_v34  ;;  %v1043_v40 = vsub.f32 %v5506_v62, %v873_v63  ;;  %v688_v21 = vpop.f32.mrf.mxu1 }
 0x193   :  { %v2420_v25 = vsub.f32 %v5568_v58, %v5853_v48  ;;  %v5872_v53 = vmul.f32 2.0, %v5783_v19  ;;  %4454 = vpow2.f32 %v2102_v29  ;;  %v875_v4 = vmul.f32 %v5728_v46, %v5674_v11 }
 0x194   :  { %vm2355_vm13 = vweird.f32 %v5827_v20  ;;  %v5878_v54 = vmul.f32 2.0, %v5794_v30  ;;  %v5880_v56 = vadd.f32 2.0, %v2151_v57  ;;  %v5883_v62 = vmul.f32 2.0, %v5825_v55 }
 0x195   :  { %v4449_v26 = vpop.eup %4448  ;;  %v2421_v58 = vsub.f32 %v5636_v16, %v5863_v12  ;;  %vm5888_vm14 = vcmp.eq.f32.partialorder %v2359_v36, 8.507059e+37  ;;  %v2362_v0 = vor.u32 1.1754944e-38, %v2361_v32  ;;  %4239 = vmatmul.msk.f32.gmra.mxu1 %vm116_vm0, %v2419_v7  ;;  %v876_v3 = vsub.f32 1.0, %v875_v4 }
 0x196   :  { %v2351_v51 = vmul.f32 %v4449_v26, %v5827_v20  ;;  %v5896_v8 = vadd.f32 2.0, %v775_v43  ;;  %4456 = vrcp.f32 %v5880_v56  ;;  %4186 = vmatmul.msk.f32.gmra.mxu2 %vm116_vm0, %v1043_v40  ;;  %vm879_vm15 = vweird.f32 %v5674_v11 }
 0x197   :  { %v885_v24 = vand.u32 2147483648, %v5674_v11  ;;  %v4451_v18 = vpop.eup %4450  ;;  %v877_v22 = vmul.f32 %v5728_v46, %v876_v3  ;;  %vm880_vm1 = vweird.f32 %v5728_v46  ;;  %v883_v14 = vand.u32 2147483647, %v5674_v11 }
 0x198   :  { %v2352_v23 = vsub.f32 1.0, %v2351_v51  ;;  %v5905_v45 = vpop.eup %4452  ;;  %vm2356_vm2 = vweird.f32 %v4449_v26  ;;  %v2374_v7 = vand.u32 2147483647, %v5880_v56  ;;  %v760_v49 = vadd.f32 2.0, %v4451_v18  ;;  %vm881_vm3 = vmor %vm879_vm15, %vm880_vm1 }
 0x199   :  { %v5909_v27 = vadd.f32 %v5383_v17, %v685_v39  ;;  %v4455_v47 = vpop.eup %4454  ;;  %v2376_v9 = vand.u32 2147483648, %v5880_v56  ;;  %v878_v35 = vadd.f32 %v5728_v46, %v877_v22  ;;  %v5914_v15 = vadd.f32 %v5791_v1, %v2071_v2  ;;  %vm2357_vm5 = vmor %vm2355_vm13, %vm2356_vm2 }
 0x19a   :  { %v2353_v41 = vmul.f32 %v4449_v26, %v2352_v23  ;;  %v2136_v48 = vadd.f32 2.0, %v4455_v47  ;;  %v886_v52 = vor.u32 1.1754944e-38, %v885_v24  ;;  %v890_v17 = vmul.f32 %v5803_v38, %v5733_v44  ;;  %v691_v3 = vpop.f32.mrf.mxu1 }
 0x19b   :  { %v723_v59 = vmul.f32 1.442695, %v5909_v27  ;;  %v882_v39 = vsel %vm881_vm3, %v5728_v46, %v878_v35  ;;  %vm884_vm4 = vcmp.eq.f32.partialorder %v883_v14, 8.507059e+37  ;;  %v2104_v36 = vmul.f32 1.442695, %v5914_v15 }
 0x19c   :  { %v2354_v6 = vadd.f32 %v4449_v26, %v2353_v41  ;;  %v5923_v34 = vpop.eup %4456  ;;  %v776_v11 = vmul.f32 %v4451_v18, %v760_v49  ;;  %v2152_v1 = vmul.f32 %v4455_v47, %v2136_v48  ;;  %v887_v63 = vsel %vm884_vm4, %v886_v52, %v882_v39  ;;  %v5976_v41 = vld [vmem:[%s9056_s6] ss:$0 sm:$0xff]  ;;  %s9208_s6 = sld [smem:[#allocation46_spill]] }
 0x19d   :  { %4458 = vpow2.f32 %v723_v59  ;;  %v2366_v29 = vmul.f32 %v5923_v34, %v5880_v56  ;;  %v5931_v43 = vmul.f32 2.0, %v5846_v28  ;;  %v888_v46 = vmul.f32 %v887_v63, %v5598_v61  ;;  %4240 = vmatmul.msk.f32.gmra.mxu1 %vm116_vm0, %v2420_v25 }
 0x19e   :  { %v2358_v32 = vsel %vm2357_vm5, %v4449_v26, %v2354_v6  ;;  %4460 = vrcp.f32 %v5896_v8  ;;  %v5938_v20 = vadd.f32 2.0, %v2152_v1  ;;  %v891_v40 = vsub.f32 1.0, %v890_v17 }
 0x19f   :  { %v2363_v57 = vsel %vm5888_vm14, %v2362_v0, %v2358_v32  ;;  %v2367_v4 = vsub.f32 1.0, %v2366_v29  ;;  %vm2370_vm6 = vweird.f32 %v5880_v56  ;;  %v1044_v26 = vsub.f32 %v5549_v50, %v888_v46 }
 0x1a0   :  { %4462 = vpow2.f32 %v2104_v36  ;;  %vm5942_vm7 = vcmp.eq.f32.partialorder %v2374_v7, 8.507059e+37  ;;  %v2377_v61 = vor.u32 1.1754944e-38, %v2376_v9  ;;  %v5946_v25 = vadd.f32 2.0, %v776_v11 }
 0x1a1   :  { %4464 = vrcp.f32 %v5938_v20  ;;  %v5950_v10 = vmul.f32 %v2363_v57, %v5858_v37  ;;  %v2368_v0 = vmul.f32 %v5923_v34, %v2367_v4  ;;  %vm2371_vm8 = vweird.f32 %v5923_v34  ;;  %4187 = vmatmul.msk.f32.gmra.mxu2 %vm116_vm0, %v1044_v26 }
 0x1a2   :  { %v892_v50 = vmul.f32 %v5803_v38, %v891_v40  ;;  %v2389_v2 = vand.u32 2147483647, %v5938_v20  ;;  %vm894_vm9 = vweird.f32 %v5733_v44  ;;  %vm895_vm10 = vweird.f32 %v5803_v38  ;;  %vm5989_vm12 = vmor %vm2370_vm6, %vm2371_vm8  ;;  %v694_v32 = vpop.f32.mrf.mxu1 }
 0x1a3   :  { %v4459_v24 = vpop.eup %4458  ;;  %v898_v18 = vand.u32 2147483647, %v5733_v44  ;;  %v2369_v37 = vadd.f32 %v5923_v34, %v2368_v0  ;;  %v900_v14 = vand.u32 2147483648, %v5733_v44  ;;  %4466 = vrcp.f32 %v5946_v25  ;;  %vm5969_vm11 = vmor %vm894_vm9, %vm895_vm10 }
 0x1a4   :  { %v761_v23 = vadd.f32 2.0, %v4459_v24  ;;  %v893_v22 = vadd.f32 %v5803_v38, %v892_v50  ;;  %v5963_v7 = vpop.eup %4460  ;;  %v5967_v49 = vmul.f32 2.0, %v5914_v15  ;;  %v5979_v9 = vadd.f32 %v5976_v41, %v688_v21 }
 0x1a5   :  { %v905_v44 = vmul.f32 %v5905_v45, %v5848_v31  ;;  %v2422_v48 = vsub.f32 %v5738_v42, %v5950_v10  ;;  %vm2385_vm13 = vweird.f32 %v5938_v20  ;;  %v2391_v21 = vand.u32 2147483648, %v5938_v20  ;;  %4241 = vmatmul.msk.f32.gmra.mxu1 %vm116_vm0, %v2421_v58 }
 0x1a6   :  { %v4463_v35 = vpop.eup %4462  ;;  %v897_v59 = vsel %vm5969_vm11, %v5803_v38, %v893_v22  ;;  %v2373_v56 = vsel %vm5989_vm12, %v5923_v34, %v2369_v37  ;;  %v901_v6 = vor.u32 1.1754944e-38, %v900_v14  ;;  %v725_v39 = vmul.f32 1.442695, %v5979_v9 }
 0x1a7   :  { %v4465_v42 = vpop.eup %4464  ;;  %v2137_v17 = vadd.f32 2.0, %v4463_v35  ;;  %vm6007_vm14 = vcmp.eq.f32.partialorder %v2389_v2, 8.507059e+37  ;;  %v777_v38 = vmul.f32 %v4459_v24, %v761_v23  ;;  %vm899_vm15 = vcmp.eq.f32.partialorder %v898_v18, 8.507059e+37 }
 0x1a8   :  { %v2381_v36 = vmul.f32 %v4465_v42, %v5938_v20  ;;  %v902_v12 = vsel %vm899_vm15, %v901_v6, %v897_v59  ;;  %4468 = vpow2.f32 %v725_v39  ;;  %v906_v58 = vsub.f32 1.0, %v905_v44 }
 0x1a9   :  { %v2153_v16 = vmul.f32 %v4463_v35, %v2137_v17  ;;  %v2378_v1 = vsel %vm5942_vm7, %v2377_v61, %v2373_v56  ;;  %vm2386_vm1 = vweird.f32 %v4465_v42  ;;  %v903_v63 = vmul.f32 %v902_v12, %v5668_v33  ;;  %v6014_v29 = vpop.eup %4466 }
 0x1aa   :  { %v2382_v34 = vsub.f32 1.0, %v2381_v36  ;;  %v907_v57 = vmul.f32 %v5905_v45, %v906_v58  ;;  %vm910_vm2 = vweird.f32 %v5905_v45  ;;  %v913_v40 = vand.u32 2147483647, %v5848_v31  ;;  %vm6032_vm4 = vmor %vm2385_vm13, %vm2386_vm1  ;;  %v697_v59 = vpop.f32.mrf.mxu1 }
 0x1ab   :  { %v6016_v46 = vadd.f32 2.0, %v2153_v16  ;;  %v1045_v26 = vsub.f32 %v5590_v13, %v903_v63  ;;  %v915_v51 = vand.u32 2147483648, %v5848_v31  ;;  %v6024_v61 = vadd.f32 %v5976_v41, %v691_v3 }
 0x1ac   :  { %v2383_v4 = vmul.f32 %v4465_v42, %v2382_v34  ;;  %v2379_v33 = vmul.f32 %v2378_v1, %v5878_v54  ;;  %v2392_v10 = vor.u32 1.1754944e-38, %v2391_v21  ;;  %vm909_vm3 = vweird.f32 %v5848_v31 }
 0x1ad   :  { %4470 = vrcp.f32 %v6016_v46  ;;  %v6036_v13 = vadd.f32 2.0, %v777_v38  ;;  %v2404_v3 = vand.u32 2147483647, %v6016_v46  ;;  %4188 = vmatmul.msk.f32.gmra.mxu2 %vm116_vm0, %v1045_v26  ;;  %v908_v54 = vadd.f32 %v5905_v45, %v907_v57  ;;  %4242 = vmatmul.msk.f32.gmra.mxu1 %vm116_vm0, %v2422_v48  ;;  %vm911_vm5 = vmor %vm909_vm3, %vm910_vm2 }
 0x1ae   :  { %v2384_v0 = vadd.f32 %v4465_v42, %v2383_v4  ;;  %v4469_v24 = vpop.eup %4468  ;;  %v2406_v31 = vand.u32 2147483648, %v6016_v46  ;;  %vm914_vm6 = vcmp.eq.f32.partialorder %v913_v40, 8.507059e+37  ;;  %v916_v20 = vor.u32 1.1754944e-38, %v915_v51 }
 0x1af   :  { %v727_v2 = vmul.f32 1.442695, %v6024_v61  ;;  %v762_v37 = vadd.f32 2.0, %v4469_v24  ;;  %v912_v23 = vsel %vm911_vm5, %v5905_v45, %v908_v54  ;;  %v920_v22 = vmul.f32 %v5963_v7, %v5896_v8 }
 0x1b0   :  { %v2388_v18 = vsel %vm6032_vm4, %v4465_v42, %v2384_v0  ;;  %v2423_v14 = vsub.f32 %v5794_v30, %v2379_v33  ;;  %v917_v44 = vsel %vm914_vm6, %v916_v20, %v912_v23  ;;  %vm2400_vm7 = vweird.f32 %v6016_v46 }
 0x1b1   :  { %v2393_v47 = vsel %vm6007_vm14, %v2392_v10, %v2388_v18  ;;  %4472 = vpow2.f32 %v727_v2  ;;  %v778_v48 = vmul.f32 %v4469_v24, %v762_v37  ;;  %v918_v52 = vmul.f32 %v917_v44, %v5769_v5 }
 0x1b2   :  { %v6055_v35 = vmul.f32 %v2393_v47, %v5931_v43  ;;  %v921_v21 = vsub.f32 1.0, %v920_v22  ;;  %4474 = vrcp.f32 %v6036_v13  ;;  %v928_v30 = vand.u32 2147483647, %v5896_v8  ;;  %v700_v10 = vpop.f32.mrf.mxu1 }
 0x1b3   :  { %v4471_v42 = vpop.eup %4470  ;;  %v6062_v45 = vadd.f32 %v5976_v41, %v694_v32  ;;  %vm6065_vm8 = vcmp.eq.f32.partialorder %v2404_v3, 8.507059e+37  ;;  %v2407_v17 = vor.u32 1.1754944e-38, %v2406_v31  ;;  %v6069_v5 = vadd.f32 2.0, %v778_v48 }
 0x1b4   :  { %v2396_v56 = vmul.f32 %v4471_v42, %v6016_v46  ;;  %v930_v6 = vand.u32 2147483648, %v5896_v8  ;;  %v1046_v39 = vsub.f32 %v5686_v60, %v918_v52  ;;  %v922_v36 = vmul.f32 %v5963_v7, %v921_v21 }
 0x1b5   :  { %vm924_vm9 = vweird.f32 %v5896_v8  ;;  %vm925_vm10 = vweird.f32 %v5963_v7  ;;  %v2424_v11 = vsub.f32 %v5846_v28, %v6055_v35  ;;  %vm2401_vm11 = vweird.f32 %v4471_v42  ;;  %4243 = vmatmul.msk.f32.gmra.mxu1 %vm116_vm0, %v2423_v14 }
 0x1b6   :  { %v2397_v38 = vsub.f32 1.0, %v2396_v56  ;;  %v729_v16 = vmul.f32 1.442695, %v6062_v45  ;;  %4476 = vrcp.f32 %v6069_v5  ;;  %4189 = vmatmul.msk.f32.gmra.mxu2 %vm116_vm0, %v1046_v39  ;;  %v923_v60 = vadd.f32 %v5963_v7, %v922_v36  ;;  %vm926_vm13 = vmor %vm924_vm9, %vm925_vm10 }
 0x1b7   :  { %v4473_v12 = vpop.eup %4472  ;;  %vm929_vm12 = vcmp.eq.f32.partialorder %v928_v30, 8.507059e+37  ;;  %v935_v58 = vmul.f32 %v6014_v29, %v5946_v25  ;;  %v931_v28 = vor.u32 1.1754944e-38, %v930_v6  ;;  %vm940_vm14 = vweird.f32 %v6014_v29  ;;  %vm2402_vm15 = vmor %vm2400_vm7, %vm2401_vm11 }
 0x1b8   :  { %v2398_v1 = vmul.f32 %v4471_v42, %v2397_v38  ;;  %v763_v34 = vadd.f32 2.0, %v4473_v12  ;;  %4478 = vpow2.f32 %v729_v16  ;;  %v6087_v63 = vpop.eup %4474  ;;  %v927_v32 = vsel %vm926_vm13, %v5963_v7, %v923_v60 }
 0x1b9   :  { %v936_v57 = vsub.f32 1.0, %v935_v58  ;;  %v6092_v40 = vadd.f32 %v5976_v41, %v697_v59  ;;  %v932_v51 = vsel %vm929_vm12, %v931_v28, %v927_v32  ;;  %v945_v33 = vand.u32 2147483648, %v5946_v25 }
 0x1ba   :  { %v2399_v4 = vadd.f32 %v4471_v42, %v2398_v1  ;;  %v779_v26 = vmul.f32 %v4473_v12, %v763_v34  ;;  %v933_v8 = vmul.f32 %v932_v51, %v5872_v53  ;;  %v943_v0 = vand.u32 2147483647, %v5946_v25 }
 0x1bb   :  { %v937_v7 = vmul.f32 %v6014_v29, %v936_v57  ;;  %v731_v50 = vmul.f32 1.442695, %v6092_v40  ;;  %vm939_vm1 = vweird.f32 %v5946_v25  ;;  %v950_v24 = vmul.f32 %v6087_v63, %v6036_v13 }
 0x1bc   :  { %v2403_v3 = vsel %vm2402_vm15, %v4471_v42, %v2399_v4  ;;  %v6102_v54 = vadd.f32 2.0, %v779_v26  ;;  %v6107_v31 = vpop.eup %4476  ;;  %v1047_v53 = vsub.f32 %v5783_v19, %v933_v8  ;;  %vm941_vm2 = vmor %vm939_vm1, %vm940_vm14  ;;  %v946_v25 = vor.u32 1.1754944e-38, %v945_v33  ;;  %v2499_v42 = vpop.f32.mrf.mxu1  ;;  %v2902_v8 = vld [vmem:[%s9065_s15 + $0x18] sm:$0xff] }
 0x1bd   :  { %v2408_v46 = vsel %vm6065_vm8, %v2407_v17, %v2403_v3  ;;  %v938_v20 = vadd.f32 %v6014_v29, %v937_v7  ;;  %4480 = vpow2.f32 %v731_v50  ;;  %4244 = vmatmul.msk.f32.gmra.mxu1 %vm116_vm0, %v2424_v11  ;;  %v951_v37 = vsub.f32 1.0, %v950_v24  ;;  %2967 = vmatpush.msrb.mxu2 %v2902_v8 }
 0x1be   :  { %v4479_v2 = vpop.eup %4478  ;;  %v2409_v18 = vmul.f32 %v2408_v46, %v5967_v49  ;;  %4482 = vrcp.f32 %v6102_v54  ;;  %4190 = vmatmul.msk.f32.gmra.mxu2 %vm116_vm0, %v1047_v53  ;;  %vm944_vm3 = vcmp.eq.f32.partialorder %v943_v0, 8.507059e+37  ;;  %vm955_vm4 = vweird.f32 %v6087_v63 }
 0x1bf   :  { %v764_v23 = vadd.f32 2.0, %v4479_v2  ;;  %v942_v19 = vsel %vm941_vm2, %v6014_v29, %v938_v20  ;;  %v952_v49 = vmul.f32 %v6087_v63, %v951_v37  ;;  %v958_v14 = vand.u32 2147483647, %v6036_v13 }
 0x1c0   :  { %v947_v22 = vsel %vm944_vm3, %v946_v25, %v942_v19  ;;  %v960_v47 = vand.u32 2147483648, %v6036_v13  ;;  %v745_v44 = vmul.f32 2.0, %v5909_v27  ;;  %v6127_v52 = vadd.f32 %v5976_v41, %v700_v10 }
 0x1c1   :  { %v780_v35 = vmul.f32 %v4479_v2, %v764_v23  ;;  %v948_v48 = vmul.f32 %v947_v22, %v5883_v62  ;;  %v2425_v29 = vsub.f32 %v5914_v15, %v2409_v18  ;;  %v953_v21 = vadd.f32 %v6087_v63, %v952_v49  ;;  %v6143_v15 = vld [vmem:[%s9064_s14] ss:$0 sm:$0xff] }
 0x1c2   :  { %vm954_vm5 = vweird.f32 %v6036_v13  ;;  %v965_v59 = vmul.f32 %v6107_v31, %v6069_v5  ;;  %v961_v62 = vor.u32 1.1754944e-38, %v960_v47  ;;  %v733_v41 = vmul.f32 1.442695, %v6127_v52 }
 0x1c3   :  { %v4481_v30 = vpop.eup %4480  ;;  %v6134_v56 = vadd.f32 2.0, %v780_v35  ;;  %v1048_v43 = vsub.f32 %v5825_v55, %v948_v48  ;;  %vm956_vm6 = vmor %vm954_vm5, %vm955_vm4  ;;  %vm959_vm7 = vcmp.eq.f32.partialorder %v958_v14, 8.507059e+37  ;;  %vm970_vm8 = vweird.f32 %v6107_v31 }
 0x1c4   :  { %v6145_v13 = vpop.eup %4482  ;;  %v765_v17 = vadd.f32 2.0, %v4481_v30  ;;  %v957_v6 = vsel %vm956_vm6, %v6087_v63, %v953_v21  ;;  %v966_v39 = vsub.f32 1.0, %v965_v59  ;;  %v973_v36 = vand.u32 2147483647, %v6069_v5  ;;  %v2502_v26 = vpop.f32.mrf.mxu1 }
 0x1c5   :  { %4484 = vrcp.f32 %v6134_v56  ;;  %v962_v55 = vsel %vm959_vm7, %v961_v62, %v957_v6  ;;  %4245 = vmatmul.msk.f32.gmra.mxu1 %vm116_vm0, %v2425_v29  ;;  %v975_v16 = vand.u32 2147483648, %v6069_v5  ;;  %v6156_v60 = vadd.f32 %v6143_v15, %v2499_v42 }
 0x1c6   :  { %v781_v11 = vmul.f32 %v4481_v30, %v765_v17  ;;  %4486 = vpow2.f32 %v733_v41  ;;  %v967_v38 = vmul.f32 %v6107_v31, %v966_v39  ;;  %4191 = vmatmul.msk.f32.gmra.mxu2 %vm116_vm0, %v1048_v43  ;;  %v963_v12 = vmul.f32 %v962_v55, %v745_v44  ;;  %v2901_v39 = vld [vmem:[%s9065_s15 + $0x10] sm:$0xff]  ;;  %v2900_v55 = vld [vmem:[%s9065_s15 + $0x8] sm:$0xff] }
 0x1c7   :  { %v980_v58 = vmul.f32 %v6145_v13, %v6102_v54  ;;  %vm969_vm9 = vweird.f32 %v6069_v5  ;;  %v2547_v63 = vmul.f32 1.442695, %v6156_v60  ;;  %vm974_vm11 = vcmp.eq.f32.partialorder %v973_v36, 8.507059e+37  ;;  %2968 = vmatpush.msrb.mxu2 %v2901_v39 }
 0x1c8   :  { %v6160_v1 = vadd.f32 2.0, %v781_v11  ;;  %v968_v34 = vadd.f32 %v6107_v31, %v967_v38  ;;  %vm6164_vm10 = vmor %vm969_vm9, %vm970_vm8  ;;  %v976_v4 = vor.u32 1.1754944e-38, %v975_v16  ;;  %v1049_v5 = vsub.f32 %v5909_v27, %v963_v12  ;;  %v2899_v12 = vld [vmem:[%s9065_s15] sm:$0xff] }
 0x1c9   :  { %v981_v32 = vsub.f32 1.0, %v980_v58  ;;  %v6178_v10 = vadd.f32 %v6143_v15, %v2502_v26  ;;  %v746_v0 = vmul.f32 2.0, %v5979_v9  ;;  %vm985_vm12 = vweird.f32 %v6145_v13  ;;  %2969 = vmatpush.msrb.mxu2 %v2900_v55 }
 0x1ca   :  { %4488 = vrcp.f32 %v6160_v1  ;;  %v972_v57 = vsel %vm6164_vm10, %v6107_v31, %v968_v34  ;;  %vm984_vm13 = vweird.f32 %v6102_v54  ;;  %v990_v46 = vand.u32 2147483648, %v6102_v54 }
 0x1cb   :  { %v6173_v51 = vpop.eup %4484  ;;  %4490 = vpow2.f32 %v2547_v63  ;;  %v982_v33 = vmul.f32 %v6145_v13, %v981_v32  ;;  %v977_v50 = vsel %vm974_vm11, %v976_v4, %v972_v57  ;;  %v2549_v31 = vmul.f32 1.442695, %v6178_v10  ;;  %vm6195_vm14 = vmor %vm984_vm13, %vm985_vm12  ;;  %2970 = vmatpush.msrb.mxu2 %v2899_v12 }
 0x1cc   :  { %v4487_v7 = vpop.eup %4486  ;;  %v995_v3 = vmul.f32 %v6173_v51, %v6134_v56  ;;  %v978_v2 = vmul.f32 %v977_v50, %v746_v0  ;;  %v988_v18 = vand.u32 2147483647, %v6102_v54  ;;  %v991_v47 = vor.u32 1.1754944e-38, %v990_v46  ;;  %v2505_v44 = vpop.f32.mrf.mxu1 }
 0x1cd   :  { %v766_v24 = vadd.f32 2.0, %v4487_v7  ;;  %v983_v27 = vadd.f32 %v6145_v13, %v982_v33  ;;  %4492 = vpow2.f32 %v2549_v31  ;;  %v6210_v48 = vadd.f32 %v6143_v15, %v2505_v44 }
 0x1ce   :  { %v996_v53 = vsub.f32 1.0, %v995_v3  ;;  %4192 = vmatmul.msk.f32.gmra.mxu2 %vm116_vm0, %v1049_v5  ;;  %v1050_v35 = vsub.f32 %v5979_v9, %v978_v2  ;;  %vm989_vm15 = vcmp.eq.f32.partialorder %v988_v18, 8.507059e+37  ;;  %v747_v29 = vmul.f32 2.0, %v6024_v61 }
 0x1cf   :  { %v782_v20 = vmul.f32 %v4487_v7, %v766_v24  ;;  %v987_v22 = vsel %vm6195_vm14, %v6145_v13, %v983_v27  ;;  %vm1000_vm1 = vweird.f32 %v6173_v51  ;;  %v2551_v43 = vmul.f32 1.442695, %v6210_v48  ;;  %v6264_v24 = vld [vmem:[%s9058_s8] ss:$0 sm:$0xff] }
 0x1d0   :  { %v6193_v25 = vpop.eup %4488  ;;  %v997_v49 = vmul.f32 %v6173_v51, %v996_v53  ;;  %v992_v59 = vsel %vm989_vm15, %v991_v47, %v987_v22  ;;  %v1005_v9 = vand.u32 2147483648, %v6134_v56  ;;  %vm999_vm2 = vweird.f32 %v6134_v56 }
 0x1d1   :  { %v4491_v23 = vpop.eup %4490  ;;  %v6199_v19 = vadd.f32 2.0, %v782_v20  ;;  %v1010_v14 = vmul.f32 %v6193_v25, %v6160_v1  ;;  %v993_v17 = vmul.f32 %v992_v59, %v747_v29  ;;  %v1003_v6 = vand.u32 2147483647, %v6134_v56  ;;  %vm6229_vm3 = vmor %vm999_vm2, %vm1000_vm1 }
 0x1d2   :  { %v2595_v54 = vadd.f32 2.0, %v4491_v23  ;;  %v998_v30 = vadd.f32 %v6173_v51, %v997_v49  ;;  %v1006_v58 = vor.u32 1.1754944e-38, %v1005_v9  ;;  %v748_v4 = vmul.f32 2.0, %v6062_v45 }
 0x1d3   :  { %4494 = vrcp.f32 %v6199_v19  ;;  %v4493_v42 = vpop.eup %4492  ;;  %v1011_v62 = vsub.f32 1.0, %v1010_v14  ;;  %v1051_v63 = vsub.f32 %v6024_v61, %v993_v17  ;;  %vm1004_vm4 = vcmp.eq.f32.partialorder %v1003_v6, 8.507059e+37 }
 0x1d4   :  { %v2611_v21 = vmul.f32 %v4491_v23, %v2595_v54  ;;  %v2596_v13 = vadd.f32 2.0, %v4493_v42  ;;  %4496 = vpow2.f32 %v2551_v43  ;;  %v1002_v56 = vsel %vm6229_vm3, %v6173_v51, %v998_v30  ;;  %v2508_v34 = vpop.f32.mrf.mxu1 }
 0x1d5   :  { %v1012_v16 = vmul.f32 %v6193_v25, %v1011_v62  ;;  %v6248_v57 = vadd.f32 %v6143_v15, %v2508_v34  ;;  %v1007_v26 = vsel %vm1004_vm4, %v1006_v58, %v1002_v56  ;;  %vm1015_vm5 = vweird.f32 %v6193_v25 }
 0x1d6   :  { %v6216_v41 = vadd.f32 2.0, %v2611_v21  ;;  %4193 = vmatmul.msk.f32.gmra.mxu2 %vm116_vm0, %v1050_v35  ;;  %v2612_v38 = vmul.f32 %v4493_v42, %v2596_v13  ;;  %v1020_v0 = vand.u32 2147483648, %v6160_v1  ;;  %v1008_v50 = vmul.f32 %v1007_v26, %v748_v4 }
 0x1d7   :  { %v1013_v5 = vadd.f32 %v6193_v25, %v1012_v16  ;;  %v2553_v33 = vmul.f32 1.442695, %v6248_v57  ;;  %vm1014_vm6 = vweird.f32 %v6160_v1  ;;  %v1018_v3 = vand.u32 2147483647, %v6160_v1 }
 0x1d8   :  { %4498 = vrcp.f32 %v6216_v41  ;;  %v6245_v32 = vadd.f32 2.0, %v2612_v38  ;;  %vm6268_vm7 = vmor %vm1014_vm6, %vm1015_vm5  ;;  %v1021_v37 = vor.u32 1.1754944e-38, %v1020_v0  ;;  %v1052_v49 = vsub.f32 %v6062_v45, %v1008_v50 }
 0x1d9   :  { %v6233_v11 = vpop.eup %4494  ;;  %v1017_v1 = vsel %vm6268_vm7, %v6193_v25, %v1013_v5  ;;  %vm1019_vm8 = vcmp.eq.f32.partialorder %v1018_v3, 8.507059e+37  ;;  %v749_v25 = vmul.f32 2.0, %v6092_v40  ;;  %v1035_v59 = vand.u32 2147483648, %v6199_v19 }
 0x1da   :  { %v1025_v28 = vmul.f32 %v6233_v11, %v6199_v19  ;;  %v4497_v51 = vpop.eup %4496  ;;  %4500 = vrcp.f32 %v6245_v32  ;;  %v1022_v47 = vsel %vm1019_vm8, %v1021_v37, %v1017_v1  ;;  %vm1030_vm9 = vweird.f32 %v6233_v11 }
 0x1db   :  { %v2597_v7 = vadd.f32 2.0, %v4497_v51  ;;  %4502 = vpow2.f32 %v2553_v33  ;;  %v1023_v30 = vmul.f32 %v1022_v47, %v749_v25  ;;  %vm1029_vm10 = vweird.f32 %v6199_v19 }
 0x1dc   :  { %v1026_v61 = vsub.f32 1.0, %v1025_v28  ;;  %v2511_v23 = vpop.f32.mrf.mxu1  ;;  %v1033_v43 = vand.u32 2147483647, %v6199_v19  ;;  %vm6301_vm11 = vmor %vm1029_vm10, %vm1030_vm9  ;;  %v750_v39 = vmul.f32 2.0, %v6127_v52  ;;  %v1036_v36 = vor.u32 1.1754944e-38, %v1035_v59 }
 0x1dd   :  { %v2613_v31 = vmul.f32 %v4497_v51, %v2597_v7  ;;  %v6287_v14 = vadd.f32 %v6143_v15, %v2511_v23  ;;  %v2652_v56 = vand.u32 2147483647, %v6216_v41  ;;  %v1053_v16 = vsub.f32 %v6092_v40, %v1023_v30 }
 0x1de   :  { %v6255_v8 = vpop.eup %4498  ;;  %4194 = vmatmul.msk.f32.gmra.mxu2 %vm116_vm0, %v1051_v63  ;;  %v1027_v20 = vmul.f32 %v6233_v11, %v1026_v61  ;;  %vm1034_vm12 = vcmp.eq.f32.partialorder %v1033_v43, 8.507059e+37  ;;  %v2654_v40 = vand.u32 2147483648, %v6216_v41  ;;  %vm2648_vm14 = vweird.f32 %v6216_v41 }
 0x1df   :  { %v1128_v27 = vpop.f32.mrf.mxu2  ;;  %v2644_v53 = vmul.f32 %v6255_v8, %v6216_v41  ;;  %v6281_v18 = vadd.f32 2.0, %v2613_v31  ;;  %v2555_v21 = vmul.f32 1.442695, %v6287_v14  ;;  %vm2649_vm13 = vweird.f32 %v6255_v8 }
 0x1e0   :  { %v6279_v2 = vadd.f32 %v6264_v24, %v1128_v27  ;;  %v6283_v22 = vpop.eup %4500  ;;  %v1028_v29 = vadd.f32 %v6233_v11, %v1027_v20  ;;  %vm6333_vm15 = vmor %vm2648_vm14, %vm2649_vm13  ;;  %vm2653_vm1 = vcmp.eq.f32.partialorder %v2652_v56, 8.507059e+37  ;;  %v2655_v46 = vor.u32 1.1754944e-38, %v2654_v40 }
 0x1e1   :  { %4504 = vrcp.f32 %v6281_v18  ;;  %v4503_v44 = vpop.eup %4502  ;;  %v2645_v35 = vsub.f32 1.0, %v2644_v53  ;;  %v2659_v42 = vmul.f32 %v6283_v22, %v6245_v32  ;;  %vm2663_vm2 = vweird.f32 %v6245_v32 }
 0x1e2   :  { %v1176_v54 = vmul.f32 1.442695, %v6279_v2  ;;  %v2598_v45 = vadd.f32 2.0, %v4503_v44  ;;  %v1032_v17 = vsel %vm6301_vm11, %v6233_v11, %v1028_v29  ;;  %vm2664_vm3 = vweird.f32 %v6283_v22 }
 0x1e3   :  { %v2646_v9 = vmul.f32 %v6255_v8, %v2645_v35  ;;  %v2660_v38 = vsub.f32 1.0, %v2659_v42  ;;  %v1037_v11 = vsel %vm1034_vm12, %v1036_v36, %v1032_v17  ;;  %v2669_v20 = vand.u32 2147483648, %v6245_v32  ;;  %vm6360_vm4 = vmor %vm2663_vm2, %vm2664_vm3 }
 0x1e4   :  { %4506 = vpow2.f32 %v1176_v54  ;;  %v2614_v62 = vmul.f32 %v4503_v44, %v2598_v45  ;;  %v2514_v19 = vpop.f32.mrf.mxu1  ;;  %v1038_v7 = vmul.f32 %v1037_v11, %v750_v39  ;;  %v2667_v47 = vand.u32 2147483647, %v6245_v32 }
 0x1e5   :  { %4508 = vpow2.f32 %v2555_v21  ;;  %v6317_v12 = vadd.f32 %v6143_v15, %v2514_v19  ;;  %v2647_v26 = vadd.f32 %v6255_v8, %v2646_v9  ;;  %v2661_v33 = vmul.f32 %v6283_v22, %v2660_v38 }
 0x1e6   :  { %4195 = vmatmul.msk.f32.gmra.mxu2 %vm116_vm0, %v1052_v49  ;;  %v6312_v55 = vadd.f32 2.0, %v2614_v62  ;;  %v1054_v23 = vsub.f32 %v6127_v52, %v1038_v7  ;;  %v2579_v29 = vmul.f32 2.0, %v6156_v60  ;;  %v2670_v43 = vor.u32 1.1754944e-38, %v2669_v20 }
 0x1e7   :  { %v6309_v6 = vpop.eup %4504  ;;  %v2557_v51 = vmul.f32 1.442695, %v6317_v12  ;;  %v2651_v31 = vsel %vm6333_vm15, %v6255_v8, %v2647_v26  ;;  %v2662_v1 = vadd.f32 %v6283_v22, %v2661_v33  ;;  %v2684_v32 = vand.u32 2147483648, %v6281_v18 }
 0x1e8   :  { %v1131_v58 = vpop.f32.mrf.mxu2  ;;  %4510 = vrcp.f32 %v6312_v55  ;;  %v2674_v63 = vmul.f32 %v6309_v6, %v6281_v18  ;;  %v2656_v25 = vsel %vm2653_vm1, %v2655_v46, %v2651_v31  ;;  %vm2668_vm5 = vcmp.eq.f32.partialorder %v2667_v47, 8.507059e+37 }
 0x1e9   :  { %v6321_v28 = vadd.f32 %v6264_v24, %v1131_v58  ;;  %4512 = vpow2.f32 %v2557_v51  ;;  %v2666_v30 = vsel %vm6360_vm4, %v6283_v22, %v2662_v1  ;;  %v2657_v62 = vmul.f32 %v2656_v25, %v2579_v29 }
 0x1ea   :  { %v4507_v34 = vpop.eup %4506  ;;  %v2675_v27 = vsub.f32 1.0, %v2674_v63  ;;  %vm2679_vm6 = vweird.f32 %v6309_v6  ;;  %v2580_v39 = vmul.f32 2.0, %v6178_v10  ;;  %v2671_v36 = vsel %vm2668_vm5, %v2670_v43, %v2666_v30 }
 0x1eb   :  { %v4509_v4 = vpop.eup %4508  ;;  %v1178_v61 = vmul.f32 1.442695, %v6321_v28  ;;  %v1224_v0 = vadd.f32 2.0, %v4507_v34  ;;  %v2581_v56 = vmul.f32 2.0, %v6210_v48  ;;  %vm2678_vm7 = vweird.f32 %v6281_v18 }
 0x1ec   :  { %v2599_v5 = vadd.f32 2.0, %v4509_v4  ;;  %v2676_v44 = vmul.f32 %v6309_v6, %v2675_v27  ;;  %v2682_v58 = vand.u32 2147483647, %v6281_v18  ;;  %vm6385_vm8 = vmor %vm2678_vm7, %vm2679_vm6  ;;  %v2685_v63 = vor.u32 1.1754944e-38, %v2684_v32 }
 0x1ed   :  { %4514 = vpow2.f32 %v1178_v61  ;;  %v2517_v37 = vpop.f32.mrf.mxu1  ;;  %v1240_v49 = vmul.f32 %v4507_v34, %v1224_v0  ;;  %v2883_v34 = vsub.f32 %v6156_v60, %v2657_v62  ;;  %v2672_v26 = vmul.f32 %v2671_v36, %v2580_v39 }
 0x1ee   :  { %4196 = vmatmul.msk.f32.gmra.mxu2 %vm116_vm0, %v1053_v16  ;;  %v2615_v3 = vmul.f32 %v4509_v4, %v2599_v5  ;;  %v6341_v41 = vpop.eup %4510  ;;  %v6350_v8 = vadd.f32 %v6143_v15, %v2517_v37  ;;  %v2677_v17 = vadd.f32 %v6309_v6, %v2676_v44  ;;  %v2697_v18 = vand.u32 2147483647, %v6312_v55 }
 0x1ef   :  { %v2689_v54 = vmul.f32 %v6341_v41, %v6312_v55  ;;  %v4513_v35 = vpop.eup %4512  ;;  %v6369_v13 = vadd.f32 2.0, %v1240_v49  ;;  %vm2694_vm9 = vweird.f32 %v6341_v41  ;;  %v2582_v61 = vmul.f32 2.0, %v6248_v57 }
 0x1f0   :  { %v6343_v53 = vadd.f32 2.0, %v2615_v3  ;;  %v2559_v21 = vmul.f32 1.442695, %v6350_v8  ;;  %v2600_v42 = vadd.f32 2.0, %v4513_v35  ;;  %v2681_v40 = vsel %vm6385_vm8, %v6309_v6, %v2677_v17 }
 0x1f1   :  { %v2690_v45 = vsub.f32 1.0, %v2689_v54  ;;  %vm2683_vm10 = vcmp.eq.f32.partialorder %v2682_v58, 8.507059e+37  ;;  %v2699_v0 = vand.u32 2147483648, %v6312_v55  ;;  %v6402_v50 = vmul.f32 2.0, %v6279_v2 }
 0x1f2   :  { %4516 = vrcp.f32 %v6343_v53  ;;  %v2616_v9 = vmul.f32 %v4513_v35, %v2600_v42  ;;  %v2686_v6 = vsel %vm2683_vm10, %v2685_v63, %v2681_v40  ;;  %vm2693_vm11 = vweird.f32 %v6312_v55 }
 0x1f3   :  { %v4515_v59 = vpop.eup %4514  ;;  %4518 = vpow2.f32 %v2559_v21  ;;  %v2691_v22 = vmul.f32 %v6341_v41, %v2690_v45  ;;  %v6407_v27 = vmul.f32 2.0, %v6287_v14  ;;  %v6410_v31 = vmul.f32 2.0, %v6317_v12  ;;  %vm6417_vm12 = vmor %vm2693_vm11, %vm2694_vm9 }
 0x1f4   :  { %v1225_v19 = vadd.f32 2.0, %v4515_v59  ;;  %v6379_v16 = vadd.f32 2.0, %v2616_v9  ;;  %4520 = vrcp.f32 %v6369_v13  ;;  %v6413_v1 = vmul.f32 2.0, %v6321_v28 }
 0x1f5   :  { %v2692_v5 = vadd.f32 %v6341_v41, %v2691_v22  ;;  %v2884_v55 = vsub.f32 %v6178_v10, %v2672_v26  ;;  %vm2698_vm13 = vcmp.eq.f32.partialorder %v2697_v18, 8.507059e+37  ;;  %v6433_v44 = vmul.f32 %v2686_v6, %v2581_v56  ;;  %v1531_v18 = vld [vmem:[%s9059_s9 + $0x18] sm:$0xff]  ;;  %v1530_v6 = vld [vmem:[%s9059_s9 + $0x10] sm:$0xff] }
 0x1f6   :  { %4197 = vmatmul.msk.f32.gmra.mxu2 %vm116_vm0, %v1054_v23  ;;  %4522 = vrcp.f32 %v6379_v16  ;;  %v1241_v51 = vmul.f32 %v4515_v59, %v1225_v19  ;;  %v2700_v29 = vor.u32 1.1754944e-38, %v2699_v0  ;;  %v2714_v21 = vand.u32 2147483648, %v6343_v53  ;;  %1596 = vmatpush.msra.mxu3 %v1531_v18 }
 0x1f7   :  { %v2696_v54 = vsel %vm6417_vm12, %v6341_v41, %v2692_v5  ;;  %vm2708_vm15 = vweird.f32 %v6343_v53  ;;  %v2712_v30 = vand.u32 2147483647, %v6343_v53  ;;  %v2885_v62 = vsub.f32 %v6210_v48, %v6433_v44 }
 0x1f8   :  { %v6376_v38 = vpop.eup %4516  ;;  %v6424_v23 = vadd.f32 2.0, %v1241_v51  ;;  %v2701_v42 = vsel %vm2698_vm13, %v2700_v29, %v2696_v54  ;;  %v2729_v36 = vand.u32 2147483648, %v6379_v16  ;;  %v2715_v48 = vor.u32 1.1754944e-38, %v2714_v21  ;;  %1597 = vmatpush.msra.mxu3 %v1530_v6 }
 0x1f9   :  { %v2704_v4 = vmul.f32 %v6376_v38, %v6343_v53  ;;  %v4519_v60 = vpop.eup %4518  ;;  %vm2709_vm14 = vweird.f32 %v6376_v38  ;;  %v6461_v39 = vmul.f32 %v2701_v42, %v2582_v61  ;;  %v1281_v22 = vand.u32 2147483647, %v6369_v13 }
 0x1fa   :  { %v2601_v7 = vadd.f32 2.0, %v4519_v60  ;;  %v6421_v37 = vpop.eup %4520  ;;  %vm6456_vm1 = vmor %vm2708_vm15, %vm2709_vm14  ;;  %v1283_v56 = vand.u32 2147483648, %v6369_v13  ;;  %vm2713_vm2 = vcmp.eq.f32.partialorder %v2712_v30, 8.507059e+37  ;;  %v2727_v58 = vand.u32 2147483647, %v6379_v16 }
 0x1fb   :  { %v2705_v33 = vsub.f32 1.0, %v2704_v4  ;;  %v1273_v43 = vmul.f32 %v6421_v37, %v6369_v13  ;;  %vm1278_vm3 = vweird.f32 %v6421_v37  ;;  %vm2723_vm4 = vweird.f32 %v6379_v16 }
 0x1fc   :  { %v2617_v46 = vmul.f32 %v4519_v60, %v2601_v7  ;;  %v6429_v25 = vpop.eup %4522  ;;  %vm1277_vm5 = vweird.f32 %v6369_v13  ;;  %v2886_v26 = vsub.f32 %v6248_v57, %v6461_v39  ;;  %v6484_v60 = vor.u32 1.1754944e-38, %v2729_v36 }
 0x1fd   :  { %v2706_v3 = vmul.f32 %v6376_v38, %v2705_v33  ;;  %v2719_v41 = vmul.f32 %v6429_v25, %v6379_v16  ;;  %v1274_v19 = vsub.f32 1.0, %v1273_v43  ;;  %vm2724_vm6 = vweird.f32 %v6429_v25  ;;  %vm1279_vm7 = vmor %vm1277_vm5, %vm1278_vm3 }
 0x1fe   :  { %4246 = vmatmul.msk.f32.vlgmr.msrb.gmra.mxu2 %vm116_vm0, %v2883_v34  ;;  %v6431_v47 = vadd.f32 2.0, %v2617_v46  ;;  %vm1282_vm8 = vcmp.eq.f32.partialorder %v1281_v22, 8.507059e+37  ;;  %v1284_v61 = vor.u32 1.1754944e-38, %v1283_v56  ;;  %vm6501_vm9 = vcmp.eq.f32.partialorder %v2727_v58, 8.507059e+37  ;;  %vm6524_vm11 = vmor %vm2723_vm4, %vm2724_vm6 }
 0x1ff   :  { %v1134_v49 = vpop.f32.mrf.mxu2  ;;  %v2707_v10 = vadd.f32 %v6376_v38, %v2706_v3  ;;  %v2720_v17 = vsub.f32 1.0, %v2719_v41  ;;  %v1275_v34 = vmul.f32 %v6421_v37, %v1274_v19  ;;  %vm1292_vm14 = vweird.f32 %v6424_v23 }
 0x200   :  { %v6436_v35 = vadd.f32 %v6264_v24, %v1134_v49  ;;  %4524 = vrcp.f32 %v6431_v47  ;;  %vm2738_vm10 = vweird.f32 %v6431_v47  ;;  %v2742_v58 = vand.u32 2147483647, %v6431_v47 }
 0x201   :  { %4526 = vrcp.f32 %v6424_v23  ;;  %v2711_v53 = vsel %vm6456_vm1, %v6376_v38, %v2707_v10  ;;  %v2721_v38 = vmul.f32 %v6429_v25, %v2720_v17  ;;  %v1276_v51 = vadd.f32 %v6421_v37, %v1275_v34  ;;  %v1529_v10 = vld [vmem:[%s9059_s9 + $0x8] sm:$0xff] }
 0x202   :  { %v2520_v52 = vpop.f32.mrf.mxu1  ;;  %v1180_v59 = vmul.f32 1.442695, %v6436_v35  ;;  %v2716_v63 = vsel %vm2713_vm2, %v2715_v48, %v2711_v53  ;;  %1598 = vmatpush.msra.mxu3 %v1529_v10  ;;  %v2744_v48 = vand.u32 2147483648, %v6431_v47  ;;  %vm2743_vm3 = vcmp.eq.f32.partialorder %v2742_v58, 8.507059e+37 }
 0x203   :  { %v6445_v45 = vadd.f32 %v6143_v15, %v2520_v52  ;;  %v6496_v0 = vmul.f32 %v2716_v63, %v6407_v27  ;;  %v1280_v46 = vsel %vm1279_vm7, %v6421_v37, %v1276_v51  ;;  %v2722_v54 = vadd.f32 %v6429_v25, %v2721_v38 }
 0x204   :  { %4528 = vpow2.f32 %v1180_v59  ;;  %v1285_v44 = vsel %vm1282_vm8, %v1284_v61, %v1280_v46  ;;  %v1296_v59 = vand.u32 2147483647, %v6424_v23  ;;  %v2585_v3 = vmul.f32 2.0, %v6350_v8 }
 0x205   :  { %v2561_v32 = vmul.f32 1.442695, %v6445_v45  ;;  %v1286_v37 = vmul.f32 %v1285_v44, %v6402_v50  ;;  %v1528_v50 = vld [vmem:[%s9059_s9] sm:$0xff]  ;;  %v2726_v17 = vsel %vm6524_vm11, %v6429_v25, %v2722_v54 }
 0x206   :  { %4247 = vmatmul.msk.f32.gmra.mxu2 %vm116_vm0, %v2884_v55  ;;  %v6472_v11 = vpop.eup %4524  ;;  %1599 = vmatpush.msra.mxu3 %v1528_v50  ;;  %vm1297_vm2 = vcmp.eq.f32.partialorder %v1296_v59, 8.507059e+37 }
 0x207   :  { %4530 = vpow2.f32 %v2561_v32  ;;  %v6477_v4 = vpop.eup %4526  ;;  %v2734_v5 = vmul.f32 %v6472_v11, %v6431_v47  ;;  %v1298_v32 = vand.u32 2147483648, %v6424_v23  ;;  %vm2739_vm12 = vweird.f32 %v6472_v11 }
 0x208   :  { %v1288_v27 = vmul.f32 %v6477_v4, %v6424_v23  ;;  %vm1293_vm13 = vweird.f32 %v6477_v4  ;;  %vm6564_vm1 = vmor %vm2738_vm10, %vm2739_vm12  ;;  %v2745_v47 = vor.u32 1.1754944e-38, %v2744_v48 }
 0x209   :  { %v2735_v20 = vsub.f32 1.0, %v2734_v5  ;;  %vm1294_vm15 = vmor %vm1292_vm14, %vm1293_vm13  ;;  %v1299_v34 = vor.u32 1.1754944e-38, %v1298_v32 }
 0x20a   :  { %v2523_v40 = vpop.f32.mrf.mxu1  ;;  %v4529_v33 = vpop.eup %4528  ;;  %v1289_v41 = vsub.f32 1.0, %v1288_v27 }
 0x20b   :  { %v6490_v13 = vadd.f32 %v6143_v15, %v2523_v40  ;;  %v1226_v7 = vadd.f32 2.0, %v4529_v33  ;;  %v2736_v21 = vmul.f32 %v6472_v11, %v2735_v20  ;;  %v2731_v40 = vsel %vm6501_vm9, %v6484_v60, %v2726_v17 }
 0x20c   :  { %v1290_v16 = vmul.f32 %v6477_v4, %v1289_v41 }
 0x20d   :  { %v4531_v55 = vpop.eup %4530  ;;  %v2563_v49 = vmul.f32 1.442695, %v6490_v13  ;;  %v1242_v52 = vmul.f32 %v4529_v33, %v1226_v7  ;;  %v2737_v19 = vadd.f32 %v6472_v11, %v2736_v21  ;;  %v6580_v7 = vmul.f32 %v2731_v40, %v6410_v31 }
 0x20e   :  { %4248 = vmatmul.msk.f32.gmra.mxu2 %vm116_vm0, %v2885_v62  ;;  %v2602_v29 = vadd.f32 2.0, %v4531_v55  ;;  %v1512_v62 = vsub.f32 %v6279_v2, %v1286_v37  ;;  %v1291_v22 = vadd.f32 %v6477_v4, %v1290_v16 }
 0x20f   :  { %4532 = vpow2.f32 %v2563_v49  ;;  %v6518_v30 = vadd.f32 2.0, %v1242_v52  ;;  %v2741_v60 = vsel %vm6564_vm1, %v6472_v11, %v2737_v19 }
 0x210   :  { %v2618_v42 = vmul.f32 %v4531_v55, %v2602_v29  ;;  %4198 = vmatmul.msk.f32.vlgmr.msra.gmra.mxu3 %vm116_vm0, %v1512_v62  ;;  %v1295_v18 = vsel %vm1294_vm15, %v6477_v4, %v1291_v22  ;;  %v2746_v39 = vsel %vm2743_vm3, %v2745_v47, %v2741_v60  ;;  %v6596_v55 = vmul.f32 2.0, %v6445_v45 }
 0x211   :  { %v1137_v9 = vpop.f32.mrf.mxu2  ;;  %4534 = vrcp.f32 %v6518_v30  ;;  %v1300_v5 = vsel %vm1297_vm2, %v1299_v34, %v1295_v18  ;;  %v6613_v27 = vmul.f32 %v2746_v39, %v2585_v3  ;;  %v1313_v43 = vand.u32 2147483648, %v6518_v30 }
 0x212   :  { %v6539_v53 = vadd.f32 2.0, %v2618_v42  ;;  %v6543_v2 = vadd.f32 %v6264_v24, %v1137_v9  ;;  %v2526_v36 = vpop.f32.mrf.mxu1  ;;  %v1301_v33 = vmul.f32 %v1300_v5, %v6413_v1  ;;  %v2887_v1 = vsub.f32 %v6287_v14, %v6496_v0 }
 0x213   :  { %v6548_v25 = vadd.f32 %v6143_v15, %v2526_v36  ;;  %v6608_v14 = vmul.f32 2.0, %v6490_v13  ;;  %v2888_v0 = vsub.f32 %v6317_v12, %v6580_v7  ;;  %vm1307_vm4 = vweird.f32 %v6518_v30 }
 0x214   :  { %4536 = vrcp.f32 %v6539_v53  ;;  %v1182_v56 = vmul.f32 1.442695, %v6543_v2  ;;  %v2757_v59 = vand.u32 2147483647, %v6539_v53  ;;  %v2759_v42 = vand.u32 2147483648, %v6539_v53 }
 0x215   :  { %v4533_v63 = vpop.eup %4532  ;;  %v2565_v38 = vmul.f32 1.442695, %v6548_v25  ;;  %v1311_v62 = vand.u32 2147483647, %v6518_v30  ;;  %v6624_v32 = vmul.f32 2.0, %v6543_v2  ;;  %v6627_v9 = vmul.f32 2.0, %v6548_v25 }
 0x216   :  { %4249 = vmatmul.msk.f32.gmra.mxu2 %vm116_vm0, %v2886_v26  ;;  %v2603_v51 = vadd.f32 2.0, %v4533_v63  ;;  %4538 = vpow2.f32 %v1182_v56  ;;  %v1513_v26 = vsub.f32 %v6321_v28, %v1301_v33  ;;  %v6599_v28 = vmul.f32 2.0, %v6436_v35 }
 0x217   :  { %4540 = vpow2.f32 %v2565_v38  ;;  %v6577_v61 = vpop.eup %4534  ;;  %v2889_v16 = vsub.f32 %v6350_v8, %v6613_v27  ;;  %vm2753_vm5 = vweird.f32 %v6539_v53  ;;  %vm6637_vm7 = vcmp.eq.f32.partialorder %v2757_v59, 8.507059e+37 }
 0x218   :  { %v2619_v4 = vmul.f32 %v4533_v63, %v2603_v51  ;;  %v1303_v6 = vmul.f32 %v6577_v61, %v6518_v30  ;;  %4199 = vmatmul.msk.f32.gmra.mxu3 %vm116_vm0, %v1513_v26  ;;  %vm1308_vm6 = vweird.f32 %v6577_v61  ;;  %v2760_v34 = vor.u32 1.1754944e-38, %v2759_v42 }
 0x219   :  { %v1140_v57 = vpop.f32.mrf.mxu2  ;;  %v1314_v63 = vor.u32 1.1754944e-38, %v1313_v43  ;;  %vm6648_vm9 = vcmp.eq.f32.partialorder %v1311_v62, 8.507059e+37  ;;  %vm6688_vm14 = vmor %vm1307_vm4, %vm1308_vm6 }
 0x21a   :  { %v6585_v11 = vpop.eup %4536  ;;  %v6588_v46 = vadd.f32 2.0, %v2619_v4  ;;  %v6593_v31 = vadd.f32 %v6264_v24, %v1140_v57  ;;  %v2529_v20 = vpop.f32.mrf.mxu1  ;;  %v1304_v21 = vsub.f32 1.0, %v1303_v6 }
 0x21b   :  { %v6602_v49 = vadd.f32 %v6143_v15, %v2529_v20  ;;  %v2749_v54 = vmul.f32 %v6585_v11, %v6539_v53  ;;  %vm2754_vm8 = vweird.f32 %v6585_v11 }
 0x21c   :  { %v4539_v44 = vpop.eup %4538  ;;  %4542 = vrcp.f32 %v6588_v46  ;;  %v1184_v10 = vmul.f32 1.442695, %v6593_v31  ;;  %v1305_v36 = vmul.f32 %v6577_v61, %v1304_v21  ;;  %vm2768_vm10 = vweird.f32 %v6588_v46  ;;  %vm6672_vm12 = vmor %vm2753_vm5, %vm2754_vm8 }
 0x21d   :  { %v4541_v29 = vpop.eup %4540  ;;  %v1227_v52 = vadd.f32 2.0, %v4539_v44  ;;  %v2567_v37 = vmul.f32 1.442695, %v6602_v49  ;;  %v2750_v12 = vsub.f32 1.0, %v2749_v54  ;;  %v2772_v51 = vand.u32 2147483647, %v6588_v46 }
 0x21e   :  { %4250 = vmatmul.msk.f32.gmra.mxu2 %vm116_vm0, %v2887_v1  ;;  %v2604_v41 = vadd.f32 2.0, %v4541_v29  ;;  %4544 = vpow2.f32 %v1184_v10  ;;  %v2774_v60 = vand.u32 2147483648, %v6588_v46  ;;  %v1306_v57 = vadd.f32 %v6577_v61, %v1305_v36 }
 0x21f   :  { %v1243_v50 = vmul.f32 %v4539_v44, %v1227_v52  ;;  %4546 = vpow2.f32 %v2567_v37  ;;  %v2751_v56 = vmul.f32 %v6585_v11, %v2750_v12  ;;  %v6662_v26 = vmul.f32 2.0, %v6593_v31 }
 0x220   :  { %v2620_v17 = vmul.f32 %v4541_v29, %v2604_v41  ;;  %vm6676_vm13 = vcmp.eq.f32.partialorder %v2772_v51, 8.507059e+37  ;;  %v1310_v21 = vsel %vm6688_vm14, %v6577_v61, %v1306_v57  ;;  %v2775_v30 = vor.u32 1.1754944e-38, %v2774_v60 }
 0x221   :  { %v6642_v40 = vadd.f32 2.0, %v1243_v50  ;;  %v2752_v3 = vadd.f32 %v6585_v11, %v2751_v56  ;;  %v6704_v43 = vmul.f32 2.0, %v6602_v49 }
 0x222   :  { %v4543_v19 = vpop.eup %4542  ;;  %v6634_v48 = vadd.f32 2.0, %v2620_v17  ;;  %v2532_v22 = vpop.f32.mrf.mxu1 }
 0x223   :  { %v2764_v38 = vmul.f32 %v4543_v19, %v6588_v46  ;;  %v6645_v23 = vadd.f32 %v6143_v15, %v2532_v22  ;;  %vm2769_vm11 = vweird.f32 %v4543_v19  ;;  %v2756_v52 = vsel %vm6672_vm12, %v6585_v11, %v2752_v3 }
 0x224   :  { %4548 = vrcp.f32 %v6634_v48  ;;  %v1143_v5 = vpop.f32.mrf.mxu2  ;;  %v4545_v47 = vpop.eup %4544  ;;  %vm6698_vm15 = vmor %vm2768_vm10, %vm2769_vm11  ;;  %v2789_v59 = vand.u32 2147483648, %v6634_v48  ;;  %v2761_v46 = vsel %vm6637_vm7, %v2760_v34, %v2756_v52  ;;  %vm2783_vm1 = vweird.f32 %v6634_v48 }
 0x225   :  { %v2765_v33 = vsub.f32 1.0, %v2764_v38  ;;  %v6657_v4 = vadd.f32 %v6264_v24, %v1143_v5  ;;  %v2569_v7 = vmul.f32 1.442695, %v6645_v23  ;;  %v4547_v39 = vpop.eup %4546  ;;  %v1228_v6 = vadd.f32 2.0, %v4545_v47 }
 0x226   :  { %4251 = vmatmul.msk.f32.gmra.mxu2 %vm116_vm0, %v2888_v0  ;;  %4550 = vrcp.f32 %v6642_v40  ;;  %v2605_v20 = vadd.f32 2.0, %v4547_v39  ;;  %v2787_v0 = vand.u32 2147483647, %v6634_v48  ;;  %v6715_v17 = vmul.f32 2.0, %v6645_v23 }
 0x227   :  { %v2766_v1 = vmul.f32 %v4543_v19, %v2765_v33  ;;  %v1186_v54 = vmul.f32 1.442695, %v6657_v4  ;;  %4552 = vpow2.f32 %v2569_v7  ;;  %v1244_v42 = vmul.f32 %v4545_v47, %v1228_v6 }
 0x228   :  { %v2621_v37 = vmul.f32 %v4547_v39, %v2605_v20  ;;  %v1315_v22 = vsel %vm6648_vm9, %v1314_v63, %v1310_v21  ;;  %vm6726_vm2 = vcmp.eq.f32.partialorder %v2787_v0, 8.507059e+37  ;;  %v2790_v51 = vor.u32 1.1754944e-38, %v2789_v59 }
 0x229   :  { %v2767_v10 = vadd.f32 %v4543_v19, %v2766_v1  ;;  %4554 = vpow2.f32 %v1186_v54  ;;  %v6731_v60 = vadd.f32 2.0, %v1244_v42  ;;  %v1316_v33 = vmul.f32 %v1315_v22, %v6599_v28 }
 0x22a   :  { %v4549_v41 = vpop.eup %4548  ;;  %v2535_v50 = vpop.f32.mrf.mxu1  ;;  %v6709_v62 = vadd.f32 2.0, %v2621_v37  ;;  %v6758_v3 = vmul.f32 2.0, %v6657_v4  ;;  %vm1322_vm6 = vweird.f32 %v6642_v40 }
 0x22b   :  { %v2771_v12 = vsel %vm6698_vm15, %v4543_v19, %v2767_v10  ;;  %v2779_v61 = vmul.f32 %v4549_v41, %v6634_v48  ;;  %v6718_v36 = vadd.f32 %v6143_v15, %v2535_v50  ;;  %v2762_v15 = vmul.f32 %v2761_v46, %v6596_v55 }
 0x22c   :  { %v6722_v56 = vpop.eup %4550  ;;  %v2776_v19 = vsel %vm6676_vm13, %v2775_v30, %v2771_v12  ;;  %4556 = vrcp.f32 %v6709_v62  ;;  %vm2784_vm3 = vweird.f32 %v4549_v41  ;;  %v1514_v6 = vsub.f32 %v6436_v35, %v1316_v33  ;;  %v6785_v30 = vld [vmem:[%s9064_s14] ss:$0 sm:$0xff] }
 0x22d   :  { %v2780_v38 = vsub.f32 1.0, %v2779_v61  ;;  %v4553_v34 = vpop.eup %4552  ;;  %v2571_v63 = vmul.f32 1.442695, %v6718_v36  ;;  %v6741_v7 = vmul.f32 %v2776_v19, %v6608_v14  ;;  %v1318_v8 = vmul.f32 %v6722_v56, %v6642_v40  ;;  %vm6751_vm4 = vmor %vm2783_vm1, %vm2784_vm3 }
 0x22e   :  { %4252 = vmatmul.msk.f32.gmra.mxu2 %vm116_vm0, %v2889_v16  ;;  %v2606_v47 = vadd.f32 2.0, %v4553_v34  ;;  %v2804_v14 = vand.u32 2147483648, %v6709_v62  ;;  %v2890_v1 = vsub.f32 %v6445_v45, %v2762_v15  ;;  %v2802_v48 = vand.u32 2147483647, %v6709_v62  ;;  %4200 = vmatmul.msk.f32.gmra.mxu3 %vm116_vm0, %v1514_v6 }
 0x22f   :  { %v4555_v18 = vpop.eup %4554  ;;  %v2781_v5 = vmul.f32 %v4549_v41, %v2780_v38  ;;  %4558 = vpow2.f32 %v2571_v63  ;;  %vm2798_vm5 = vweird.f32 %v6709_v62  ;;  %v6774_v52 = vmul.f32 2.0, %v6718_v36 }
 0x230   :  { %v1229_v57 = vadd.f32 2.0, %v4555_v18  ;;  %v1146_v39 = vpop.f32.mrf.mxu2  ;;  %v2622_v16 = vmul.f32 %v4553_v34, %v2606_v47  ;;  %4560 = vrcp.f32 %v6731_v60  ;;  %v2891_v53 = vsub.f32 %v6490_v13, %v6741_v7 }
 0x231   :  { %v2782_v27 = vadd.f32 %v4549_v41, %v2781_v5  ;;  %v6746_v55 = vadd.f32 %v6264_v24, %v1146_v39  ;;  %v1319_v37 = vsub.f32 1.0, %v1318_v8  ;;  %v2805_v11 = vor.u32 1.1754944e-38, %v2804_v14 }
 0x232   :  { %v6761_v20 = vpop.eup %4556  ;;  %v6766_v54 = vadd.f32 2.0, %v2622_v16  ;;  %v2538_v29 = vpop.f32.mrf.mxu1  ;;  %v1245_v45 = vmul.f32 %v4555_v18, %v1229_v57  ;;  %vm6791_vm7 = vcmp.eq.f32.partialorder %v2802_v48, 8.507059e+37  ;;  %vm1323_vm8 = vweird.f32 %v6722_v56 }
 0x233   :  { %v2786_v35 = vsel %vm6751_vm4, %v4549_v41, %v2782_v27  ;;  %v1188_v44 = vmul.f32 1.442695, %v6746_v55  ;;  %v2794_v0 = vmul.f32 %v6761_v20, %v6709_v62  ;;  %v6788_v59 = vadd.f32 %v6785_v30, %v2538_v29  ;;  %vm1324_vm13 = vmor %vm1322_vm6, %vm1323_vm8 }
 0x234   :  { %v2791_v10 = vsel %vm6726_vm2, %v2790_v51, %v2786_v35  ;;  %4562 = vrcp.f32 %v6766_v54  ;;  %v6796_v42 = vmul.f32 2.0, %v6746_v55  ;;  %v6805_v22 = vadd.f32 2.0, %v1245_v45 }
 0x235   :  { %v4559_v21 = vpop.eup %4558  ;;  %v2795_v41 = vsub.f32 1.0, %v2794_v0  ;;  %4564 = vpow2.f32 %v1188_v44  ;;  %v6802_v61 = vmul.f32 %v2791_v10, %v6627_v9  ;;  %v2573_v19 = vmul.f32 1.442695, %v6788_v59 }
 0x236   :  { %4253 = vmatmul.msk.f32.gmra.mxu2 %vm116_vm0, %v2890_v1  ;;  %v2607_v50 = vadd.f32 2.0, %v4559_v21  ;;  %v6799_v12 = vpop.eup %4560  ;;  %vm2799_vm9 = vweird.f32 %v6761_v20  ;;  %v2817_v38 = vand.u32 2147483647, %v6766_v54  ;;  %v1320_v51 = vmul.f32 %v6722_v56, %v1319_v37 }
 0x237   :  { %v2796_v46 = vmul.f32 %v6761_v20, %v2795_v41  ;;  %vm2813_vm10 = vweird.f32 %v6766_v54  ;;  %v2819_v9 = vand.u32 2147483648, %v6766_v54  ;;  %4566 = vpow2.f32 %v2573_v19  ;;  %vm6828_vm11 = vmor %vm2798_vm5, %vm2799_vm9 }
 0x238   :  { %v2623_v58 = vmul.f32 %v4559_v21, %v2607_v50  ;;  %v1321_v47 = vadd.f32 %v6722_v56, %v1320_v51  ;;  %v1326_v33 = vand.u32 2147483647, %v6642_v40  ;;  %v1328_v7 = vand.u32 2147483648, %v6642_v40 }
 0x239   :  { %v1149_v34 = vpop.f32.mrf.mxu2  ;;  %v2797_v15 = vadd.f32 %v6761_v20, %v2796_v46  ;;  %v2892_v57 = vsub.f32 %v6548_v25, %v6802_v61  ;;  %4568 = vrcp.f32 %v6805_v22  ;;  %vm6838_vm12 = vcmp.eq.f32.partialorder %v2817_v38, 8.507059e+37 }
 0x23a   :  { %v6815_v63 = vadd.f32 %v6264_v24, %v1149_v34  ;;  %v4563_v18 = vpop.eup %4562  ;;  %v6817_v5 = vadd.f32 2.0, %v2623_v58  ;;  %v1333_v62 = vmul.f32 %v6799_v12, %v6731_v60  ;;  %v2820_v14 = vor.u32 1.1754944e-38, %v2819_v9 }
 0x23b   :  { %v2809_v8 = vmul.f32 %v4563_v18, %v6766_v54  ;;  %v4565_v16 = vpop.eup %4564  ;;  %v2801_v6 = vsel %vm6828_vm11, %v6761_v20, %v2797_v15  ;;  %v6847_v35 = vmul.f32 2.0, %v6788_v59  ;;  %v2541_v20 = vpop.f32.mrf.mxu1  ;;  %v1325_v48 = vsel %vm1324_vm13, %v6722_v56, %v1321_v47 }
 0x23c   :  { %v1190_v27 = vmul.f32 1.442695, %v6815_v63  ;;  %4570 = vrcp.f32 %v6817_v5  ;;  %v1230_v1 = vadd.f32 2.0, %v4565_v16  ;;  %vm1327_vm14 = vcmp.eq.f32.partialorder %v1326_v33, 8.507059e+37 }
 0x23d   :  { %v2810_v28 = vsub.f32 1.0, %v2809_v8  ;;  %v1329_v44 = vor.u32 1.1754944e-38, %v1328_v7  ;;  %v4567_v29 = vpop.eup %4566  ;;  %v2806_v0 = vsel %vm6791_vm7, %v2805_v11, %v2801_v6  ;;  %vm2814_vm15 = vweird.f32 %v4563_v18 }
 0x23e   :  { %4254 = vmatmul.msk.f32.gmra.mxu2 %vm116_vm0, %v2891_v53  ;;  %4572 = vpow2.f32 %v1190_v27  ;;  %v1246_v53 = vmul.f32 %v4565_v16, %v1230_v1  ;;  %v2608_v10 = vadd.f32 2.0, %v4567_v29  ;;  %v6857_v41 = vadd.f32 %v6785_v30, %v2541_v20  ;;  %vm2815_vm1 = vmor %vm2813_vm10, %vm2814_vm15 }
 0x23f   :  { %v2811_v45 = vmul.f32 %v4563_v18, %v2810_v28  ;;  %v1330_v37 = vsel %vm1327_vm14, %v1329_v44, %v1325_v48  ;;  %v1334_v40 = vsub.f32 1.0, %v1333_v62  ;;  %v6859_v50 = vpop.eup %4568  ;;  %v2807_v19 = vmul.f32 %v2806_v0, %v6704_v43  ;;  %v6918_v48 = vld [vmem:[%s9058_s8] ss:$0 sm:$0xff] }
 0x240   :  { %v6861_v56 = vadd.f32 2.0, %v1246_v53  ;;  %v1331_v46 = vmul.f32 %v1330_v37, %v6624_v32  ;;  %v2832_v38 = vand.u32 2147483647, %v6817_v5  ;;  %v2834_v58 = vand.u32 2147483648, %v6817_v5 }
 0x241   :  { %v1152_v21 = vpop.f32.mrf.mxu2  ;;  %v2812_v61 = vadd.f32 %v4563_v18, %v2811_v45  ;;  %v2624_v34 = vmul.f32 %v4567_v29, %v2608_v10  ;;  %v2575_v9 = vmul.f32 1.442695, %v6857_v41  ;;  %v1335_v32 = vmul.f32 %v6799_v12, %v1334_v40 }
 0x242   :  { %v6865_v13 = vadd.f32 %v6264_v24, %v1152_v21  ;;  %v4571_v11 = vpop.eup %4570  ;;  %v1515_v54 = vsub.f32 %v6543_v2, %v1331_v46  ;;  %4574 = vrcp.f32 %v6861_v56  ;;  %vm2828_vm2 = vweird.f32 %v6817_v5 }
 0x243   :  { %v2816_v51 = vsel %vm2815_vm1, %v4563_v18, %v2812_v61  ;;  %v2824_v15 = vmul.f32 %v4571_v11, %v6817_v5  ;;  %v6877_v43 = vadd.f32 2.0, %v2624_v34  ;;  %vm2829_vm3 = vweird.f32 %v4571_v11 }
 0x244   :  { %v4573_v24 = vpop.eup %4572  ;;  %v2821_v47 = vsel %vm6838_vm12, %v2820_v14, %v2816_v51  ;;  %v1192_v33 = vmul.f32 1.442695, %v6865_v13  ;;  %vm6884_vm4 = vcmp.eq.f32.partialorder %v2832_v38, 8.507059e+37  ;;  %v6889_v8 = vmul.f32 2.0, %v6815_v63  ;;  %4201 = vmatmul.msk.f32.gmra.mxu3 %vm116_vm0, %v1515_v54  ;;  %vm6901_vm5 = vmor %vm2828_vm2, %vm2829_vm3 }
 0x245   :  { %v2825_v7 = vsub.f32 1.0, %v2824_v15  ;;  %v1231_v18 = vadd.f32 2.0, %v4573_v24  ;;  %4576 = vrcp.f32 %v6877_v43  ;;  %v2893_v2 = vsub.f32 %v6602_v49, %v2807_v19  ;;  %v2544_v19 = vpop.f32.mrf.mxu1 }
 0x246   :  { %4255 = vmatmul.msk.f32.gmra.mxu2 %vm116_vm0, %v2892_v57  ;;  %v6895_v27 = vmul.f32 %v2821_v47, %v6715_v17  ;;  %4578 = vpow2.f32 %v1192_v33  ;;  %v2835_v57 = vor.u32 1.1754944e-38, %v2834_v58  ;;  %v1336_v25 = vadd.f32 %v6799_v12, %v1335_v32 }
 0x247   :  { %v2826_v16 = vmul.f32 %v4571_v11, %v2825_v7  ;;  %v1247_v6 = vmul.f32 %v4573_v24, %v1231_v18  ;;  %4580 = vpow2.f32 %v2575_v9  ;;  %v2847_v49 = vand.u32 2147483647, %v6877_v43 }
 0x248   :  { %vm1337_vm6 = vweird.f32 %v6731_v60  ;;  %vm1338_vm7 = vweird.f32 %v6799_v12  ;;  %v2849_v17 = vand.u32 2147483648, %v6877_v43  ;;  %v1341_v20 = vand.u32 2147483647, %v6731_v60  ;;  %v6923_v29 = vpop.eup %4574 }
 0x249   :  { %v1155_v62 = vpop.f32.mrf.mxu2  ;;  %v2827_v28 = vadd.f32 %v4571_v11, %v2826_v16  ;;  %vm6909_vm8 = vmor %vm1337_vm6, %vm1338_vm7  ;;  %v1343_v5 = vand.u32 2147483648, %v6731_v60  ;;  %v2894_v0 = vsub.f32 %v6645_v23, %v6895_v27  ;;  %v3845_v53 = vlaneseq  ;;  %v6940_v23 = vld [vmem:[%s9208_s6] ss:$0 sm:$0xff]  ;;  %s4141_s6 = sshll.u32 %s9069_s19, 4  ;;  %s4142_s6 = int_to_ptr.hbm [resolvable:$true] %s4141_s6 }
 0x24a   :  { %v6921_v44 = vadd.f32 %v6918_v48, %v1155_v62  ;;  %v1340_v60 = vsel %vm6909_vm8, %v6799_v12, %v1336_v25  ;;  %v6934_v21 = vadd.f32 2.0, %v1247_v6  ;;  %9209 = vst [vmem:[#allocation10_spill] sm:$0xff] %v6940_v23  ;;  %vm1342_vm9 = vcmp.eq.f32.partialorder %v1341_v20, 8.507059e+37 }
 0x24b   :  { %v2831_v45 = vsel %vm6901_vm5, %v4571_v11, %v2827_v28  ;;  %v4577_v10 = vpop.eup %4576  ;;  %v1344_v40 = vor.u32 1.1754944e-38, %v1343_v5  ;;  %v6947_v51 = vshrl.u32 %v3845_v53, 7  ;;  %vm3938_vm12 = vcmask 1043456  }
 0x24c   :  { %v2836_v37 = vsel %vm6884_vm4, %v2835_v57, %v2831_v45  ;;  %v1194_v61 = vmul.f32 1.442695, %v6921_v44  ;;  %v4579_v46 = vpop.eup %4578  ;;  %v2839_v12 = vmul.f32 %v4577_v10, %v6877_v43  ;;  %vm2844_vm10 = vweird.f32 %v4577_v10 }
 0x24d   :  { %v6943_v11 = vmul.f32 %v2836_v37, %v6774_v52  ;;  %v4581_v38 = vpop.eup %4580  ;;  %v1232_v58 = vadd.f32 2.0, %v4579_v46  ;;  %v1345_v34 = vsel %vm1342_vm9, %v1344_v40, %v1340_v60  ;;  %9210 = vst [vmem:[#allocation11_spill] sm:$0xff] %v6947_v51  ;;  %vm9111_vm11 = vcmp.eq.s32.totalorder %v6947_v51, %v6940_v23 }
 0x24e   :  { %4256 = vmatmul.msk.f32.gmra.mxu2 %vm116_vm0, %v2893_v2  ;;  %4582 = vpow2.f32 %v1194_v61  ;;  %v2840_v15 = vsub.f32 1.0, %v2839_v12  ;;  %v2609_v9 = vadd.f32 2.0, %v4581_v38  ;;  %v1346_v32 = vmul.f32 %v1345_v34, %v6662_v26 }
 0x24f   :  { %v1248_v24 = vmul.f32 %v4579_v46, %v1232_v58  ;;  %v6953_v52 = vadd.f32 %v6785_v30, %v2544_v19  ;;  %v9075_v18 = vmov 0.0   ;;  %vm2843_vm13 = vweird.f32 %v6877_v43 }
 0x250   :  { %v2841_v54 = vmul.f32 %v4577_v10, %v2840_v15  ;;  %v2625_v33 = vmul.f32 %v4581_v38, %v2609_v9  ;;  %v1516_v7 = vsub.f32 %v6593_v31, %v1346_v32  ;;  %v4278_v39 = vsel %vm9111_vm11, 1.0, %v9075_v18  ;;  %vm2845_vm14 = vmor %vm2843_vm13, %vm2844_vm10 }
 0x251   :  { %v1158_v47 = vpop.f32.mrf.mxu2  ;;  %v6962_v26 = vmul.f32 2.0, %v6857_v41  ;;  %v3939_v2 = vsel %vm3938_vm12, %v4278_v39, 0.0  ;;  %v2577_v30 = vmul.f32 1.442695, %v6953_v52  ;;  %v6965_v16 = vadd.f32 2.0, %v1248_v24 }
 0x252   :  { %v2842_v27 = vadd.f32 %v4577_v10, %v2841_v54  ;;  %v6967_v57 = vadd.f32 2.0, %v2625_v33  ;;  %4202 = vmatmul.msk.f32.gmra.mxu3 %vm116_vm0, %v1516_v7  ;;  %3940 = vadd.xlane.f32.xlu0 %v3939_v2  ;;  %v1348_v31 = vmul.f32 %v6859_v50, %v6805_v22  ;;  %4584 = vrcp.f32 %v6934_v21 }
 0x253   :  { %vm2848_vm15 = vcmp.eq.f32.partialorder %v2847_v49, 8.507059e+37  ;;  %v2850_v43 = vor.u32 1.1754944e-38, %v2849_v17  ;;  %v6975_v25 = vmul.f32 2.0, %v6865_v13  ;;  %v2895_v62 = vsub.f32 %v6718_v36, %v6943_v11 }
 0x254   :  { %v4583_v6 = vpop.eup %4582  ;;  %v2846_v28 = vsel %vm2845_vm14, %v4577_v10, %v2842_v27  ;;  %4586 = vrcp.f32 %v6967_v57  ;;  %v1356_v14 = vand.u32 2147483647, %v6805_v22  ;;  %v1358_v5 = vand.u32 2147483648, %v6805_v22 }
 0x255   :  { %v2851_v1 = vsel %vm2848_vm15, %v2850_v43, %v2846_v28  ;;  %v1233_v20 = vadd.f32 2.0, %v4583_v6  ;;  %4588 = vpow2.f32 %v2577_v30  ;;  %v1349_v17 = vsub.f32 1.0, %v1348_v31 }
 0x256   :  { %4257 = vmatmul.msk.f32.gmra.mxu2 %vm116_vm0, %v2894_v0  ;;  %v6984_v49 = vmul.f32 %v2851_v1, %v6847_v35  ;;  %4590 = vrcp.f32 %v6965_v16  ;;  %vm1352_vm1 = vweird.f32 %v6805_v22  ;;  %v2862_v36 = vand.u32 2147483647, %v6967_v57  ;;  %v92_v22 = vld [vmem:[%s9213_s1] sm:$0xff] }
 0x257   :  { %v1249_v45 = vmul.f32 %v4583_v6, %v1233_v20  ;;  %vm1353_vm2 = vweird.f32 %v6859_v50  ;;  %v6991_v0 = vadd.f32 %v6918_v48, %v1158_v47  ;;  %v2864_v53 = vand.u32 2147483648, %v6967_v57 }
 0x258   :  { %v1350_v10 = vmul.f32 %v6859_v50, %v1349_v17  ;;  %vm6995_vm3 = vcmp.eq.f32.partialorder %v1356_v14, 8.507059e+37  ;;  %v1363_v37 = vmul.f32 %v6923_v29, %v6861_v56  ;;  %v7001_v40 = vpop.eup %4584  ;;  %v2896_v61 = vsub.f32 %v6788_v59, %v6984_v49  ;;  %vm1354_vm6 = vmor %vm1352_vm1, %vm1353_vm2 }
 0x259   :  { %v1161_v60 = vpop.f32.mrf.mxu2  ;;  %vm2858_vm4 = vweird.f32 %v6967_v57  ;;  %v1359_v46 = vor.u32 1.1754944e-38, %v1358_v5  ;;  %v1196_v11 = vmul.f32 1.442695, %v6991_v0  ;;  %vm1367_vm5 = vweird.f32 %v6861_v56 }
 0x25a   :  { %v4587_v12 = vpop.eup %4586  ;;  %v7008_v19 = vadd.f32 2.0, %v1249_v45  ;;  %v1351_v38 = vadd.f32 %v6859_v50, %v1350_v10  ;;  %v1364_v58 = vsub.f32 1.0, %v1363_v37  ;;  %v1371_v34 = vand.u32 2147483647, %v6861_v56 }
 0x25b   :  { %v4589_v15 = vpop.eup %4588  ;;  %v2854_v9 = vmul.f32 %v4587_v12, %v6967_v57  ;;  %vm1368_vm7 = vweird.f32 %v6923_v29  ;;  %v1373_v32 = vand.u32 2147483648, %v6861_v56  ;;  %v7020_v24 = vadd.f32 %v6918_v48, %v1161_v60 }
 0x25c   :  { %v7022_v47 = vpop.eup %4590  ;;  %v2610_v54 = vadd.f32 2.0, %v4589_v15  ;;  %v1355_v33 = vsel %vm1354_vm6, %v6859_v50, %v1351_v38  ;;  %4592 = vpow2.f32 %v1196_v11  ;;  %v1365_v7 = vmul.f32 %v6923_v29, %v1364_v58  ;;  %vm1369_vm10 = vmor %vm1367_vm5, %vm1368_vm7 }
 0x25d   :  { %v2855_v39 = vsub.f32 1.0, %v2854_v9  ;;  %vm2859_vm8 = vweird.f32 %v4587_v12  ;;  %v1360_v2 = vsel %vm6995_vm3, %v1359_v46, %v1355_v33  ;;  %vm7032_vm9 = vcmp.eq.f32.partialorder %v1371_v34, 8.507059e+37 }
 0x25e   :  { %4258 = vmatmul.msk.f32.gmra.mxu2 %vm116_vm0, %v2895_v62  ;;  %v2626_v27 = vmul.f32 %v4589_v15, %v2610_v54  ;;  %v1361_v50 = vmul.f32 %v1360_v2, %v6758_v3  ;;  %v1366_v31 = vadd.f32 %v6923_v29, %v1365_v7  ;;  %v1198_v6 = vmul.f32 1.442695, %v7020_v24  ;;  %vm2860_vm14 = vmor %vm2858_vm4, %vm2859_vm8 }
 0x25f   :  { %v2856_v43 = vmul.f32 %v4587_v12, %v2855_v39  ;;  %v1374_v62 = vor.u32 1.1754944e-38, %v1373_v32  ;;  %vm3945_vm12 = vcmp.gt.f32.partialorder %v92_v22, 0.0  ;;  %v4847_v3 = vmov 0  }
 0x260   :  { %v7043_v14 = vadd.f32 2.0, %v2626_v27  ;;  %v1517_v1 = vsub.f32 %v6657_v4, %v1361_v50  ;;  %v1370_v20 = vsel %vm1369_vm10, %v6923_v29, %v1366_v31  ;;  %4594 = vpow2.f32 %v1198_v6  ;;  %4287 = vset.pattern.permute.xlu0 %v4847_v3  ;;  %4288 = vset.pattern.permute.xlu1 %v4847_v3 }
 0x261   :  { %v1164_v28 = vpop.f32.mrf.mxu2  ;;  %v2857_v5 = vadd.f32 %v4587_v12, %v2856_v43  ;;  %vm2863_vm13 = vcmp.eq.f32.partialorder %v2862_v36, 8.507059e+37  ;;  %v1375_v56 = vsel %vm7032_vm9, %v1374_v62, %v1370_v20  ;;  %v1378_v17 = vmul.f32 %v7001_v40, %v6934_v21  ;;  %4289 = vset.pattern.permute.xlu2 %v4847_v3  ;;  %v94_v62 = vld [vmem:[%s9213_s1 + $0x10] sm:$0xff] }
 0x262   :  { %v4593_v45 = vpop.eup %4592  ;;  %v2865_v4 = vor.u32 1.1754944e-38, %v2864_v53  ;;  %4596 = vrcp.f32 %v7043_v14  ;;  %v2879_v29 = vand.u32 2147483648, %v7043_v14  ;;  %4203 = vmatmul.msk.f32.gmra.mxu3 %vm116_vm0, %v1517_v1  ;;  %v3961_v36 = vsel %vm3945_vm12, 1, %v4847_v3 }
 0x263   :  { %v2861_v60 = vsel %vm2860_vm14, %v4587_v12, %v2857_v5  ;;  %v1234_v10 = vadd.f32 2.0, %v4593_v45  ;;  %v1376_v35 = vmul.f32 %v1375_v56, %v6796_v42  ;;  %v1379_v37 = vsub.f32 1.0, %v1378_v17 }
 0x264   :  { %v2866_v46 = vsel %vm2863_vm13, %v2865_v4, %v2861_v60  ;;  %4598 = vrcp.f32 %v7008_v19  ;;  %v7065_v57 = vmul.f32 2.0, %v6953_v52  ;;  %v2877_v53 = vand.u32 2147483647, %v7043_v14 }
 0x265   :  { %v2867_v11 = vmul.f32 %v2866_v46, %v6962_v26  ;;  %v1250_v12 = vmul.f32 %v4593_v45, %v1234_v10  ;;  %v1518_v38 = vsub.f32 %v6746_v55, %v1376_v35  ;;  %v1380_v42 = vmul.f32 %v7001_v40, %v1379_v37  ;;  %v93_v55 = vld [vmem:[%s9213_s1 + $0x8] sm:$0xff] }
 0x266   :  { %4259 = vmatmul.msk.f32.gmra.mxu2 %vm116_vm0, %v2896_v61  ;;  %v4595_v58 = vpop.eup %4594  ;;  %3978 = vperm.xlu0 %4287, %v3961_v36   ;;  %vm1383_vm15 = vweird.f32 %v7001_v40  ;;  %v1386_v34 = vand.u32 2147483647, %v6934_v21  ;;  %v1388_v15 = vand.u32 2147483648, %v6934_v21  ;;  %v7079_v9 = vadd.f32 %v6918_v48, %v1164_v28 }
 0x267   :  { %vm2873_vm1 = vweird.f32 %v7043_v14  ;;  %v2880_v59 = vor.u32 1.1754944e-38, %v2879_v29  ;;  %v1235_v26 = vadd.f32 2.0, %v4595_v58  ;;  %v1381_v49 = vadd.f32 %v7001_v40, %v1380_v42 }
 0x268   :  { %v4597_v32 = vpop.eup %4596  ;;  %v2897_v54 = vsub.f32 %v6857_v41, %v2867_v11  ;;  %v7087_v33 = vadd.f32 2.0, %v1250_v12  ;;  %vm1382_vm2 = vweird.f32 %v6934_v21  ;;  %v1200_v7 = vmul.f32 1.442695, %v7079_v9 }
 0x269   :  { %v1167_v61 = vpop.f32.mrf.mxu2  ;;  %v2869_v22 = vmul.f32 %v4597_v32, %v7043_v14  ;;  %vm7092_vm3 = vcmp.eq.f32.partialorder %v2877_v53, 8.507059e+37  ;;  %v1251_v2 = vmul.f32 %v4595_v58, %v1235_v26  ;;  %vm1384_vm4 = vmor %vm1382_vm2, %vm1383_vm15  ;;  %vm1387_vm5 = vcmp.eq.f32.partialorder %v1386_v34, 8.507059e+37 }
 0x26a   :  { %v1389_v30 = vor.u32 1.1754944e-38, %v1388_v15  ;;  %v7098_v27 = vpop.eup %4598  ;;  %4204 = vmatmul.msk.f32.gmra.mxu3 %vm116_vm0, %v1518_v38  ;;  %v1385_v41 = vsel %vm1384_vm4, %v7001_v40, %v1381_v49  ;;  %4600 = vpow2.f32 %v1200_v7  ;;  %vm3946_vm6 = vcmp.gt.f32.partialorder %v93_v55, 0.0 }
 0x26b   :  { %v1393_v21 = vmul.f32 %v7022_v47, %v6965_v16  ;;  %v2870_v50 = vsub.f32 1.0, %v2869_v22  ;;  %v7104_v31 = vadd.f32 2.0, %v1251_v2  ;;  %v3962_v43 = vsel %vm3946_vm6, 1, %v4847_v3 }
 0x26c   :  { %v1390_v6 = vsel %vm1387_vm5, %v1389_v30, %v1385_v41  ;;  %vm2874_vm7 = vweird.f32 %v4597_v32  ;;  %4602 = vrcp.f32 %v7087_v33  ;;  %3981 = vperm.xlu1 %4288, %v3962_v43   ;;  %vm1398_vm8 = vweird.f32 %v7022_v47 }
 0x26d   :  { %v1391_v40 = vmul.f32 %v1390_v6, %v6889_v8  ;;  %v1394_v28 = vsub.f32 1.0, %v1393_v21  ;;  %v2871_v1 = vmul.f32 %v4597_v32, %v2870_v50  ;;  %v1401_v20 = vand.u32 2147483647, %v6965_v16  ;;  %vm2875_vm13 = vmor %vm2873_vm1, %vm2874_vm7 }
 0x26e   :  { %4260 = vmatmul.msk.f32.gmra.mxu2 %vm116_vm0, %v2897_v54  ;;  %v1403_v5 = vand.u32 2147483648, %v6965_v16  ;;  %v7119_v45 = vadd.f32 %v6918_v48, %v1167_v61  ;;  %vm3947_vm9 = vcmp.gt.f32.partialorder %v94_v62, 0.0  ;;  %4604 = vrcp.f32 %v7104_v31 }
 0x26f   :  { %v1519_v56 = vsub.f32 %v6815_v63, %v1391_v40  ;;  %v1395_v17 = vmul.f32 %v7022_v47, %v1394_v28  ;;  %v2872_v8 = vadd.f32 %v4597_v32, %v2871_v1  ;;  %vm1397_vm10 = vweird.f32 %v6965_v16 }
 0x270   :  { %vm7123_vm12 = vcmp.eq.f32.partialorder %v1401_v20, 8.507059e+37  ;;  %v4601_v36 = vpop.eup %4600  ;;  %v1404_v60 = vor.u32 1.1754944e-38, %v1403_v5  ;;  %v1202_v10 = vmul.f32 1.442695, %v7119_v45  ;;  %v1408_v35 = vmul.f32 %v7098_v27, %v7008_v19  ;;  %vm1399_vm14 = vmor %vm1397_vm10, %vm1398_vm8 }
 0x271   :  { %v1170_v29 = vpop.f32.mrf.mxu2  ;;  %v1396_v63 = vadd.f32 %v7022_v47, %v1395_v17  ;;  %v2876_v37 = vsel %vm2875_vm13, %v4597_v32, %v2872_v8  ;;  %v1236_v16 = vadd.f32 2.0, %v4601_v36  ;;  %v3963_v46 = vsel %vm3947_vm9, 1, %v4847_v3 }
 0x272   :  { %vm1413_vm15 = vweird.f32 %v7098_v27  ;;  %v7139_v14 = vpop.eup %4602  ;;  %v2881_v53 = vsel %vm7092_vm3, %v2880_v59, %v2876_v37  ;;  %4205 = vmatmul.msk.f32.gmra.mxu3 %vm116_vm0, %v1519_v56  ;;  %4606 = vpow2.f32 %v1202_v10  ;;  %v1409_v12 = vsub.f32 1.0, %v1408_v35 }
 0x273   :  { %v1400_v11 = vsel %vm1399_vm14, %v7022_v47, %v1396_v63  ;;  %v2882_v38 = vmul.f32 %v2881_v53, %v7065_v57  ;;  %v1252_v42 = vmul.f32 %v4601_v36, %v1236_v16  ;;  %v1416_v34 = vand.u32 2147483647, %v7008_v19  ;;  %v97_v63 = vld [vmem:[%s9213_s1 + $0x28] sm:$0xff] }
 0x274   :  { %v1405_v58 = vsel %vm7123_vm12, %v1404_v60, %v1400_v11  ;;  %3984 = vperm.xlu1 %4288, %v3963_v46   ;;  %v1410_v26 = vmul.f32 %v7098_v27, %v1409_v12  ;;  %v1418_v59 = vand.u32 2147483648, %v7008_v19  ;;  %v7153_v49 = vadd.f32 %v6918_v48, %v1170_v29  ;;  %v7155_v47 = vpop.eup %4604 }
 0x275   :  { %v1406_v15 = vmul.f32 %v1405_v58, %v6975_v25  ;;  %v1217_v57 = vmul.f32 2.0, %v6921_v44  ;;  %v2898_v55 = vsub.f32 %v6953_v52, %v2882_v38  ;;  %v7159_v61 = vadd.f32 2.0, %v1252_v42 }
 0x276   :  { %v1423_v32 = vmul.f32 %v7139_v14, %v7087_v33  ;;  %v1411_v54 = vadd.f32 %v7098_v27, %v1410_v26  ;;  %vm1412_vm1 = vweird.f32 %v7008_v19  ;;  %v1204_v7 = vmul.f32 1.442695, %v7153_v49 }
 0x277   :  { %v1520_v25 = vsub.f32 %v6865_v13, %v1406_v15  ;;  %4608 = vrcp.f32 %v7159_v61  ;;  %vm1414_vm2 = vmor %vm1412_vm1, %vm1413_vm15  ;;  %vm1417_vm3 = vcmp.eq.f32.partialorder %v1416_v34, 8.507059e+37  ;;  %v1419_v52 = vor.u32 1.1754944e-38, %v1418_v59  ;;  %4261 = vmatmul.msk.f32.gmra.mxu2 %vm116_vm0, %v2898_v55  ;;  %v3375_v59 = vld [vmem:[%s9067_s17 + $0x18] sm:$0xff] }
 0x278   :  { %v1424_v22 = vsub.f32 1.0, %v1423_v32  ;;  %v4607_v2 = vpop.eup %4606  ;;  %v1415_v13 = vsel %vm1414_vm2, %v7098_v27, %v1411_v54  ;;  %4610 = vpow2.f32 %v1204_v7  ;;  %vm1428_vm4 = vweird.f32 %v7139_v14  ;;  %3440 = vmatpush.msrb.mxu3 %v3375_v59 }
 0x279   :  { %v1173_v39 = vpop.f32.mrf.mxu2  ;;  %v1431_v19 = vand.u32 2147483647, %v7087_v33  ;;  %v1237_v30 = vadd.f32 2.0, %v4607_v2  ;;  %v1420_v41 = vsel %vm1417_vm3, %v1419_v52, %v1415_v13  ;;  %v1433_v50 = vand.u32 2147483648, %v7087_v33  ;;  %v96_v52 = vld [vmem:[%s9213_s1 + $0x20] sm:$0xff] }
 0x27a   :  { %v1425_v21 = vmul.f32 %v7139_v14, %v1424_v22  ;;  %4206 = vmatmul.msk.f32.gmra.mxu3 %vm116_vm0, %v1520_v25  ;;  %v1421_v6 = vmul.f32 %v1420_v41, %v1217_v57  ;;  %v7178_v43 = vadd.f32 %v6918_v48, %v1173_v39  ;;  %v1438_v27 = vmul.f32 %v7155_v47, %v7104_v31  ;;  %v7193_v48 = vld [vmem:[%s9066_s16] ss:$0 sm:$0xff]  ;;  %v95_v57 = vld [vmem:[%s9213_s1 + $0x18] sm:$0xff] }
 0x27b   :  { %v1253_v62 = vmul.f32 %v4607_v2, %v1237_v30  ;;  %vm1427_vm5 = vweird.f32 %v7087_v33  ;;  %v1218_v28 = vmul.f32 2.0, %v6991_v0  ;;  %vm1432_vm7 = vcmp.eq.f32.partialorder %v1431_v19, 8.507059e+37 }
 0x27c   :  { %v1426_v40 = vadd.f32 %v7139_v14, %v1425_v21  ;;  %vm7185_vm6 = vmor %vm1427_vm5, %vm1428_vm4  ;;  %v1206_v20 = vmul.f32 1.442695, %v7178_v43  ;;  %v1439_v5 = vsub.f32 1.0, %v1438_v27  ;;  %v1434_v8 = vor.u32 1.1754944e-38, %v1433_v50  ;;  %v99_v50 = vld [vmem:[%s9213_s1 + $0x38] sm:$0xff] }
 0x27d   :  { %v7195_v56 = vpop.eup %4608  ;;  %v7197_v17 = vadd.f32 2.0, %v1253_v62  ;;  %v1521_v29 = vsub.f32 %v6921_v44, %v1421_v6  ;;  %vm1443_vm8 = vweird.f32 %v7155_v47  ;;  %v1446_v35 = vand.u32 2147483647, %v7104_v31 }
 0x27e   :  { %v1430_v33 = vsel %vm7185_vm6, %v7139_v14, %v1426_v40  ;;  %v4611_v4 = vpop.eup %4610  ;;  %4612 = vpow2.f32 %v1206_v20  ;;  %v1440_v36 = vmul.f32 %v7155_v47, %v1439_v5  ;;  %v1448_v44 = vand.u32 2147483648, %v7104_v31 }
 0x27f   :  { %4614 = vrcp.f32 %v7197_v17  ;;  %v1238_v60 = vadd.f32 2.0, %v4611_v4  ;;  %v1435_v10 = vsel %vm1432_vm7, %v1434_v8, %v1430_v33  ;;  %vm3950_vm9 = vcmp.gt.f32.partialorder %v97_v63, 0.0 }
 0x280   :  { %v1441_v16 = vadd.f32 %v7155_v47, %v1440_v36  ;;  %vm1442_vm10 = vweird.f32 %v7104_v31  ;;  %v3966_v53 = vsel %vm3950_vm9, 1, %v4847_v3  ;;  %v1453_v11 = vmul.f32 %v7195_v56, %v7159_v61 }
 0x281   :  { %v2972_v37 = vpop.f32.mrf.mxu2  ;;  %v1254_v14 = vmul.f32 %v4611_v4, %v1238_v60  ;;  %v1436_v12 = vmul.f32 %v1435_v10, %v1218_v28  ;;  %vm7222_vm12 = vmor %vm1442_vm10, %vm1443_vm8  ;;  %3993 = vperm.xlu1 %4288, %v3966_v53   ;;  %vm1447_vm13 = vcmp.eq.f32.partialorder %v1446_v35, 8.507059e+37  ;;  %v1449_v26 = vor.u32 1.1754944e-38, %v1448_v44 }
 0x282   :  { %v7213_v46 = vadd.f32 %v7193_v48, %v2972_v37  ;;  %4207 = vmatmul.msk.f32.gmra.mxu3 %vm116_vm0, %v1521_v29  ;;  %v1445_v31 = vsel %vm7222_vm12, %v7155_v47, %v1441_v16  ;;  %v1454_v34 = vsub.f32 1.0, %v1453_v11  ;;  %vm3948_vm14 = vcmp.gt.f32.partialorder %v95_v57, 0.0 }
 0x283   :  { %v7227_v58 = vadd.f32 2.0, %v1254_v14  ;;  %v1522_v25 = vsub.f32 %v6991_v0, %v1436_v12  ;;  %v1450_v54 = vsel %vm1447_vm13, %v1449_v26, %v1445_v31  ;;  %v3964_v7 = vsel %vm3948_vm14, 1, %v4847_v3  ;;  %v3373_v31 = vld [vmem:[%s9067_s17 + $0x8] sm:$0xff] }
 0x284   :  { %v3020_v42 = vmul.f32 1.442695, %v7213_v46  ;;  %v4613_v15 = vpop.eup %4612  ;;  %v1455_v47 = vmul.f32 %v7195_v56, %v1454_v34  ;;  %vm1458_vm15 = vweird.f32 %v7195_v56  ;;  %3987 = vperm.xlu2 %4289, %v3964_v7   ;;  %v1219_v19 = vmul.f32 2.0, %v7020_v24  ;;  %v101_v26 = vld [vmem:[%s9213_s1 + $0x48] sm:$0xff] }
 0x285   :  { %v7238_v55 = vpop.eup %4614  ;;  %v1239_v32 = vadd.f32 2.0, %v4613_v15  ;;  %vm1457_vm1 = vweird.f32 %v7159_v61  ;;  %v1463_v41 = vand.u32 2147483648, %v7159_v61  ;;  %vm3949_vm2 = vcmp.gt.f32.partialorder %v96_v52, 0.0 }
 0x286   :  { %4616 = vpow2.f32 %v3020_v42  ;;  %v1456_v39 = vadd.f32 %v7195_v56, %v1455_v47  ;;  %v1468_v13 = vmul.f32 %v7238_v55, %v7197_v17  ;;  %v1451_v27 = vmul.f32 %v1450_v54, %v1219_v19  ;;  %vm7265_vm3 = vmor %vm1457_vm1, %vm1458_vm15  ;;  %v3374_v42 = vld [vmem:[%s9067_s17 + $0x10] sm:$0xff]  ;;  %v3372_v47 = vld [vmem:[%s9067_s17] sm:$0xff] }
 0x287   :  { %4618 = vrcp.f32 %v7227_v58  ;;  %v1255_v22 = vmul.f32 %v4613_v15, %v1239_v32  ;;  %v1461_v40 = vand.u32 2147483647, %v7159_v61  ;;  %v3965_v8 = vsel %vm3949_vm2, 1, %v4847_v3  ;;  %3441 = vmatpush.msrb.mxu3 %v3374_v42  ;;  %v100_v42 = vld [vmem:[%s9213_s1 + $0x40] sm:$0xff] }
 0x288   :  { %v1469_v21 = vsub.f32 1.0, %v1468_v13  ;;  %v1460_v5 = vsel %vm7265_vm3, %v7195_v56, %v1456_v39  ;;  %vm3952_vm4 = vcmp.gt.f32.partialorder %v99_v50, 0.0  ;;  %v1464_v29 = vor.u32 1.1754944e-38, %v1463_v41 }
 0x289   :  { %v2975_v2 = vpop.f32.mrf.mxu2  ;;  %v7256_v30 = vadd.f32 2.0, %v1255_v22  ;;  %v3968_v61 = vsel %vm3952_vm4, 1, %v4847_v3  ;;  %v1523_v36 = vsub.f32 %v7020_v24, %v1451_v27  ;;  %vm1462_vm5 = vcmp.eq.f32.partialorder %v1461_v40, 8.507059e+37  ;;  %3442 = vmatpush.msrb.mxu3 %v3373_v31  ;;  %v103_v31 = vld [vmem:[%s9213_s1 + $0x58] sm:$0xff] }
 0x28a   :  { %v7254_v0 = vadd.f32 %v7193_v48, %v2975_v2  ;;  %4208 = vmatmul.msk.f32.gmra.mxu3 %vm116_vm0, %v1522_v25  ;;  %v1470_v33 = vmul.f32 %v7238_v55, %v1469_v21  ;;  %3999 = vperm.xlu1 %4288, %v3968_v61   ;;  %v1220_v60 = vmul.f32 2.0, %v7079_v9  ;;  %v1465_v10 = vsel %vm1462_vm5, %v1464_v29, %v1460_v5  ;;  %v7355_v61 = vld [vmem:[%s9060_s10] ss:$0 sm:$0xff] }
 0x28b   :  { %4620 = vrcp.f32 %v7256_v30  ;;  %vm1473_vm6 = vweird.f32 %v7238_v55  ;;  %v1478_v14 = vand.u32 2147483648, %v7197_v17  ;;  %vm1472_vm7 = vweird.f32 %v7197_v17  ;;  %3443 = vmatpush.msrb.mxu3 %v3372_v47 }
 0x28c   :  { %v4617_v6 = vpop.eup %4616  ;;  %v3022_v28 = vmul.f32 1.442695, %v7254_v0  ;;  %3990 = vperm.xlu2 %4289, %v3965_v8   ;;  %v1471_v37 = vadd.f32 %v7238_v55, %v1470_v33  ;;  %v1466_v11 = vmul.f32 %v1465_v10, %v1220_v60  ;;  %v1476_v12 = vand.u32 2147483647, %v7197_v17  ;;  %vm7307_vm8 = vmor %vm1472_vm7, %vm1473_vm6  ;;  %v98_v17 = vld [vmem:[%s9213_s1 + $0x30] sm:$0xff] }
 0x28d   :  { %v7271_v1 = vpop.eup %4618  ;;  %v3068_v20 = vadd.f32 2.0, %v4617_v6  ;;  %v1479_v54 = vor.u32 1.1754944e-38, %v1478_v14  ;;  %vm3951_vm10 = vcmp.gt.f32.partialorder %v98_v17, 0.0  ;;  %vm3954_vm12 = vcmp.gt.f32.partialorder %v101_v26, 0.0 }
 0x28e   :  { %4622 = vpow2.f32 %v3022_v28  ;;  %v1483_v63 = vmul.f32 %v7271_v1, %v7227_v58  ;;  %v1475_v59 = vsel %vm7307_vm8, %v7238_v55, %v1471_v37  ;;  %v1524_v7 = vsub.f32 %v7079_v9, %v1466_v11 }
 0x28f   :  { %v3084_v4 = vmul.f32 %v4617_v6, %v3068_v20  ;;  %vm1477_vm9 = vcmp.eq.f32.partialorder %v1476_v12, 8.507059e+37  ;;  %v1221_v55 = vmul.f32 2.0, %v7119_v45  ;;  %vm1488_vm13 = vweird.f32 %v7271_v1 }
 0x290   :  { %v1484_v24 = vsub.f32 1.0, %v1483_v63  ;;  %v1480_v22 = vsel %vm1477_vm9, %v1479_v54, %v1475_v59  ;;  %vm1487_vm14 = vweird.f32 %v7227_v58  ;;  %v1493_v9 = vand.u32 2147483648, %v7227_v58 }
 0x291   :  { %v7284_v56 = vadd.f32 2.0, %v3084_v4  ;;  %v2978_v35 = vpop.f32.mrf.mxu2  ;;  %v7291_v44 = vpop.eup %4620  ;;  %v3967_v21 = vsel %vm3951_vm10, 1, %v4847_v3  ;;  %v3970_v50 = vsel %vm3954_vm12, 1, %v4847_v3  ;;  %v1481_v27 = vmul.f32 %v1480_v22, %v1221_v55  ;;  %vm1489_vm15 = vmor %vm1487_vm14, %vm1488_vm13 }
 0x292   :  { %v7289_v16 = vadd.f32 %v7193_v48, %v2978_v35  ;;  %4209 = vmatmul.msk.f32.gmra.mxu3 %vm116_vm0, %v1523_v36  ;;  %v1485_v57 = vmul.f32 %v7271_v1, %v1484_v24  ;;  %v1498_v32 = vmul.f32 %v7291_v44, %v7256_v30  ;;  %v1491_v62 = vand.u32 2147483647, %v7227_v58  ;;  %4005 = vperm.xlu1 %4288, %v3970_v50  }
 0x293   :  { %4624 = vrcp.f32 %v7284_v56  ;;  %v1601_v20 = vpop.f32.mrf.mxu3  ;;  %v1494_v29 = vor.u32 1.1754944e-38, %v1493_v9  ;;  %v1525_v58 = vsub.f32 %v7119_v45, %v1481_v27  ;;  %v1222_v36 = vmul.f32 2.0, %v7153_v49 }
 0x294   :  { %v4623_v53 = vpop.eup %4622  ;;  %v3024_v38 = vmul.f32 1.442695, %v7289_v16  ;;  %v1486_v2 = vadd.f32 %v7271_v1, %v1485_v57  ;;  %v1499_v19 = vsub.f32 1.0, %v1498_v32  ;;  %3996 = vperm.xlu2 %4289, %v3967_v21   ;;  %vm1492_vm1 = vcmp.eq.f32.partialorder %v1491_v62, 8.507059e+37 }
 0x295   :  { %v3069_v34 = vadd.f32 2.0, %v4623_v53  ;;  %vm1503_vm2 = vweird.f32 %v7291_v44  ;;  %vm1502_vm3 = vweird.f32 %v7256_v30  ;;  %v1508_v24 = vand.u32 2147483648, %v7256_v30 }
 0x296   :  { %4626 = vpow2.f32 %v3024_v38  ;;  %v1490_v33 = vsel %vm1489_vm15, %v7271_v1, %v1486_v2  ;;  %v1500_v8 = vmul.f32 %v7291_v44, %v1499_v19  ;;  %v1506_v11 = vand.u32 2147483647, %v7256_v30  ;;  %vm7382_vm4 = vmor %vm1502_vm3, %vm1503_vm2 }
 0x297   :  { %v3085_v25 = vmul.f32 %v4623_v53, %v3069_v34  ;;  %v1495_v60 = vsel %vm1492_vm1, %v1494_v29, %v1490_v33  ;;  %v7374_v38 = vadd.f32 %v7355_v61, %v1601_v20  ;;  %vm3953_vm5 = vcmp.gt.f32.partialorder %v100_v42, 0.0 }
 0x298   :  { %v1501_v37 = vadd.f32 %v7291_v44, %v1500_v8  ;;  %v1496_v53 = vmul.f32 %v1495_v60, %v1222_v36  ;;  %vm3956_vm6 = vcmp.gt.f32.partialorder %v103_v31, 0.0  ;;  %v3969_v59 = vsel %vm3953_vm5, 1, %v4847_v3 }
 0x299   :  { %v7328_v52 = vadd.f32 2.0, %v3085_v25  ;;  %v2981_v39 = vpop.f32.mrf.mxu2  ;;  %v7335_v41 = vpop.eup %4624  ;;  %v1509_v32 = vor.u32 1.1754944e-38, %v1508_v24  ;;  %v3972_v25 = vsel %vm3956_vm6, 1, %v4847_v3  ;;  %v1223_v54 = vmul.f32 2.0, %v7178_v43 }
 0x29a   :  { %v7333_v13 = vadd.f32 %v7193_v48, %v2981_v39  ;;  %4210 = vmatmul.msk.f32.gmra.mxu3 %vm116_vm0, %v1524_v7  ;;  %v3117_v5 = vmul.f32 %v7335_v41, %v7284_v56  ;;  %v1505_v26 = vsel %vm7382_vm4, %v7291_v44, %v1501_v37  ;;  %v1526_v7 = vsub.f32 %v7153_v49, %v1496_v53 }
 0x29b   :  { %4628 = vrcp.f32 %v7328_v52  ;;  %v1604_v47 = vpop.f32.mrf.mxu3  ;;  %vm1507_vm7 = vcmp.eq.f32.partialorder %v1506_v11, 8.507059e+37  ;;  %4011 = vperm.xlu1 %4288, %v3972_v25   ;;  %v1649_v2 = vmul.f32 1.442695, %v7374_v38  ;;  %vm3122_vm8 = vweird.f32 %v7335_v41 }
 0x29c   :  { %v4627_v6 = vpop.eup %4626  ;;  %v3026_v40 = vmul.f32 1.442695, %v7333_v13  ;;  %v3118_v35 = vsub.f32 1.0, %v3117_v5  ;;  %4002 = vperm.xlu2 %4289, %v3969_v59   ;;  %v1510_v44 = vsel %vm1507_vm7, %v1509_v32, %v1505_v26  ;;  %v7407_v49 = vadd.f32 %v7355_v61, %v1604_v47 }
 0x29d   :  { %v3070_v28 = vadd.f32 2.0, %v4627_v6  ;;  %vm3121_vm9 = vweird.f32 %v7284_v56  ;;  %v3125_v50 = vand.u32 2147483647, %v7284_v56  ;;  %v1511_v62 = vmul.f32 %v1510_v44, %v1223_v54 }
 0x29e   :  { %4630 = vpow2.f32 %v3026_v40  ;;  %v3119_v17 = vmul.f32 %v7335_v41, %v3118_v35  ;;  %vm3123_vm10 = vmor %vm3121_vm9, %vm3122_vm8  ;;  %v3142_v24 = vand.u32 2147483648, %v7328_v52  ;;  %vm3136_vm14 = vweird.f32 %v7328_v52 }
 0x29f   :  { %v3086_v4 = vmul.f32 %v4627_v6, %v3070_v28  ;;  %v3127_v6 = vand.u32 2147483648, %v7284_v56  ;;  %v1651_v56 = vmul.f32 1.442695, %v7407_v49  ;;  %vm3126_vm12 = vcmp.eq.f32.partialorder %v3125_v50, 8.507059e+37 }
 0x2a0   :  { %v3120_v9 = vadd.f32 %v7335_v41, %v3119_v17  ;;  %v1527_v29 = vsub.f32 %v7178_v43, %v1511_v62  ;;  %v3140_v53 = vand.u32 2147483647, %v7328_v52  ;;  %v3143_v17 = vor.u32 1.1754944e-38, %v3142_v24 }
 0x2a1   :  { %v7358_v63 = vadd.f32 2.0, %v3086_v4  ;;  %v2984_v10 = vpop.f32.mrf.mxu2  ;;  %v7360_v1 = vpop.eup %4628  ;;  %v3128_v8 = vor.u32 1.1754944e-38, %v3127_v6  ;;  %v3053_v25 = vmul.f32 2.0, %v7254_v0 }
 0x2a2   :  { %v7365_v45 = vadd.f32 %v7193_v48, %v2984_v10  ;;  %4211 = vmatmul.msk.f32.gmra.mxu3 %vm116_vm0, %v1525_v58  ;;  %v3132_v30 = vmul.f32 %v7360_v1, %v7328_v52  ;;  %v3124_v33 = vsel %vm3123_vm10, %v7335_v41, %v3120_v9  ;;  %vm3137_vm13 = vweird.f32 %v7360_v1 }
 0x2a3   :  { %4632 = vrcp.f32 %v7358_v63  ;;  %v3129_v36 = vsel %vm3126_vm12, %v3128_v8, %v3124_v33  ;;  %v3052_v41 = vmul.f32 2.0, %v7213_v46  ;;  %vm3138_vm15 = vmor %vm3136_vm14, %vm3137_vm13  ;;  %vm3141_vm1 = vcmp.eq.f32.partialorder %v3140_v53, 8.507059e+37 }
 0x2a4   :  { %v4631_v14 = vpop.eup %4630  ;;  %v3028_v12 = vmul.f32 1.442695, %v7365_v45  ;;  %v3133_v19 = vsub.f32 1.0, %v3132_v30  ;;  %vm3151_vm3 = vweird.f32 %v7358_v63  ;;  %vm71_vm12 = vcmask 3072  }
 0x2a5   :  { %v3071_v34 = vadd.f32 2.0, %v4631_v14  ;;  %72 = vst.msk [vmem:[#allocation5] sm:$0xf] %vm71_vm12, %v9075_v18 }
 0x2a6   :  { %4634 = vpow2.f32 %v3028_v12  ;;  %v3134_v5 = vmul.f32 %v7360_v1, %v3133_v19  ;;  %v3130_v12 = vmul.f32 %v3129_v36, %v3052_v41  ;;  %v102_v36 = vld [vmem:[%s9213_s1 + $0x50] sm:$0xff] }
 0x2a7   :  { %v3087_v57 = vmul.f32 %v4631_v14, %v3071_v34  ;;  %vm3955_vm8 = vcmp.gt.f32.partialorder %v102_v36, 0.0 }
 0x2a8   :  { %v3135_v10 = vadd.f32 %v7360_v1, %v3134_v5  ;;  %v3054_v5 = vmul.f32 2.0, %v7289_v16  ;;  %v3971_v53 = vsel %vm3955_vm8, 1, %v4847_v3 }
 0x2a9   :  { %v7396_v55 = vpop.eup %4632  ;;  %v7398_v22 = vadd.f32 2.0, %v3087_v57  ;;  %v2987_v39 = vpop.f32.mrf.mxu2  ;;  %v3356_v57 = vsub.f32 %v7213_v46, %v3130_v12  ;;  %v3157_v46 = vand.u32 2147483648, %v7358_v63  ;;  %4008 = vperm.xlu2 %4289, %v3971_v53  }
 0x2aa   :  { %v7404_v21 = vadd.f32 %v7193_v48, %v2987_v39  ;;  %4212 = vmatmul.msk.f32.gmra.mxu3 %vm116_vm0, %v1526_v7  ;;  %v3147_v28 = vmul.f32 %v7396_v55, %v7358_v63  ;;  %v3139_v15 = vsel %vm3138_vm15, %v7360_v1, %v3135_v10  ;;  %vm3152_vm2 = vweird.f32 %v7396_v55  ;;  %v105_v10 = vld [vmem:[%s9213_s1 + $0x68] sm:$0xff] }
 0x2ab   :  { %4636 = vrcp.f32 %v7398_v22  ;;  %v3144_v32 = vsel %vm3141_vm1, %v3143_v17, %v3139_v15  ;;  %vm7452_vm4 = vmor %vm3151_vm3, %vm3152_vm2  ;;  %v3158_v33 = vor.u32 1.1754944e-38, %v3157_v46  ;;  %vm3166_vm6 = vweird.f32 %v7398_v22 }
 0x2ac   :  { %v4635_v27 = vpop.eup %4634  ;;  %v3030_v40 = vmul.f32 1.442695, %v7404_v21  ;;  %4638 = vpow2.f32 %v1649_v2  ;;  %v3148_v58 = vsub.f32 1.0, %v3147_v28  ;;  %v3155_v2 = vand.u32 2147483647, %v7358_v63 }
 0x2ad   :  { %v3072_v20 = vadd.f32 2.0, %v4635_v27  ;;  %v3145_v9 = vmul.f32 %v3144_v32, %v3053_v25  ;;  %vm3958_vm9 = vcmp.gt.f32.partialorder %v105_v10, 0.0  ;;  %v3055_v32 = vmul.f32 2.0, %v7333_v13 }
 0x2ae   :  { %4640 = vpow2.f32 %v3030_v40  ;;  %v3149_v31 = vmul.f32 %v7396_v55, %v3148_v58  ;;  %vm3156_vm5 = vcmp.eq.f32.partialorder %v3155_v2, 8.507059e+37 }
 0x2af   :  { %v3088_v4 = vmul.f32 %v4635_v27, %v3072_v20  ;;  %4642 = vpow2.f32 %v1651_v56  ;;  %v3357_v8 = vsub.f32 %v7254_v0, %v3145_v9 }
 0x2b0   :  { %v3150_v47 = vadd.f32 %v7396_v55, %v3149_v31  ;;  %v3170_v31 = vand.u32 2147483647, %v7398_v22 }
 0x2b1   :  { %v7421_v60 = vadd.f32 2.0, %v3088_v4  ;;  %v2990_v35 = vpop.f32.mrf.mxu2  ;;  %v7425_v37 = vpop.eup %4636 }
 0x2b2   :  { %v7430_v14 = vadd.f32 %v7193_v48, %v2990_v35  ;;  %v4639_v43 = vpop.eup %4638  ;;  %4213 = vmatmul.msk.f32.gmra.mxu3 %vm116_vm0, %v1527_v29  ;;  %v3162_v30 = vmul.f32 %v7425_v37, %v7398_v22  ;;  %v1607_v7 = vpop.f32.mrf.mxu3  ;;  %v3154_v62 = vsel %vm7452_vm4, %v7396_v55, %v3150_v47  ;;  %vm3167_vm7 = vweird.f32 %v7425_v37 }
 0x2b3   :  { %4644 = vrcp.f32 %v7421_v60  ;;  %v1697_v26 = vadd.f32 2.0, %v4639_v43  ;;  %v7461_v40 = vadd.f32 %v7355_v61, %v1607_v7  ;;  %v3159_v29 = vsel %vm3156_vm5, %v3158_v33, %v3154_v62  ;;  %vm7503_vm10 = vmor %vm3166_vm6, %vm3167_vm7  ;;  %v106_v7 = vld [vmem:[%s9213_s1 + $0x70] sm:$0xff] }
 0x2b4   :  { %v4641_v11 = vpop.eup %4640  ;;  %v3032_v42 = vmul.f32 1.442695, %v7430_v14  ;;  %v3163_v44 = vsub.f32 1.0, %v3162_v30  ;;  %v3160_v30 = vmul.f32 %v3159_v29, %v3054_v5  ;;  %vm3171_vm13 = vcmp.eq.f32.partialorder %v3170_v31, 8.507059e+37 }
 0x2b5   :  { %v3073_v34 = vadd.f32 2.0, %v4641_v11  ;;  %v4643_v59 = vpop.eup %4642  ;;  %v1713_v19 = vmul.f32 %v4639_v43, %v1697_v26  ;;  %v1653_v58 = vmul.f32 1.442695, %v7461_v40  ;;  %v3185_v25 = vand.u32 2147483647, %v7421_v60 }
 0x2b6   :  { %4646 = vpow2.f32 %v3032_v42  ;;  %v1698_v50 = vadd.f32 2.0, %v4643_v59  ;;  %v3164_v28 = vmul.f32 %v7425_v37, %v3163_v44  ;;  %vm3959_vm15 = vcmp.gt.f32.partialorder %v106_v7, 0.0 }
 0x2b7   :  { %v3089_v52 = vmul.f32 %v4641_v11, %v3073_v34  ;;  %v7468_v56 = vadd.f32 2.0, %v1713_v19  ;;  %v3974_v11 = vsel %vm3958_vm9, 1, %v4847_v3  ;;  %v3172_v34 = vand.u32 2147483648, %v7398_v22 }
 0x2b8   :  { %v1714_v55 = vmul.f32 %v4643_v59, %v1698_v50  ;;  %v3165_v35 = vadd.f32 %v7425_v37, %v3164_v28  ;;  %4017 = vperm.xlu0 %4287, %v3974_v11   ;;  %v3975_v9 = vsel %vm3959_vm15, 1, %v4847_v3  ;;  %v7536_v62 = vmul.f32 2.0, %v7374_v38 }
 0x2b9   :  { %v7445_v54 = vadd.f32 2.0, %v3089_v52  ;;  %v2993_v1 = vpop.f32.mrf.mxu2  ;;  %v7447_v39 = vpop.eup %4644  ;;  %v3173_v47 = vor.u32 1.1754944e-38, %v3172_v34  ;;  %vm3181_vm1 = vweird.f32 %v7421_v60  ;;  %4020 = vperm.xlu1 %4288, %v3975_v9   ;;  %vm3186_vm3 = vcmp.eq.f32.partialorder %v3185_v25, 8.507059e+37 }
 0x2ba   :  { %4262 = vmatmul.msk.f32.vlgmr.msrb.gmra.mxu3 %vm116_vm0, %v3356_v57  ;;  %v3177_v20 = vmul.f32 %v7447_v39, %v7421_v60  ;;  %v7482_v24 = vadd.f32 %v7193_v48, %v2993_v1  ;;  %v7492_v42 = vadd.f32 2.0, %v1714_v55  ;;  %v3169_v26 = vsel %vm7503_vm10, %v7425_v37, %v3165_v35 }
 0x2bb   :  { %4648 = vrcp.f32 %v7445_v54  ;;  %v3358_v37 = vsub.f32 %v7289_v16, %v3160_v30  ;;  %v3187_v1 = vand.u32 2147483648, %v7421_v60  ;;  %v3174_v2 = vsel %vm3171_vm13, %v3173_v47, %v3169_v26 }
 0x2bc   :  { %v4647_v27 = vpop.eup %4646  ;;  %v3178_v41 = vsub.f32 1.0, %v3177_v20  ;;  %4650 = vrcp.f32 %v7468_v56  ;;  %v3034_v57 = vmul.f32 1.442695, %v7482_v24  ;;  %vm3182_vm14 = vweird.f32 %v7447_v39 }
 0x2bd   :  { %v3074_v63 = vadd.f32 2.0, %v4647_v27  ;;  %4652 = vpow2.f32 %v1653_v58  ;;  %v7543_v20 = vmul.f32 2.0, %v7404_v21  ;;  %v3175_v5 = vmul.f32 %v3174_v2, %v3055_v32  ;;  %vm7548_vm2 = vmor %vm3181_vm1, %vm3182_vm14 }
 0x2be   :  { %v3179_v59 = vmul.f32 %v7447_v39, %v3178_v41  ;;  %v3188_v36 = vor.u32 1.1754944e-38, %v3187_v1  ;;  %vm3196_vm4 = vweird.f32 %v7445_v54  ;;  %v3200_v53 = vand.u32 2147483647, %v7445_v54 }
 0x2bf   :  { %v3090_v4 = vmul.f32 %v4647_v27, %v3074_v63  ;;  %v3056_v27 = vmul.f32 2.0, %v7365_v45  ;;  %v7539_v63 = vmul.f32 2.0, %v7407_v49  ;;  %v3359_v17 = vsub.f32 %v7333_v13, %v3175_v5 }
 0x2c0   :  { %v3180_v46 = vadd.f32 %v7447_v39, %v3179_v59  ;;  %v3202_v26 = vand.u32 2147483648, %v7445_v54  ;;  %vm1750_vm7 = vweird.f32 %v7468_v56  ;;  %vm3201_vm9 = vcmp.eq.f32.partialorder %v3200_v53, 8.507059e+37 }
 0x2c1   :  { %v2996_v0 = vpop.f32.mrf.mxu2  ;;  %v7489_v12 = vpop.eup %4648  ;;  %v7497_v15 = vadd.f32 2.0, %v3090_v4  ;;  %vm1765_vm13 = vweird.f32 %v7492_v42 }
 0x2c2   :  { %v7485_v43 = vadd.f32 %v7193_v48, %v2996_v0  ;;  %4263 = vmatmul.msk.f32.gmra.mxu3 %vm116_vm0, %v3357_v8  ;;  %v3192_v22 = vmul.f32 %v7489_v12, %v7445_v54  ;;  %v7526_v44 = vpop.eup %4650  ;;  %v3184_v58 = vsel %vm7548_vm2, %v7447_v39, %v3180_v46  ;;  %v3937_v0 = vld [vmem:[#allocation5] sm:$0xf]  ;;  %vm3197_vm6 = vweird.f32 %v7489_v12 }
 0x2c3   :  { %v4653_v6 = vpop.eup %4652  ;;  %v1746_v60 = vmul.f32 %v7526_v44, %v7468_v56  ;;  %vm7597_vm8 = vmor %vm3196_vm4, %vm3197_vm6  ;;  %vm1751_vm10 = vweird.f32 %v7526_v44  ;;  %vm3211_vm1 = vweird.f32 %v7497_v15 }
 0x2c4   :  { %v3036_v52 = vmul.f32 1.442695, %v7485_v43  ;;  %v3193_v50 = vsub.f32 1.0, %v3192_v22  ;;  %v1699_v11 = vadd.f32 2.0, %v4653_v6  ;;  %vm7628_vm15 = vmor %vm1750_vm7, %vm1751_vm10 }
 0x2c5   :  { %v3941_v35 = vpop.xlane.xlu0 %3940  ;;  %v1747_v59 = vsub.f32 1.0, %v1746_v60 }
 0x2c6   :  { %4654 = vpow2.f32 %v3036_v52  ;;  %v3194_v41 = vmul.f32 %v7489_v12, %v3193_v50  ;;  %v3942_v30 = vadd.f32 %v3941_v35, %v3937_v0  ;;  %v3189_v52 = vsel %vm3186_vm3, %v3188_v36, %v3184_v58 }
 0x2c7   :  { %4656 = vrcp.f32 %v7492_v42  ;;  %v1610_v33 = vpop.f32.mrf.mxu3  ;;  %v1715_v2 = vmul.f32 %v4653_v6, %v1699_v11  ;;  %v3190_v50 = vmul.f32 %v3189_v52, %v3056_v27 }
 0x2c8   :  { %4658 = vrcp.f32 %v7497_v15  ;;  %v7566_v34 = vadd.f32 %v7355_v61, %v1610_v33  ;;  %3944 = vst.msk [vmem:[#allocation5] sm:$0xf] %vm71_vm12, %v3942_v30 }
 0x2c9   :  { %v2999_v19 = vpop.f32.mrf.mxu2  ;;  %4660 = vpow2.f32 %v3034_v57  ;;  %v104_v57 = vld [vmem:[%s9213_s1 + $0x60] sm:$0xff]  ;;  %v7606_v35 = vadd.f32 2.0, %v1715_v2  ;;  %v3360_v0 = vsub.f32 %v7365_v45, %v3190_v50  ;;  %v1771_v2 = vand.u32 2147483648, %v7492_v42 }
 0x2ca   :  { %v7531_v16 = vadd.f32 %v7193_v48, %v2999_v19  ;;  %4264 = vmatmul.msk.f32.gmra.mxu3 %vm116_vm0, %v3358_v37  ;;  %vm3957_vm5 = vcmp.gt.f32.partialorder %v104_v57, 0.0  ;;  %v3195_v37 = vadd.f32 %v7489_v12, %v3194_v41  ;;  %v1655_v46 = vmul.f32 1.442695, %v7566_v34 }
 0x2cb   :  { %v3973_v1 = vsel %vm3957_vm5, 1, %v4847_v3  ;;  %v1754_v19 = vand.u32 2147483647, %v7468_v56  ;;  %v3217_v57 = vand.u32 2147483648, %v7497_v15 }
 0x2cc   :  { %v4655_v28 = vpop.eup %4654  ;;  %v3038_v55 = vmul.f32 1.442695, %v7531_v16  ;;  %4014 = vperm.xlu2 %4289, %v3973_v1   ;;  %v3199_v27 = vsel %vm7597_vm8, %v7489_v12, %v3195_v37 }
 0x2cd   :  { %v7555_v4 = vpop.eup %4656  ;;  %v3076_v29 = vadd.f32 2.0, %v4655_v28  ;;  %vm7613_vm12 = vcmp.eq.f32.partialorder %v1754_v19, 8.507059e+37  ;;  %v3218_v50 = vor.u32 1.1754944e-38, %v3217_v57 }
 0x2ce   :  { %v7560_v10 = vpop.eup %4658  ;;  %4662 = vpow2.f32 %v3038_v55  ;;  %v1761_v47 = vmul.f32 %v7555_v4, %v7492_v42  ;;  %v1756_v55 = vand.u32 2147483648, %v7468_v56  ;;  %v3215_v56 = vand.u32 2147483647, %v7497_v15 }
 0x2cf   :  { %v3092_v31 = vmul.f32 %v4655_v28, %v3076_v29  ;;  %v4661_v39 = vpop.eup %4660  ;;  %v3207_v13 = vmul.f32 %v7560_v10, %v7497_v15  ;;  %v1748_v28 = vmul.f32 %v7526_v44, %v1747_v59  ;;  %v3203_v29 = vor.u32 1.1754944e-38, %v3202_v26 }
 0x2d0   :  { %v3075_v7 = vadd.f32 2.0, %v4661_v39  ;;  %v1762_v60 = vsub.f32 1.0, %v1761_v47  ;;  %vm3212_vm14 = vweird.f32 %v7560_v10  ;;  %v1769_v59 = vand.u32 2147483647, %v7492_v42 }
 0x2d1   :  { %v7573_v22 = vadd.f32 2.0, %v3092_v31  ;;  %v3002_v32 = vpop.f32.mrf.mxu2  ;;  %v3208_v33 = vsub.f32 1.0, %v3207_v13  ;;  %v1749_v41 = vadd.f32 %v7526_v44, %v1748_v28  ;;  %v3204_v31 = vsel %vm3201_vm9, %v3203_v29, %v3199_v27  ;;  %vm7647_vm3 = vmor %vm3211_vm1, %vm3212_vm14 }
 0x2d2   :  { %v7584_v25 = vadd.f32 %v7193_v48, %v3002_v32  ;;  %4265 = vmatmul.msk.f32.gmra.mxu3 %vm116_vm0, %v3359_v17  ;;  %v3091_v36 = vmul.f32 %v4661_v39, %v3075_v7  ;;  %v1763_v30 = vmul.f32 %v7555_v4, %v1762_v60  ;;  %v1757_v39 = vor.u32 1.1754944e-38, %v1756_v55 }
 0x2d3   :  { %4664 = vrcp.f32 %v7573_v22  ;;  %v3209_v58 = vmul.f32 %v7560_v10, %v3208_v33  ;;  %v3205_v47 = vmul.f32 %v3204_v31, %v7543_v20  ;;  %v1753_v13 = vsel %vm7628_vm15, %v7526_v44, %v1749_v41 }
 0x2d4   :  { %v4663_v9 = vpop.eup %4662  ;;  %v3040_v5 = vmul.f32 1.442695, %v7584_v25  ;;  %v7623_v53 = vadd.f32 2.0, %v3091_v36  ;;  %v1764_v7 = vadd.f32 %v7555_v4, %v1763_v30  ;;  %vm1766_vm2 = vweird.f32 %v7555_v4 }
 0x2d5   :  { %v3077_v8 = vadd.f32 2.0, %v4663_v9  ;;  %v3210_v17 = vadd.f32 %v7560_v10, %v3209_v58  ;;  %v1613_v52 = vpop.f32.mrf.mxu3  ;;  %v3361_v33 = vsub.f32 %v7404_v21, %v3205_v47  ;;  %vm7668_vm4 = vmor %vm1765_vm13, %vm1766_vm2  ;;  %vm3216_vm5 = vcmp.eq.f32.partialorder %v3215_v56, 8.507059e+37 }
 0x2d6   :  { %4666 = vpow2.f32 %v3040_v5  ;;  %v7654_v15 = vadd.f32 %v7355_v61, %v1613_v52  ;;  %v3058_v55 = vmul.f32 2.0, %v7430_v14  ;;  %v1772_v58 = vor.u32 1.1754944e-38, %v1771_v2 }
 0x2d7   :  { %4668 = vpow2.f32 %v1655_v46  ;;  %v3093_v54 = vmul.f32 %v4663_v9, %v3077_v8  ;;  %v3214_v19 = vsel %vm7647_vm3, %v7560_v10, %v3210_v17  ;;  %v1758_v9 = vsel %vm7613_vm12, %v1757_v39, %v1753_v13 }
 0x2d8   :  { %4670 = vrcp.f32 %v7606_v35  ;;  %v3219_v60 = vsel %vm3216_vm5, %v3218_v50, %v3214_v19  ;;  %v1657_v29 = vmul.f32 1.442695, %v7654_v15  ;;  %v1759_v42 = vmul.f32 %v1758_v9, %v7536_v62  ;;  %v3979_v41 = vpop.permute.xlu0 %3978 }
 0x2d9   :  { %v7611_v11 = vadd.f32 2.0, %v3093_v54  ;;  %v7621_v45 = vpop.eup %4664  ;;  %v3005_v37 = vpop.f32.mrf.mxu2  ;;  %v7684_v54 = vmul.f32 2.0, %v7482_v24  ;;  %vm1770_vm6 = vcmp.eq.f32.partialorder %v1769_v59, 8.507059e+37  ;;  %v3220_v30 = vmul.f32 %v3219_v60, %v3058_v55 }
 0x2da   :  { %4266 = vmatmul.msk.f32.gmra.mxu3 %vm116_vm0, %v3360_v0  ;;  %v3237_v44 = vmul.f32 %v7621_v45, %v7573_v22  ;;  %v7663_v28 = vadd.f32 %v7193_v48, %v3005_v37  ;;  %v1768_v48 = vsel %vm7668_vm4, %v7555_v4, %v1764_v7  ;;  %v7687_v0 = vmul.f32 2.0, %v7461_v40 }
 0x2db   :  { %4672 = vrcp.f32 %v7611_v11  ;;  %v1773_v12 = vsel %vm1770_vm6, %v1772_v58, %v1768_v48  ;;  %v7695_v39 = vmul.f32 2.0, %v7485_v43  ;;  %v7698_v17 = vmul.f32 2.0, %v7566_v34 }
 0x2dc   :  { %v4667_v32 = vpop.eup %4666  ;;  %4674 = vrcp.f32 %v7623_v53  ;;  %v3042_v27 = vmul.f32 1.442695, %v7663_v28  ;;  %v3238_v21 = vsub.f32 1.0, %v3237_v44  ;;  %v7701_v52 = vmul.f32 2.0, %v7531_v16 }
 0x2dd   :  { %v4669_v1 = vpop.eup %4668  ;;  %v3078_v46 = vadd.f32 2.0, %v4667_v32  ;;  %v3245_v47 = vand.u32 2147483647, %v7573_v22  ;;  %v3247_v13 = vand.u32 2147483648, %v7573_v22  ;;  %vm4025_vm7 = vcmp.eq.s32.totalorder %v3979_v41, 1 }
 0x2de   :  { %v1700_v5 = vadd.f32 2.0, %v4669_v1  ;;  %v7672_v10 = vpop.eup %4670  ;;  %4676 = vpow2.f32 %v3042_v27  ;;  %v3239_v59 = vmul.f32 %v7621_v45, %v3238_v21  ;;  %v1774_v37 = vmul.f32 %v1773_v12, %v7539_v63  ;;  %v3982_v21 = vpop.permute.xlu1 %3981 }
 0x2df   :  { %v3094_v8 = vmul.f32 %v4667_v32, %v3078_v46  ;;  %v1776_v26 = vmul.f32 %v7672_v10, %v7606_v35  ;;  %4678 = vpow2.f32 %v1657_v29  ;;  %v7709_v32 = vsub.f32 %v7374_v38, %v1759_v42 }
 0x2e0   :  { %v1716_v4 = vmul.f32 %v4669_v1, %v1700_v5  ;;  %vm3241_vm8 = vweird.f32 %v7573_v22  ;;  %v3362_v7 = vsub.f32 %v7430_v14, %v3220_v30  ;;  %v3262_v38 = vand.u32 2147483648, %v7611_v11 }
 0x2e1   :  { %v7681_v36 = vpop.eup %4672  ;;  %v7690_v31 = vadd.f32 2.0, %v3094_v8  ;;  %9246 = vst [vmem:[#allocation12_spill] sm:$0xff] %v7709_v32  ;;  %v7721_v20 = vmul.f32 2.0, %v7584_v25  ;;  %v1777_v44 = vsub.f32 1.0, %v1776_v26  ;;  %v3240_v63 = vadd.f32 %v7621_v45, %v3239_v59 }
 0x2e2   :  { %4267 = vmatmul.msk.f32.gmra.mxu3 %vm116_vm0, %v3361_v33  ;;  %v7692_v62 = vpop.eup %4674  ;;  %v3252_v57 = vmul.f32 %v7681_v36, %v7611_v11  ;;  %v7715_v1 = vadd.f32 2.0, %v1716_v4  ;;  %vm3242_vm9 = vweird.f32 %v7621_v45  ;;  %v4041_v9 = vsel %vm4025_vm7, %v7709_v32, -inf }
 0x2e3   :  { %4680 = vrcp.f32 %v7690_v31  ;;  %v3222_v46 = vmul.f32 %v7692_v62, %v7623_v53  ;;  %vm7728_vm10 = vcmp.eq.f32.partialorder %v3245_v47, 8.507059e+37  ;;  %v3248_v14 = vor.u32 1.1754944e-38, %v3247_v13  ;;  %vm7744_vm13 = vmor %vm3241_vm8, %vm3242_vm9  ;;  %v3008_v47 = vpop.f32.mrf.mxu2 }
 0x2e4   :  { %v4677_v2 = vpop.eup %4676  ;;  %v3253_v19 = vsub.f32 1.0, %v3252_v57  ;;  %v7733_v5 = vsub.f32 %v7407_v49, %v1774_v37  ;;  %4682 = vrcp.f32 %v7715_v1  ;;  %vm3256_vm12 = vweird.f32 %v7611_v11 }
 0x2e5   :  { %v1616_v56 = vpop.f32.mrf.mxu3  ;;  %v3079_v33 = vadd.f32 2.0, %v4677_v2  ;;  %v4679_v8 = vpop.eup %4678  ;;  %v3260_v6 = vand.u32 2147483647, %v7611_v11  ;;  %v7739_v55 = vmul.f32 2.0, %v7654_v15  ;;  %v3223_v48 = vsub.f32 1.0, %v3222_v46 }
 0x2e6   :  { %9249 = vst [vmem:[#allocation13_spill] sm:$0xff] %v7733_v5  ;;  %v3263_v49 = vor.u32 1.1754944e-38, %v3262_v38  ;;  %v7749_v27 = vsel %vm116_vm0, %v4041_v9, -inf  ;;  %v1778_v42 = vmul.f32 %v7672_v10, %v1777_v44  ;;  %vm1780_vm14 = vweird.f32 %v7606_v35 }
 0x2e7   :  { %v3095_v29 = vmul.f32 %v4677_v2, %v3079_v33  ;;  %v3244_v22 = vsel %vm7744_vm13, %v7621_v45, %v3240_v63  ;;  %v3254_v4 = vmul.f32 %v7681_v36, %v3253_v19  ;;  %v7760_v41 = vadd.f32 %v7355_v61, %v1616_v56  ;;  %v7794_v63 = vld [vmem:[%s9066_s16] ss:$0 sm:$0xff] }
 0x2e8   :  { %v3224_v12 = vmul.f32 %v7692_v62, %v3223_v48  ;;  %v1701_v30 = vadd.f32 2.0, %v4679_v8  ;;  %vm3227_vm15 = vweird.f32 %v7692_v62  ;;  %v3232_v57 = vand.u32 2147483648, %v7623_v53 }
 0x2e9   :  { %v7753_v58 = vpop.eup %4680  ;;  %v7763_v26 = vadd.f32 2.0, %v3095_v29  ;;  %vm7767_vm1 = vcmp.eq.f32.partialorder %v3260_v6, 8.507059e+37  ;;  %vm4026_vm2 = vcmp.eq.s32.totalorder %v3982_v21, 1  ;;  %vm1781_vm3 = vweird.f32 %v7672_v10 }
 0x2ea   :  { %4268 = vmatmul.msk.f32.gmra.mxu3 %vm116_vm0, %v3362_v7  ;;  %v3225_v45 = vadd.f32 %v7692_v62, %v3224_v12  ;;  %v3230_v56 = vand.u32 2147483647, %v7623_v53  ;;  %vm3257_vm4 = vweird.f32 %v7681_v36  ;;  %v3267_v37 = vmul.f32 %v7753_v58, %v7690_v31  ;;  %v7779_v7 = vpop.eup %4682  ;;  %vm7828_vm9 = vmor %vm1780_vm14, %vm1781_vm3 }
 0x2eb   :  { %4684 = vrcp.f32 %v7763_v26  ;;  %vm3226_vm5 = vweird.f32 %v7623_v53  ;;  %v3249_v2 = vsel %vm7728_vm10, %v3248_v14, %v3244_v22  ;;  %v3255_v38 = vadd.f32 %v7681_v36, %v3254_v4  ;;  %vm7814_vm8 = vmor %vm3256_vm12, %vm3257_vm4 }
 0x2ec   :  { %v1659_v44 = vmul.f32 1.442695, %v7760_v41  ;;  %vm7787_vm6 = vmor %vm3226_vm5, %vm3227_vm15  ;;  %v7797_v53 = vadd.f32 %v7794_v63, %v3008_v47  ;;  %v1717_v19 = vmul.f32 %v4679_v8, %v1701_v30  ;;  %v1779_v9 = vadd.f32 %v7672_v10, %v1778_v42 }
 0x2ed   :  { %v1619_v59 = vpop.f32.mrf.mxu3  ;;  %v3229_v50 = vsel %vm7787_vm6, %v7692_v62, %v3225_v45  ;;  %v3233_v14 = vor.u32 1.1754944e-38, %v3232_v57  ;;  %v4042_v33 = vsel %vm4026_vm2, %v7733_v5, -inf  ;;  %v1784_v6 = vand.u32 2147483647, %v7606_v35 }
 0x2ee   :  { %v1786_v48 = vand.u32 2147483648, %v7606_v35  ;;  %vm3231_vm7 = vcmp.eq.f32.partialorder %v3230_v56, 8.507059e+37  ;;  %v7808_v60 = vmul.f32 %v3249_v2, %v7695_v39  ;;  %v3268_v62 = vsub.f32 1.0, %v3267_v37 }
 0x2ef   :  { %v7819_v21 = vadd.f32 %v7355_v61, %v1619_v59  ;;  %v3234_v29 = vsel %vm3231_vm7, %v3233_v14, %v3229_v50  ;;  %v3259_v42 = vsel %vm7814_vm8, %v7681_v36, %v3255_v38  ;;  %4686 = vpow2.f32 %v1659_v44 }
 0x2f0   :  { %v3235_v39 = vmul.f32 %v3234_v29, %v7684_v54  ;;  %v3044_v22 = vmul.f32 1.442695, %v7797_v53  ;;  %v7836_v12 = vadd.f32 2.0, %v1717_v19  ;;  %v3275_v30 = vand.u32 2147483647, %v7690_v31 }
 0x2f1   :  { %v7834_v4 = vpop.eup %4684  ;;  %v1783_v36 = vsel %vm7828_vm9, %v7672_v10, %v1779_v9  ;;  %v1791_v35 = vmul.f32 %v7779_v7, %v7715_v1  ;;  %v1787_v54 = vor.u32 1.1754944e-38, %v1786_v48  ;;  %v3264_v45 = vsel %vm7767_vm1, %v3263_v49, %v3259_v42  ;;  %v3011_v10 = vpop.f32.mrf.mxu2 }
 0x2f2   :  { %v3282_v57 = vmul.f32 %v7834_v4, %v7763_v26  ;;  %v3363_v47 = vsub.f32 %v7482_v24, %v3235_v39  ;;  %4688 = vpow2.f32 %v3044_v22  ;;  %v3269_v56 = vmul.f32 %v7753_v58, %v3268_v62  ;;  %v107_v24 = vld [vmem:[%s9213_s1 + $0x78] sm:$0xff] }
 0x2f3   :  { %v1661_v37 = vmul.f32 1.442695, %v7819_v21  ;;  %vm1785_vm10 = vcmp.eq.f32.partialorder %v1784_v6, 8.507059e+37  ;;  %vm3271_vm12 = vweird.f32 %v7690_v31  ;;  %v7853_v2 = vmul.f32 2.0, %v7663_v28  ;;  %v7874_v6 = vpop.permute.xlu1 %3984 }
 0x2f4   :  { %v1788_v38 = vsel %vm1785_vm10, %v1787_v54, %v1783_v36  ;;  %4269 = vmatmul.msk.f32.gmra.mxu3 %vm116_vm0, %v3363_v47  ;;  %v1792_v44 = vsub.f32 1.0, %v1791_v35  ;;  %v3364_v49 = vsub.f32 %v7485_v43, %v7808_v60  ;;  %4690 = vrcp.f32 %v7836_v12 }
 0x2f5   :  { %v1622_v59 = vpop.f32.mrf.mxu3  ;;  %v3277_v13 = vand.u32 2147483648, %v7690_v31  ;;  %v7864_v46 = vsel %vm116_vm0, %v4042_v33, -inf  ;;  %v4687_v19 = vpop.eup %4686  ;;  %v7867_v9 = vmul.f32 %v3264_v45, %v7701_v52  ;;  %vm3272_vm13 = vweird.f32 %v7753_v58  ;;  %v4110_v52 = vld [vmem:[#allocation5] sm:$0xf] }
 0x2f6   :  { %vm7870_vm14 = vcmp.eq.f32.partialorder %v3275_v30, 8.507059e+37  ;;  %v3283_v14 = vsub.f32 1.0, %v3282_v57  ;;  %v7877_v43 = vadd.f32 %v7794_v63, %v3011_v10  ;;  %v3270_v48 = vadd.f32 %v7753_v58, %v3269_v56  ;;  %4113 = vperm.xlu0 %4287, %v4110_v52   ;;  %vm7894_vm2 = vmor %vm3271_vm12, %vm3272_vm13 }
 0x2f7   :  { %4692 = vpow2.f32 %v1661_v37  ;;  %v1789_v33 = vmul.f32 %v1788_v38, %v7687_v0  ;;  %vm3960_vm15 = vcmp.gt.f32.partialorder %v107_v24, 0.0  ;;  %v7882_v8 = vadd.f32 %v7355_v61, %v1622_v59 }
 0x2f8   :  { %v4689_v60 = vpop.eup %4688  ;;  %v1793_v62 = vmul.f32 %v7779_v7, %v1792_v44  ;;  %v3046_v29 = vmul.f32 1.442695, %v7877_v43  ;;  %v3976_v42 = vsel %vm3960_vm15, 1, %v4847_v3  ;;  %v3278_v11 = vor.u32 1.1754944e-38, %v3277_v13 }
 0x2f9   :  { %v1702_v39 = vadd.f32 2.0, %v4687_v19  ;;  %vm4027_vm1 = vcmp.eq.s32.totalorder %v7874_v6, 1  ;;  %v3080_v22 = vadd.f32 2.0, %v4689_v60  ;;  %4023 = vperm.xlu2 %4289, %v3976_v42   ;;  %v3365_v0 = vsub.f32 %v7531_v16, %v7867_v9  ;;  %v3014_v50 = vpop.f32.mrf.mxu2 }
 0x2fa   :  { %v3284_v3 = vmul.f32 %v7834_v4, %v3283_v14  ;;  %4694 = vpow2.f32 %v3046_v29  ;;  %v7902_v35 = vpop.eup %4690  ;;  %v3274_v16 = vsel %vm7894_vm2, %v7753_v58, %v3270_v48  ;;  %vm3286_vm3 = vweird.f32 %v7763_v26 }
 0x2fb   :  { %v7909_v31 = vsub.f32 %v7461_v40, %v1789_v33  ;;  %v3096_v57 = vmul.f32 %v4689_v60, %v3080_v22  ;;  %v1663_v54 = vmul.f32 1.442695, %v7882_v8  ;;  %v1794_v47 = vadd.f32 %v7779_v7, %v1793_v62 }
 0x2fc   :  { %vm1796_vm4 = vweird.f32 %v7779_v7  ;;  %4270 = vmatmul.msk.f32.gmra.mxu3 %vm116_vm0, %v3364_v49  ;;  %v1718_v56 = vmul.f32 %v4687_v19, %v1702_v39  ;;  %vm1795_vm5 = vweird.f32 %v7715_v1  ;;  %v1801_v40 = vand.u32 2147483648, %v7715_v1 }
 0x2fd   :  { %v1625_v30 = vpop.f32.mrf.mxu3  ;;  %9264 = vst [vmem:[#allocation14_spill] sm:$0xff] %v7909_v31  ;;  %v4693_v45 = vpop.eup %4692  ;;  %v7916_v37 = vadd.f32 2.0, %v3096_v57  ;;  %v3285_v58 = vadd.f32 %v7834_v4, %v3284_v3  ;;  %vm3287_vm6 = vweird.f32 %v7834_v4  ;;  %v1799_v10 = vand.u32 2147483647, %v7715_v1  ;;  %vm7929_vm7 = vmor %vm1795_vm5, %vm1796_vm4 }
 0x2fe   :  { %v7900_v59 = vadd.f32 %v7355_v61, %v1625_v30  ;;  %v3279_v38 = vsel %vm7870_vm14, %v3278_v11, %v3274_v16  ;;  %v3290_v44 = vand.u32 2147483647, %v7763_v26  ;;  %v1806_v49 = vmul.f32 %v7902_v35, %v7836_v12  ;;  %vm7947_vm8 = vmor %vm3286_vm3, %vm3287_vm6 }
 0x2ff   :  { %v3292_v1 = vand.u32 2147483648, %v7763_v26  ;;  %v1703_v19 = vadd.f32 2.0, %v4693_v45  ;;  %v1798_v9 = vsel %vm7929_vm7, %v7779_v7, %v1794_v47  ;;  %v7939_v14 = vadd.f32 2.0, %v1718_v56 }
 0x300   :  { %v1665_v61 = vmul.f32 1.442695, %v7900_v59  ;;  %v4695_v13 = vpop.eup %4694  ;;  %v4063_v48 = vmax.f32 %v7749_v27, %v7864_v46  ;;  %v1802_v52 = vor.u32 1.1754944e-38, %v1801_v40  ;;  %v3280_v29 = vmul.f32 %v3279_v38, %v7721_v20  ;;  %v7965_v20 = vld [vmem:[%s9060_s10] ss:$0 sm:$0xff] }
 0x301   :  { %v3081_v60 = vadd.f32 2.0, %v4695_v13  ;;  %v3289_v7 = vsel %vm7947_vm8, %v7834_v4, %v3285_v58  ;;  %v4043_v42 = vsel %vm4027_vm1, %v7909_v31, -inf  ;;  %vm1800_vm9 = vcmp.eq.f32.partialorder %v1799_v10, 8.507059e+37 }
 0x302   :  { %4696 = vpow2.f32 %v1665_v61  ;;  %v1803_v11 = vsel %vm1800_vm9, %v1802_v52, %v1798_v9  ;;  %v1807_v39 = vsub.f32 1.0, %v1806_v49  ;;  %v7959_v22 = vadd.f32 %v7794_v63, %v3014_v50 }
 0x303   :  { %4698 = vrcp.f32 %v7916_v37  ;;  %v3097_v26 = vmul.f32 %v4695_v13, %v3081_v60  ;;  %vm3291_vm10 = vcmp.eq.f32.partialorder %v3290_v44, 8.507059e+37  ;;  %v3293_v36 = vor.u32 1.1754944e-38, %v3292_v1 }
 0x304   :  { %4700 = vpow2.f32 %v1663_v54  ;;  %v1719_v3 = vmul.f32 %v4693_v45, %v1703_v19  ;;  %4271 = vmatmul.msk.f32.gmra.mxu3 %vm116_vm0, %v3365_v0  ;;  %v7972_v16 = vsel %vm116_vm0, %v4043_v42, -inf  ;;  %v3048_v54 = vmul.f32 1.442695, %v7959_v22  ;;  %v3988_v45 = vpop.permute.xlu2 %3987 }
 0x305   :  { %v1628_v62 = vpop.f32.mrf.mxu3  ;;  %4702 = vrcp.f32 %v7939_v14  ;;  %v7974_v57 = vadd.f32 2.0, %v3097_v26  ;;  %v3294_v0 = vsel %vm3291_vm10, %v3293_v36, %v3289_v7  ;;  %v1804_v56 = vmul.f32 %v1803_v11, %v7698_v17 }
 0x306   :  { %v7968_v4 = vadd.f32 %v7965_v20, %v1628_v62  ;;  %v3366_v58 = vsub.f32 %v7584_v25, %v3280_v29  ;;  %v3064_v10 = vmul.f32 2.0, %v7797_v53  ;;  %v1808_v38 = vmul.f32 %v7902_v35, %v1807_v39 }
 0x307   :  { %4704 = vrcp.f32 %v7974_v57  ;;  %v7984_v44 = vadd.f32 2.0, %v1719_v3  ;;  %v3295_v13 = vmul.f32 %v3294_v0, %v7853_v2  ;;  %vm4028_vm12 = vcmp.eq.s32.totalorder %v3988_v45, 1 }
 0x308   :  { %v4697_v30 = vpop.eup %4696  ;;  %v1667_v40 = vmul.f32 1.442695, %v7968_v4  ;;  %4706 = vpow2.f32 %v3048_v54  ;;  %v3305_v25 = vand.u32 2147483647, %v7916_v37  ;;  %v7989_v19 = vsub.f32 %v7566_v34, %v1804_v56 }
 0x309   :  { %v4699_v6 = vpop.eup %4698  ;;  %v1705_v49 = vadd.f32 2.0, %v4697_v30  ;;  %v3307_v50 = vand.u32 2147483648, %v7916_v37  ;;  %v1809_v33 = vadd.f32 %v7902_v35, %v1808_v38  ;;  %vm1811_vm14 = vweird.f32 %v7902_v35 }
 0x30a   :  { %v4701_v47 = vpop.eup %4700  ;;  %v3297_v61 = vmul.f32 %v4699_v6, %v7916_v37  ;;  %4708 = vpow2.f32 %v1667_v40  ;;  %vm3302_vm13 = vweird.f32 %v4699_v6  ;;  %9269 = vst [vmem:[#allocation15_spill] sm:$0xff] %v7989_v19  ;;  %v1814_v2 = vand.u32 2147483647, %v7836_v12 }
 0x30b   :  { %v1704_v1 = vadd.f32 2.0, %v4701_v47  ;;  %v7991_v9 = vpop.eup %4702  ;;  %4710 = vrcp.f32 %v7984_v44  ;;  %vm3301_vm15 = vweird.f32 %v7916_v37  ;;  %v1721_v60 = vmul.f32 %v4697_v30, %v1705_v49 }
 0x30c   :  { %v3298_v24 = vsub.f32 1.0, %v3297_v61  ;;  %4272 = vmatmul.msk.f32.gmra.mxu3 %vm116_vm0, %v3366_v58  ;;  %v3367_v62 = vsub.f32 %v7663_v28, %v3295_v13  ;;  %vm8002_vm1 = vmor %vm3301_vm15, %vm3302_vm13  ;;  %vm1810_vm2 = vweird.f32 %v7836_v12  ;;  %v1816_v42 = vand.u32 2147483648, %v7836_v12 }
 0x30d   :  { %v4705_v34 = vpop.eup %4704  ;;  %v1720_v7 = vmul.f32 %v4701_v47, %v1704_v1  ;;  %vm3306_vm3 = vcmp.eq.f32.partialorder %v3305_v25, 8.507059e+37  ;;  %v4044_v26 = vsel %vm4028_vm12, %v7989_v19, -inf  ;;  %vm8015_vm4 = vmor %vm1810_vm2, %vm1811_vm14  ;;  %v1631_v30 = vpop.f32.mrf.mxu3  ;;  %v3308_v3 = vor.u32 1.1754944e-38, %v3307_v50 }
 0x30e   :  { %v3299_v17 = vmul.f32 %v4699_v6, %v3298_v24  ;;  %v4707_v11 = vpop.eup %4706  ;;  %v3312_v28 = vmul.f32 %v4705_v34, %v7974_v57  ;;  %v1813_v12 = vsel %vm8015_vm4, %v7902_v35, %v1809_v33  ;;  %vm8022_vm5 = vcmp.eq.f32.partialorder %v1814_v2, 8.507059e+37  ;;  %v3017_v47 = vpop.f32.mrf.mxu2 }
 0x30f   :  { %v3082_v54 = vadd.f32 2.0, %v4707_v11  ;;  %v8026_v61 = vadd.f32 2.0, %v1721_v60  ;;  %v1821_v56 = vmul.f32 %v7991_v9, %v7939_v14  ;;  %v3322_v58 = vand.u32 2147483648, %v7974_v57 }
 0x310   :  { %v3300_v52 = vadd.f32 %v4699_v6, %v3299_v17  ;;  %v4709_v36 = vpop.eup %4708  ;;  %v3313_v0 = vsub.f32 1.0, %v3312_v28  ;;  %v1817_v38 = vor.u32 1.1754944e-38, %v1816_v42  ;;  %vm3317_vm6 = vweird.f32 %v4705_v34 }
 0x311   :  { %v1706_v45 = vadd.f32 2.0, %v4709_v36  ;;  %v3098_v24 = vmul.f32 %v4707_v11, %v3082_v54  ;;  %v8031_v49 = vpop.eup %4710  ;;  %v8034_v1 = vadd.f32 %v7794_v63, %v3017_v47  ;;  %vm3316_vm7 = vweird.f32 %v7974_v57 }
 0x312   :  { %v3304_v37 = vsel %vm8002_vm1, %v4699_v6, %v3300_v52  ;;  %v3314_v35 = vmul.f32 %v4705_v34, %v3313_v0  ;;  %v3320_v17 = vand.u32 2147483647, %v7974_v57  ;;  %v1818_v25 = vsel %vm8022_vm5, %v1817_v38, %v1813_v12  ;;  %vm8049_vm8 = vmor %vm3316_vm7, %vm3317_vm6 }
 0x313   :  { %v3309_v40 = vsel %vm3306_vm3, %v3308_v3, %v3304_v37  ;;  %v1722_v13 = vmul.f32 %v4709_v36, %v1706_v45  ;;  %v8040_v50 = vadd.f32 2.0, %v3098_v24  ;;  %4712 = vrcp.f32 %v8026_v61  ;;  %v3991_v36 = vpop.permute.xlu2 %3990 }
 0x314   :  { %v3310_v33 = vmul.f32 %v3309_v40, %v3064_v10  ;;  %v3315_v2 = vadd.f32 %v4705_v34, %v3314_v35  ;;  %4273 = vmatmul.msk.f32.gmra.mxu3 %vm116_vm0, %v3367_v62  ;;  %v8047_v63 = vmul.f32 2.0, %v7760_v41  ;;  %v1822_v57 = vsub.f32 1.0, %v1821_v56 }
 0x315   :  { %v8043_v52 = vadd.f32 2.0, %v1722_v13  ;;  %4714 = vrcp.f32 %v8040_v50  ;;  %v3050_v29 = vmul.f32 1.442695, %v8034_v1  ;;  %v8056_v10 = vmul.f32 2.0, %v7819_v21 }
 0x316   :  { %v3319_v42 = vsel %vm8049_vm8, %v4705_v34, %v3315_v2  ;;  %v3323_v11 = vor.u32 1.1754944e-38, %v3322_v58  ;;  %v1819_v62 = vmul.f32 %v1818_v25, %v7739_v55  ;;  %v8065_v37 = vmax.f32 %v7972_v16, %v4063_v48  ;;  %v1634_v55 = vpop.f32.mrf.mxu3 }
 0x317   :  { %v8067_v28 = vadd.f32 2.0, %v1720_v7  ;;  %v8070_v39 = vsel %vm116_vm0, %v4044_v26, -inf  ;;  %vm3321_vm9 = vcmp.eq.f32.partialorder %v3320_v17, 8.507059e+37  ;;  %v3368_v3 = vsub.f32 %v7797_v53, %v3310_v33 }
 0x318   :  { %v8074_v34 = vmul.f32 2.0, %v7882_v8  ;;  %v3324_v12 = vsel %vm3321_vm9, %v3323_v11, %v3319_v42  ;;  %4716 = vrcp.f32 %v8043_v52  ;;  %v3065_v27 = vmul.f32 2.0, %v7877_v43 }
 0x319   :  { %v8079_v46 = vmul.f32 2.0, %v7900_v59  ;;  %v1823_v48 = vmul.f32 %v7991_v9, %v1822_v57  ;;  %4718 = vpow2.f32 %v3050_v29  ;;  %v8082_v16 = vpop.eup %4712  ;;  %v4067_v53 = vmax.f32 %v8070_v39, %v8065_v37 }
 0x31a   :  { %v8087_v7 = vsub.f32 %v7654_v15, %v1819_v62  ;;  %vm4029_vm10 = vcmp.eq.s32.totalorder %v3991_v36, 1  ;;  %v8090_v26 = vadd.f32 %v7965_v20, %v1631_v30  ;;  %4720 = vrcp.f32 %v8067_v28 }
 0x31b   :  { %v4715_v6 = vpop.eup %4714  ;;  %v3325_v54 = vmul.f32 %v3324_v12, %v3065_v27  ;;  %vm1825_vm12 = vweird.f32 %v7939_v14  ;;  %v1829_v47 = vand.u32 2147483647, %v7939_v14  ;;  %v3066_v0 = vmul.f32 2.0, %v7959_v22 }
 0x31c   :  { %9278 = vst [vmem:[#allocation16_spill] sm:$0xff] %v8087_v7  ;;  %v3327_v45 = vmul.f32 %v4715_v6, %v8040_v50  ;;  %vm1826_vm13 = vweird.f32 %v7991_v9  ;;  %v1831_v15 = vand.u32 2147483648, %v7939_v14  ;;  %4274 = vmatmul.msk.f32.gmra.mxu3 %vm116_vm0, %v3368_v3  ;;  %v1866_v30 = vmul.f32 %v8082_v16, %v8026_v61 }
 0x31d   :  { %v1874_v56 = vand.u32 2147483647, %v8026_v61  ;;  %v1824_v40 = vadd.f32 %v7991_v9, %v1823_v48  ;;  %v1836_v58 = vmul.f32 %v8031_v49, %v7984_v44  ;;  %v1876_v24 = vand.u32 2147483648, %v8026_v61  ;;  %vm8123_vm1 = vmor %vm1825_vm12, %vm1826_vm13 }
 0x31e   :  { %v8106_v38 = vpop.eup %4716  ;;  %v4045_v35 = vsel %vm4029_vm10, %v8087_v7, -inf  ;;  %v3328_v13 = vsub.f32 1.0, %v3327_v45  ;;  %v1669_v17 = vmul.f32 1.442695, %v8090_v26  ;;  %v3369_v33 = vsub.f32 %v7877_v43, %v3325_v54  ;;  %v1637_v27 = vpop.f32.mrf.mxu3 }
 0x31f   :  { %v4719_v25 = vpop.eup %4718  ;;  %v3335_v2 = vand.u32 2147483647, %v8040_v50  ;;  %v3337_v60 = vand.u32 2147483648, %v8040_v50  ;;  %vm8115_vm14 = vcmp.eq.f32.partialorder %v1829_v47, 8.507059e+37  ;;  %vm3332_vm15 = vweird.f32 %v4715_v6  ;;  %v8143_v45 = vpop.permute.xlu1 %3993 }
 0x320   :  { %v3329_v29 = vmul.f32 %v4715_v6, %v3328_v13  ;;  %v3083_v11 = vadd.f32 2.0, %v4719_v25  ;;  %4722 = vpow2.f32 %v1669_v17  ;;  %v8127_v43 = vpop.eup %4720  ;;  %v1867_v62 = vsub.f32 1.0, %v1866_v30 }
 0x321   :  { %vm3331_vm2 = vweird.f32 %v8040_v50  ;;  %v1828_v37 = vsel %vm8123_vm1, %v7991_v9, %v1824_v40  ;;  %v1837_v39 = vsub.f32 1.0, %v1836_v58  ;;  %vm1870_vm3 = vweird.f32 %v8026_v61 }
 0x322   :  { %v3330_v36 = vadd.f32 %v4715_v6, %v3329_v29  ;;  %v1881_v14 = vmul.f32 %v8106_v38, %v8043_v52  ;;  %v3099_v3 = vmul.f32 %v4719_v25, %v3083_v11  ;;  %v8137_v12 = vadd.f32 %v7965_v20, %v1634_v55  ;;  %vm3333_vm4 = vmor %vm3331_vm2, %vm3332_vm15 }
 0x323   :  { %v8139_v48 = vor.u32 1.1754944e-38, %v1876_v24  ;;  %v4062_v50 = vsel %vm116_vm0, %v4045_v35, -inf  ;;  %v3338_v54 = vor.u32 1.1754944e-38, %v3337_v60  ;;  %v1832_v9 = vor.u32 1.1754944e-38, %v1831_v15 }
 0x324   :  { %v3334_v47 = vsel %vm3333_vm4, %v4715_v6, %v3330_v36  ;;  %vm3336_vm5 = vcmp.eq.f32.partialorder %v3335_v2, 8.507059e+37  ;;  %v8145_v30 = vadd.f32 2.0, %v3099_v3  ;;  %v1671_v40 = vmul.f32 1.442695, %v8137_v12  ;;  %4275 = vmatmul.msk.f32.gmra.mxu3 %vm116_vm0, %v3369_v33 }
 0x325   :  { %v1868_v55 = vmul.f32 %v8082_v16, %v1867_v62  ;;  %v3339_v58 = vsel %vm3336_vm5, %v3338_v54, %v3334_v47  ;;  %v1833_v24 = vsel %vm8115_vm14, %v1832_v9, %v1828_v37  ;;  %v1838_v35 = vmul.f32 %v8031_v49, %v1837_v39 }
 0x326   :  { %v4723_v13 = vpop.eup %4722  ;;  %v8153_v15 = vmax.f32 %v4062_v50, %v4067_v53  ;;  %v3340_v6 = vmul.f32 %v3339_v58, %v3066_v0  ;;  %v1882_v17 = vsub.f32 1.0, %v1881_v14  ;;  %4724 = vrcp.f32 %v8145_v30 }
 0x327   :  { %vm1871_vm6 = vweird.f32 %v8082_v16  ;;  %vm8157_vm7 = vcmp.eq.f32.partialorder %v1874_v56, 8.507059e+37  ;;  %v1891_v33 = vand.u32 2147483648, %v8043_v52  ;;  %vm4030_vm8 = vcmp.eq.s32.totalorder %v8143_v45, 1  ;;  %v3997_v45 = vpop.permute.xlu2 %3996  ;;  %v4000_v58 = vpop.permute.xlu1 %3999 }
 0x328   :  { %v1707_v2 = vadd.f32 2.0, %v4723_v13  ;;  %v3370_v60 = vsub.f32 %v7959_v22, %v3340_v6  ;;  %v1834_v53 = vmul.f32 %v1833_v24, %v8047_v63  ;;  %4726 = vpow2.f32 %v1671_v40  ;;  %v1640_v63 = vpop.f32.mrf.mxu3  ;;  %vm8178_vm12 = vmor %vm1870_vm3, %vm1871_vm6 }
 0x329   :  { %v1851_v0 = vmul.f32 %v8127_v43, %v8067_v28  ;;  %v1869_v57 = vadd.f32 %v8082_v16, %v1868_v55  ;;  %v1839_v56 = vadd.f32 %v8031_v49, %v1838_v35  ;;  %vm1841_vm9 = vweird.f32 %v8031_v49 }
 0x32a   :  { %v1723_v29 = vmul.f32 %v4723_v13, %v1707_v2  ;;  %v1883_v42 = vmul.f32 %v8106_v38, %v1882_v17  ;;  %vm1885_vm10 = vweird.f32 %v8043_v52  ;;  %v1844_v11 = vand.u32 2147483647, %v7984_v44 }
 0x32b   :  { %v1846_v22 = vand.u32 2147483648, %v7984_v44  ;;  %v1889_v37 = vand.u32 2147483647, %v8043_v52  ;;  %vm1840_vm13 = vweird.f32 %v7984_v44  ;;  %v8187_v36 = vadd.f32 %v7965_v20, %v1637_v27 }
 0x32c   :  { %v8183_v39 = vadd.f32 2.0, %v1723_v29  ;;  %v4725_v14 = vpop.eup %4724  ;;  %v1892_v3 = vor.u32 1.1754944e-38, %v1891_v33  ;;  %v8190_v50 = vsub.f32 %v7760_v41, %v1834_v53  ;;  %v3067_v61 = vmul.f32 2.0, %v8034_v1  ;;  %vm8195_vm14 = vmor %vm1840_vm13, %vm1841_vm9  ;;  %4276 = vmatmul.msk.f32.gmra.mxu3 %vm116_vm0, %v3370_v60 }
 0x32d   :  { %v1852_v9 = vsub.f32 1.0, %v1851_v0  ;;  %v1873_v44 = vsel %vm8178_vm12, %v8082_v16, %v1869_v57  ;;  %v3342_v27 = vmul.f32 %v4725_v14, %v8145_v30  ;;  %v1843_v41 = vsel %vm8195_vm14, %v8031_v49, %v1839_v56 }
 0x32e   :  { %9287 = vst [vmem:[#allocation17_spill] sm:$0xff] %v8190_v50  ;;  %4728 = vrcp.f32 %v8183_v39  ;;  %v4727_v47 = vpop.eup %4726  ;;  %v1884_v40 = vadd.f32 %v8106_v38, %v1883_v42  ;;  %vm1886_vm15 = vweird.f32 %v8106_v38  ;;  %vm1845_vm1 = vcmp.eq.f32.partialorder %v1844_v11, 8.507059e+37 }
 0x32f   :  { %v1847_v55 = vor.u32 1.1754944e-38, %v1846_v22  ;;  %vm8210_vm2 = vcmp.eq.f32.partialorder %v1889_v37, 8.507059e+37  ;;  %v3343_v16 = vsub.f32 1.0, %v3342_v27  ;;  %v3352_v24 = vand.u32 2147483648, %v8145_v30  ;;  %vm8223_vm3 = vmor %vm1885_vm10, %vm1886_vm15 }
 0x330   :  { %v1708_v35 = vadd.f32 2.0, %v4727_v47  ;;  %v1673_v13 = vmul.f32 1.442695, %v8187_v36  ;;  %v1878_v49 = vsel %vm8157_vm7, %v8139_v48, %v1873_v44  ;;  %v3350_v6 = vand.u32 2147483647, %v8145_v30  ;;  %v1643_v0 = vpop.f32.mrf.mxu3 }
 0x331   :  { %v1848_v17 = vsel %vm1845_vm1, %v1847_v55, %v1843_v41  ;;  %v1853_v33 = vmul.f32 %v8127_v43, %v1852_v9  ;;  %v3344_v60 = vmul.f32 %v4725_v14, %v3343_v16  ;;  %vm3347_vm4 = vweird.f32 %v4725_v14 }
 0x332   :  { %v1724_v53 = vmul.f32 %v4727_v47, %v1708_v35  ;;  %4730 = vpow2.f32 %v1673_v13  ;;  %v1888_v25 = vsel %vm8223_vm3, %v8106_v38, %v1884_v40  ;;  %v4046_v48 = vsel %vm4030_vm8, %v8190_v50, -inf }
 0x333   :  { %vm3346_vm5 = vweird.f32 %v8145_v30  ;;  %v8235_v52 = vadd.f32 %v7965_v20, %v1640_v63  ;;  %v3345_v29 = vadd.f32 %v4725_v14, %v3344_v60  ;;  %v3353_v56 = vor.u32 1.1754944e-38, %v3352_v24 }
 0x334   :  { %v8237_v57 = vpop.eup %4728  ;;  %v1849_v42 = vmul.f32 %v1848_v17, %v8056_v10  ;;  %v8240_v11 = vadd.f32 2.0, %v1724_v53  ;;  %vm3348_vm6 = vmor %vm3346_vm5, %vm3347_vm4  ;;  %v1854_v22 = vadd.f32 %v8127_v43, %v1853_v33  ;;  %vm1856_vm7 = vweird.f32 %v8127_v43 }
 0x335   :  { %v1896_v38 = vmul.f32 %v8237_v57, %v8183_v39  ;;  %v1675_v30 = vmul.f32 1.442695, %v8235_v52  ;;  %v3349_v63 = vsel %vm3348_vm6, %v4725_v14, %v3345_v29  ;;  %vm3351_vm8 = vcmp.eq.f32.partialorder %v3350_v6, 8.507059e+37 }
 0x336   :  { %4732 = vrcp.f32 %v8240_v11  ;;  %v1861_v62 = vand.u32 2147483648, %v8067_v28  ;;  %v3354_v10 = vsel %vm3351_vm8, %v3353_v56, %v3349_v63  ;;  %vm1855_vm9 = vweird.f32 %v8067_v28  ;;  %v4003_v56 = vpop.permute.xlu2 %4002 }
 0x337   :  { %v1897_v37 = vsub.f32 1.0, %v1896_v38  ;;  %v1859_v54 = vand.u32 2147483647, %v8067_v28  ;;  %v4064_v44 = vsel %vm116_vm0, %v4046_v48, -inf  ;;  %v3355_v27 = vmul.f32 %v3354_v10, %v3067_v61  ;;  %vm8252_vm12 = vmor %vm1855_vm9, %vm1856_vm7 }
 0x338   :  { %v4731_v9 = vpop.eup %4730  ;;  %vm4031_vm10 = vcmp.eq.s32.totalorder %v3997_v45, 1  ;;  %4734 = vpow2.f32 %v1675_v30  ;;  %v1893_v14 = vsel %vm8210_vm2, %v1892_v3, %v1888_v25  ;;  %v8259_v47 = vsub.f32 %v7819_v21, %v1849_v42  ;;  %v1646_v13 = vpop.f32.mrf.mxu3 }
 0x339   :  { %v1858_v28 = vsel %vm8252_vm12, %v8127_v43, %v1854_v22  ;;  %v1709_v40 = vadd.f32 2.0, %v4731_v9  ;;  %v3371_v55 = vsub.f32 %v8034_v1, %v3355_v27  ;;  %v1898_v61 = vmul.f32 %v8237_v57, %v1897_v37 }
 0x33a   :  { %9296 = vst [vmem:[#allocation18_spill] sm:$0xff] %v8259_v47  ;;  %v1862_v16 = vor.u32 1.1754944e-38, %v1861_v62  ;;  %v8267_v24 = vadd.f32 %v7965_v20, %v1643_v0  ;;  %v1879_v35 = vmul.f32 %v1878_v49, %v8079_v46  ;;  %v1690_v3 = vmul.f32 2.0, %v7968_v4 }
 0x33b   :  { %vm1860_vm13 = vcmp.eq.f32.partialorder %v1859_v54, 8.507059e+37  ;;  %v1725_v21 = vmul.f32 %v4731_v9, %v1709_v40  ;;  %v4071_v43 = vmax.f32 %v4064_v44, %v8153_v15  ;;  %4277 = vmatmul.msk.f32.gmra.mxu3 %vm116_vm0, %v3371_v55  ;;  %v8277_v33 = vadd.f32 %v7965_v20, %v1646_v13  ;;  %v4006_v54 = vpop.permute.xlu1 %4005 }
 0x33c   :  { %v8271_v6 = vpop.eup %4732  ;;  %v1863_v17 = vsel %vm1860_vm13, %v1862_v16, %v1858_v28  ;;  %v1677_v1 = vmul.f32 1.442695, %v8267_v24  ;;  %v1894_v2 = vmul.f32 %v1893_v14, %v1690_v3  ;;  %v4047_v46 = vsel %vm4031_vm10, %v8259_v47, -inf }
 0x33d   :  { %v1911_v49 = vmul.f32 %v8271_v6, %v8240_v11  ;;  %v8283_v60 = vadd.f32 2.0, %v1725_v21  ;;  %v1899_v15 = vadd.f32 %v8237_v57, %v1898_v61  ;;  %vm1901_vm14 = vweird.f32 %v8237_v57 }
 0x33e   :  { %v4735_v53 = vpop.eup %4734  ;;  %4736 = vpow2.f32 %v1677_v1  ;;  %v1679_v25 = vmul.f32 1.442695, %v8277_v33  ;;  %v1906_v20 = vand.u32 2147483648, %v8183_v39  ;;  %v1864_v0 = vmul.f32 %v1863_v17, %v8074_v34  ;;  %v4009_v1 = vpop.permute.xlu2 %4008 }
 0x33f   :  { %v1912_v48 = vsub.f32 1.0, %v1911_v49  ;;  %4738 = vrcp.f32 %v8283_v60  ;;  %vm1900_vm15 = vweird.f32 %v8183_v39  ;;  %v1904_v29 = vand.u32 2147483647, %v8183_v39 }
 0x340   :  { %v1710_v42 = vadd.f32 2.0, %v4735_v53  ;;  %4740 = vpow2.f32 %v1679_v25  ;;  %v8294_v38 = vsub.f32 %v7900_v59, %v1879_v35  ;;  %v1691_v45 = vmul.f32 2.0, %v8090_v26  ;;  %vm8297_vm1 = vmor %vm1900_vm15, %vm1901_vm14  ;;  %v8315_v9 = vpop.f32.mrf.mxu3 }
 0x341   :  { %v4066_v34 = vsel %vm116_vm0, %v4047_v46, -inf  ;;  %v1913_v30 = vmul.f32 %v8271_v6, %v1912_v48  ;;  %v8304_v63 = vsub.f32 %v7968_v4, %v1894_v2  ;;  %v1903_v39 = vsel %vm8297_vm1, %v8237_v57, %v1899_v15 }
 0x342   :  { %9297 = vst [vmem:[#allocation19_spill] sm:$0xff] %v8294_v38  ;;  %v8310_v59 = vmul.f32 2.0, %v8137_v12  ;;  %v1726_v62 = vmul.f32 %v4735_v53, %v1710_v42  ;;  %v1907_v10 = vor.u32 1.1754944e-38, %v1906_v20  ;;  %v8313_v37 = vsub.f32 %v7882_v8, %v1864_v0 }
 0x343   :  { %9300 = vst [vmem:[#allocation20_spill] sm:$0xff] %v8304_v63  ;;  %vm4032_vm2 = vcmp.eq.s32.totalorder %v4000_v58, 1  ;;  %vm4033_vm3 = vcmp.eq.s32.totalorder %v4003_v56, 1  ;;  %vm1905_vm4 = vcmp.eq.f32.partialorder %v1904_v29, 8.507059e+37  ;;  %v4073_v4 = vmax.f32 %v4066_v34, %v4071_v43 }
 0x344   :  { %9301 = vst [vmem:[#allocation21_spill] sm:$0xff] %v8313_v37  ;;  %v4737_v44 = vpop.eup %4736  ;;  %v8318_v27 = vmul.f32 2.0, %v8187_v36  ;;  %v8320_v57 = vadd.f32 2.0, %v1726_v62  ;;  %v1908_v14 = vsel %vm1905_vm4, %v1907_v10, %v1903_v39  ;;  %v1914_v28 = vadd.f32 %v8271_v6, %v1913_v30 }
 0x345   :  { %v4739_v41 = vpop.eup %4738  ;;  %vm1916_vm5 = vweird.f32 %v8271_v6  ;;  %v1711_v8 = vadd.f32 2.0, %v4737_v44  ;;  %v4049_v61 = vsel %vm4033_vm3, %v8294_v38, -inf  ;;  %vm4034_vm6 = vcmp.eq.s32.totalorder %v4006_v54, 1 }
 0x346   :  { %v4741_v40 = vpop.eup %4740  ;;  %v1926_v55 = vmul.f32 %v4739_v41, %v8283_v60  ;;  %4742 = vrcp.f32 %v8320_v57  ;;  %vm1915_vm7 = vweird.f32 %v8240_v11  ;;  %v1919_v16 = vand.u32 2147483647, %v8240_v11 }
 0x347   :  { %v1921_v35 = vand.u32 2147483648, %v8240_v11  ;;  %v4048_v3 = vsel %vm4032_vm2, %v8313_v37, -inf  ;;  %v1909_v21 = vmul.f32 %v1908_v14, %v1691_v45  ;;  %vm8332_vm8 = vmor %vm1915_vm7, %vm1916_vm5  ;;  %v1727_v17 = vmul.f32 %v4737_v44, %v1711_v8 }
 0x348   :  { %v1927_v43 = vsub.f32 1.0, %v1926_v55  ;;  %v1712_v2 = vadd.f32 2.0, %v4741_v40  ;;  %v1918_v46 = vsel %vm8332_vm8, %v8271_v6, %v1914_v28  ;;  %v1934_v49 = vand.u32 2147483647, %v8283_v60  ;;  %v8347_v29 = vpop.f32.mrf.mxu3 }
 0x349   :  { %v1936_v11 = vand.u32 2147483648, %v8283_v60  ;;  %v4070_v58 = vsel %vm116_vm0, %v4049_v61, -inf  ;;  %vm1931_vm9 = vweird.f32 %v4739_v41  ;;  %v8342_v15 = vadd.f32 2.0, %v1727_v17  ;;  %v4018_v61 = vpop.permute.xlu0 %4017 }
 0x34a   :  { %v1928_v53 = vmul.f32 %v4739_v41, %v1927_v43  ;;  %v1728_v25 = vmul.f32 %v4741_v40, %v1712_v2  ;;  %vm1920_vm10 = vcmp.eq.f32.partialorder %v1919_v16, 8.507059e+37  ;;  %v1922_v20 = vor.u32 1.1754944e-38, %v1921_v35  ;;  %v4015_v40 = vpop.permute.xlu2 %4014 }
 0x34b   :  { %v4068_v48 = vsel %vm116_vm0, %v4048_v3, -inf  ;;  %v4050_v0 = vsel %vm4034_vm6, %v8304_v63, -inf  ;;  %v8350_v56 = vsub.f32 %v8090_v26, %v1909_v21  ;;  %vm1930_vm12 = vweird.f32 %v8283_v60  ;;  %v4012_v60 = vpop.permute.xlu1 %4011 }
 0x34c   :  { %v4743_v6 = vpop.eup %4742  ;;  %v1929_v42 = vadd.f32 %v4739_v41, %v1928_v53  ;;  %4744 = vrcp.f32 %v8342_v15  ;;  %v1923_v45 = vsel %vm1920_vm10, %v1922_v20, %v1918_v46  ;;  %vm1932_vm13 = vmor %vm1930_vm12, %vm1931_vm9  ;;  %v1937_v22 = vor.u32 1.1754944e-38, %v1936_v11 }
 0x34d   :  { %9304 = vst [vmem:[#allocation22_spill] sm:$0xff] %v8350_v56  ;;  %v1941_v34 = vmul.f32 %v4743_v6, %v8320_v57  ;;  %v8355_v30 = vadd.f32 2.0, %v1728_v25  ;;  %v4075_v39 = vmax.f32 %v4068_v48, %v4073_v4  ;;  %vm1935_vm14 = vcmp.eq.f32.partialorder %v1934_v49, 8.507059e+37 }
 0x34e   :  { %v1933_v62 = vsel %vm1932_vm13, %v4739_v41, %v1929_v42  ;;  %vm4035_vm15 = vcmp.eq.s32.totalorder %v4009_v1, 1  ;;  %v4072_v26 = vsel %vm116_vm0, %v4050_v0, -inf  ;;  %v1924_v44 = vmul.f32 %v1923_v45, %v8310_v59 }
 0x34f   :  { %v1938_v10 = vsel %vm1935_vm14, %v1937_v22, %v1933_v62  ;;  %v1942_v54 = vsub.f32 1.0, %v1941_v34  ;;  %4746 = vrcp.f32 %v8355_v30  ;;  %v4077_v14 = vmax.f32 %v4070_v58, %v4075_v39 }
 0x350   :  { %v1694_v28 = vmul.f32 2.0, %v8235_v52  ;;  %v1951_v8 = vand.u32 2147483648, %v8320_v57  ;;  %vm1946_vm1 = vweird.f32 %v4743_v6  ;;  %v1949_v4 = vand.u32 2147483647, %v8320_v57  ;;  %v8368_v43 = vpop.f32.mrf.mxu3 }
 0x351   :  { %v1943_v55 = vmul.f32 %v4743_v6, %v1942_v54  ;;  %v4051_v41 = vsel %vm4035_vm15, %v8350_v56, -inf  ;;  %v1939_v35 = vmul.f32 %v1938_v10, %v8318_v27  ;;  %v4079_v3 = vmax.f32 %v4072_v26, %v4077_v14 }
 0x352   :  { %v4745_v16 = vpop.eup %4744  ;;  %v1695_v21 = vmul.f32 2.0, %v8267_v24  ;;  %vm4036_vm2 = vcmp.eq.s32.totalorder %v4012_v60, 1  ;;  %vm1945_vm3 = vweird.f32 %v8320_v57  ;;  %vm4037_vm4 = vcmp.eq.s32.totalorder %v4015_v40, 1 }
 0x353   :  { %v1944_v59 = vadd.f32 %v4743_v6, %v1943_v55  ;;  %v1956_v13 = vmul.f32 %v4745_v16, %v8342_v15  ;;  %v8371_v17 = vsub.f32 %v8137_v12, %v1924_v44  ;;  %vm1947_vm5 = vmor %vm1945_vm3, %vm1946_vm1  ;;  %v1952_v1 = vor.u32 1.1754944e-38, %v1951_v8  ;;  %v4021_v54 = vpop.permute.xlu1 %4020 }
 0x354   :  { %v4074_v27 = vsel %vm116_vm0, %v4051_v41, -inf  ;;  %vm4038_vm6 = vcmp.eq.s32.totalorder %v4018_v61, 1  ;;  %vm1950_vm7 = vcmp.eq.f32.partialorder %v1949_v4, 8.507059e+37  ;;  %v1966_v57 = vand.u32 2147483648, %v8342_v15 }
 0x355   :  { %9305 = vst [vmem:[#allocation23_spill] sm:$0xff] %v8371_v17  ;;  %v4747_v2 = vpop.eup %4746  ;;  %v1948_v46 = vsel %vm1947_vm5, %v4743_v6, %v1944_v59  ;;  %v1957_v49 = vsub.f32 1.0, %v1956_v13  ;;  %v8377_v11 = vsub.f32 %v8187_v36, %v1939_v35  ;;  %vm73_vm8 = vcmask 253952  }
 0x356   :  { %v1953_v58 = vsel %vm1950_vm7, %v1952_v1, %v1948_v46  ;;  %v1971_v53 = vmul.f32 %v4747_v2, %v8355_v30  ;;  %vm1961_vm9 = vweird.f32 %v4745_v16  ;;  %v1964_v20 = vand.u32 2147483647, %v8342_v15 }
 0x357   :  { %9306 = vst [vmem:[#allocation24_spill] sm:$0xff] %v8377_v11  ;;  %v1954_v12 = vmul.f32 %v1953_v58, %v1694_v28  ;;  %v1958_v25 = vmul.f32 %v4745_v16, %v1957_v49  ;;  %vm1960_vm10 = vweird.f32 %v8342_v15  ;;  %v4052_v0 = vsel %vm4036_vm2, %v8371_v17, -inf }
 0x358   :  { %v1972_v48 = vsub.f32 1.0, %v1971_v53  ;;  %v1967_v42 = vor.u32 1.1754944e-38, %v1966_v57  ;;  %v1981_v45 = vand.u32 2147483648, %v8355_v30  ;;  %v4848_v22 = vmov -inf   ;;  %vm1962_vm12 = vmor %vm1960_vm10, %vm1961_vm9  ;;  %v8393_v26 = vpop.f32.mrf.mxu3 }
 0x359   :  { %v8385_v6 = vsub.f32 %v8235_v52, %v1954_v12  ;;  %v1959_v36 = vadd.f32 %v4745_v16, %v1958_v25  ;;  %74 = vst.msk [vmem:[#allocation6] sm:$0x1] %vm73_vm8, %v4848_v22  ;;  %vm1976_vm13 = vweird.f32 %v4747_v2  ;;  %v1979_v39 = vand.u32 2147483647, %v8355_v30 }
 0x35a   :  { %v1973_v34 = vmul.f32 %v4747_v2, %v1972_v48  ;;  %v4053_v15 = vsel %vm4037_vm4, %v8377_v11, -inf  ;;  %vm1965_vm14 = vcmp.eq.f32.partialorder %v1964_v20, 8.507059e+37  ;;  %v4081_v10 = vmax.f32 %v4074_v27, %v4079_v3 }
 0x35b   :  { %v1963_v62 = vsel %vm1962_vm12, %v4745_v16, %v1959_v36  ;;  %v4076_v52 = vsel %vm116_vm0, %v4052_v0, -inf  ;;  %vm1975_vm15 = vweird.f32 %v8355_v30  ;;  %v4054_v14 = vsel %vm4038_vm6, %v8385_v6, -inf  ;;  %v4024_v16 = vpop.permute.xlu2 %4023 }
 0x35c   :  { %v1968_v60 = vsel %vm1965_vm14, %v1967_v42, %v1963_v62  ;;  %v1974_v44 = vadd.f32 %v4747_v2, %v1973_v34  ;;  %v1696_v8 = vmul.f32 2.0, %v8277_v33  ;;  %vm1977_vm1 = vmor %vm1975_vm15, %vm1976_vm13  ;;  %v1982_v40 = vor.u32 1.1754944e-38, %v1981_v45 }
 0x35d   :  { %v1969_v28 = vmul.f32 %v1968_v60, %v1695_v21  ;;  %v4078_v55 = vsel %vm116_vm0, %v4053_v15, -inf  ;;  %vm1980_vm2 = vcmp.eq.f32.partialorder %v1979_v39, 8.507059e+37  ;;  %v4086_v41 = vmax.f32 %v4076_v52, %v4081_v10  ;;  %v8436_v39 = vld [vmem:[%s9068_s18] ss:$0 sm:$0xff]  ;;  %s4850_s18 = smov [#allocation7]  }
 0x35e   :  { %v1978_v4 = vsel %vm1977_vm1, %v4747_v2, %v1974_v44  ;;  %vm4039_vm3 = vcmp.eq.s32.totalorder %v4021_v54, 1  ;;  %v4080_v61 = vsel %vm116_vm0, %v4054_v14, -inf  ;;  %vm4040_vm4 = vcmp.eq.s32.totalorder %v4024_v16, 1  ;;  %s4139_s12 = sshll.u32 %s4850_s18, 4  ;;  %s4140_s12 = int_to_ptr.vmem [resolvable:$true] %s4139_s12 }
 0x35f   :  { %v8402_v35 = vsub.f32 %v8267_v24, %v1969_v28  ;;  %v1983_v30 = vsel %vm1980_vm2, %v1982_v40, %v1978_v4  ;;  %v4083_v21 = vmax.f32 %v4078_v55, %v4086_v41  ;;  %v9073_v22 = vmov 1.0  }
 0x360   :  { %v1984_v3 = vmul.f32 %v1983_v30, %v1696_v8  ;;  %v3457_v2 = vpop.f32.mrf.mxu3  ;;  %v4057_v48 = vld [vmem:[#allocation6] sm:$0x1]  ;;  %v8440_v62 = vadd.f32 %v8436_v39, %v8315_v9  ;;  %v8445_v54 = vadd.f32 %v8436_v39, %v8347_v29  ;;  %v8449_v60 = vadd.f32 %v8436_v39, %v8393_v26 }
 0x361   :  { %v4055_v59 = vsel %vm4039_vm3, %v8402_v35, -inf  ;;  %v4085_v1 = vmax.f32 %v4080_v61, %v4083_v21  ;;  %v8452_v44 = vadd.f32 %v8436_v39, %v3457_v2  ;;  %v8456_v14 = vadd.f32 %v8436_v39, %v8368_v43 }
 0x362   :  { %v8407_v13 = vsub.f32 %v8277_v33, %v1984_v3  ;;  %v4082_v27 = vsel %vm116_vm0, %v4055_v59, -inf  ;;  %9307 = vst [vmem:[#allocation25_spill] sm:$0xff] %v8440_v62  ;;  %v3493_v10 = vmul.f32 1.442695, %v8440_v62  ;;  %v3495_v9 = vmul.f32 1.442695, %v8445_v54 }
 0x363   :  { %v4087_v46 = vmax.f32 %v4082_v27, %v4085_v1  ;;  %9308 = vst [vmem:[#allocation26_spill] sm:$0xff] %v8445_v54  ;;  %v3499_v29 = vmul.f32 1.442695, %v8449_v60  ;;  %v3501_v40 = vmul.f32 1.442695, %v8452_v44 }
 0x364   :  { %v4056_v49 = vsel %vm4040_vm4, %v8407_v13, -inf  ;;  %3915 = vmatpush.msra.mxu2 %v8407_v13  ;;  %4748 = vpow2.f32 %v3493_v10  ;;  %9309 = vst [vmem:[#allocation27_spill] sm:$0xff] %v8449_v60  ;;  %v3497_v26 = vmul.f32 1.442695, %v8456_v14 }
 0x365   :  { %v4084_v24 = vsel %vm116_vm0, %v4056_v49, -inf  ;;  %9310 = vst [vmem:[#allocation28_spill] sm:$0xff] %v8452_v44  ;;  %4750 = vpow2.f32 %v3495_v9 }
 0x366   :  { %v4088_v57 = vmax.f32 %v4084_v24, %v4087_v46  ;;  %3916 = vmatpush.msra.mxu2 %v8402_v35  ;;  %9311 = vst [vmem:[#allocation29_spill] sm:$0xff] %v8456_v14  ;;  %4752 = vpow2.f32 %v3499_v29 }
 0x367   :  { %4754 = vpow2.f32 %v3501_v40 }
 0x368   :  { %v4089_v58 = vrot.slane %v4088_v57, 4  ;;  %3917 = vmatpush.msra.mxu2 %v8385_v6  ;;  %v3460_v33 = vpop.f32.mrf.mxu3  ;;  %4756 = vpow2.f32 %v3497_v26 }
 0x369   :  { %v8460_v28 = vadd.f32 %v8436_v39, %v3460_v33 }
 0x36a   :  { %v4090_v53 = vmax.f32 %v4088_v57, %v4089_v58  ;;  %3918 = vmatpush.msra.mxu2 %v8377_v11  ;;  %v4749_v55 = vpop.eup %4748 }
 0x36b   :  { %9312 = vst [vmem:[#allocation30_spill] sm:$0xff] %v8460_v28  ;;  %v3503_v4 = vmul.f32 1.442695, %v8460_v28  ;;  %v3541_v43 = vadd.f32 2.0, %v4749_v55  ;;  %v4751_v1 = vpop.eup %4750 }
 0x36c   :  { %v4091_v12 = vrot.slane %v4090_v53, 2  ;;  %3919 = vmatpush.msra.mxu2 %v8371_v17  ;;  %v4753_v46 = vpop.eup %4752  ;;  %v3542_v33 = vadd.f32 2.0, %v4751_v1 }
 0x36d   :  { %4758 = vpow2.f32 %v3503_v4  ;;  %v3557_v27 = vmul.f32 %v4749_v55, %v3541_v43  ;;  %v4755_v57 = vpop.eup %4754 }
 0x36e   :  { %v4092_v25 = vmax.f32 %v4090_v53, %v4091_v12  ;;  %3920 = vmatpush.msra.mxu2 %v8350_v56  ;;  %v4757_v53 = vpop.eup %4756 }
 0x370   :  { %v4093_v20 = vrot.slane %v4092_v25, 1  ;;  %3921 = vmatpush.msra.mxu2 %v8304_v63  ;;  %v3463_v36 = vpop.f32.mrf.mxu3 }
 0x371   :  { %v8467_v41 = vadd.f32 %v8436_v39, %v3463_v36 }
 0x372   :  { %v4094_v0 = vmax.f32 %v4092_v25, %v4093_v20  ;;  %3922 = vmatpush.msra.mxu2 %v8294_v38  ;;  %v8489_v20 = vadd.f32 2.0, %v3557_v27 }
 0x373   :  { %9313 = vst [vmem:[#allocation31_spill] sm:$0xff] %v8467_v41  ;;  %v3505_v61 = vmul.f32 1.442695, %v8467_v41  ;;  %v4759_v25 = vpop.eup %4758 }
 0x374   :  { %v4095_v42 = vmax.f32 %v4057_v48, %v4094_v0  ;;  %3923 = vmatpush.msra.mxu2 %v8313_v37  ;;  %9317 = vst [vmem:[#allocation35_spill] sm:$0xff] %v8489_v20  ;;  %v3544_v48 = vadd.f32 2.0, %v4753_v46  ;;  %v3545_v0 = vadd.f32 2.0, %v4755_v57 }
 0x375   :  { %4760 = vpow2.f32 %v3505_v61 }
 0x376   :  { %4097 = vst.msk [vmem:[#allocation6] sm:$0x1] %vm73_vm8, %v4095_v42  ;;  %3924 = vmatpush.msra.mxu2 %v8259_v47  ;;  %v3560_v9 = vmul.f32 %v4753_v46, %v3544_v48  ;;  %v3561_v40 = vmul.f32 %v4755_v57, %v3545_v0 }
 0x378   :  { %3925 = vmatpush.msra.mxu2 %v8190_v50  ;;  %v3466_v45 = vpop.f32.mrf.mxu3 }
 0x379   :  { %v8470_v16 = vadd.f32 %v8436_v39, %v3466_v45  ;;  %v3543_v45 = vadd.f32 2.0, %v4757_v53 }
 0x37a   :  { %3926 = vmatpush.msra.mxu2 %v8087_v7 }
 0x37b   :  { %v3507_v2 = vmul.f32 1.442695, %v8470_v16  ;;  %v3559_v26 = vmul.f32 %v4757_v53, %v3543_v45 }
 0x37c   :  { %3927 = vmatpush.msra.mxu2 %v7989_v19 }
 0x37d   :  { %4762 = vpow2.f32 %v3507_v2  ;;  %v8503_v2 = vadd.f32 2.0, %v3560_v9 }
 0x37e   :  { %3928 = vmatpush.msra.mxu2 %v7909_v31 }
 0x380   :  { %3929 = vmatpush.msra.mxu2 %v7733_v5  ;;  %v3469_v34 = vpop.f32.mrf.mxu3 }
 0x381   :  { %v8473_v30 = vadd.f32 %v8436_v39, %v3469_v34  ;;  %v3558_v34 = vmul.f32 %v4751_v1, %v3542_v33  ;;  %v8509_v33 = vadd.f32 2.0, %v3559_v26 }
 0x382   :  { %3930 = vmatpush.msra.mxu2 %v7709_v32 }
 0x383   :  { %4281 = vmatmul.msk.f32.vlgmr.msra.gmra.mxu2 %vm9111_vm11, %v9073_v22  ;;  %9314 = vst [vmem:[#allocation32_spill] sm:$0xff] %v8473_v30  ;;  %v3509_v49 = vmul.f32 1.442695, %v8473_v30  ;;  %v8501_v61 = vadd.f32 2.0, %v3558_v34  ;;  %v8640_v44 = vmul.f32 2.0, %v8473_v30 }
 0x385   :  { %4764 = vpow2.f32 %v3509_v49  ;;  %v8505_v49 = vadd.f32 2.0, %v3561_v40  ;;  %9325 = vst [vmem:[#allocation43_spill] sm:$0xff] %v8640_v44 }
 0x388   :  { %v3472_v15 = vpop.f32.mrf.mxu3 }
 0x389   :  { %v8477_v3 = vadd.f32 %v8436_v39, %v3472_v15  ;;  %v3546_v15 = vadd.f32 2.0, %v4759_v25 }
 0x38b   :  { %9315 = vst [vmem:[#allocation33_spill] sm:$0xff] %v8477_v3  ;;  %v3511_v58 = vmul.f32 1.442695, %v8477_v3 }
 0x38d   :  { %4766 = vpow2.f32 %v3511_v58 }
 0x390   :  { %v3475_v52 = vpop.f32.mrf.mxu3 }
 0x391   :  { %v8480_v21 = vadd.f32 %v8436_v39, %v3475_v52  ;;  %v4761_v52 = vpop.eup %4760 }
 0x392   :  { %v3547_v1 = vadd.f32 2.0, %v4761_v52 }
 0x393   :  { %9316 = vst [vmem:[#allocation34_spill] sm:$0xff] %v8480_v21  ;;  %v3513_v12 = vmul.f32 1.442695, %v8480_v21 }
 0x395   :  { %4768 = vpow2.f32 %v3513_v12 }
 0x396   :  { %4770 = vrcp.f32 %v8489_v20 }
 0x398   :  { %v3478_v8 = vpop.f32.mrf.mxu3 }
 0x399   :  { %v8492_v36 = vadd.f32 %v8436_v39, %v3478_v8  ;;  %v4763_v8 = vpop.eup %4762 }
 0x39a   :  { %v4765_v43 = vpop.eup %4764  ;;  %v3548_v57 = vadd.f32 2.0, %v4763_v8 }
 0x39b   :  { %v3515_v55 = vmul.f32 1.442695, %v8492_v36  ;;  %v4767_v27 = vpop.eup %4766  ;;  %v3549_v53 = vadd.f32 2.0, %v4765_v43 }
 0x39c   :  { %v4769_v46 = vpop.eup %4768  ;;  %v3550_v0 = vadd.f32 2.0, %v4767_v27 }
 0x39d   :  { %v8507_v58 = vpop.eup %4770  ;;  %v3551_v45 = vadd.f32 2.0, %v4769_v46  ;;  %v3565_v40 = vmul.f32 %v4765_v43, %v3549_v53 }
 0x39f   :  { %v8532_v43 = vadd.f32 2.0, %v3565_v40 }
 0x3a0   :  { %v3481_v59 = vpop.f32.mrf.mxu3 }
 0x3a1   :  { %v8485_v24 = vadd.f32 %v8436_v39, %v3481_v59  ;;  %v3562_v59 = vmul.f32 %v4759_v25, %v3546_v15  ;;  %v3563_v25 = vmul.f32 %v4761_v52, %v3547_v1  ;;  %v3564_v15 = vmul.f32 %v4763_v8, %v3548_v57 }
 0x3a3   :  { %v3517_v42 = vmul.f32 1.442695, %v8485_v24  ;;  %v8512_v48 = vadd.f32 2.0, %v3562_v59  ;;  %v3566_v59 = vmul.f32 %v4767_v27, %v3550_v0  ;;  %v8528_v57 = vadd.f32 2.0, %v3564_v15 }
 0x3a5   :  { %4772 = vpow2.f32 %v3517_v42 }
 0x3a8   :  { %v3484_v10 = vpop.f32.mrf.mxu3 }
 0x3a9   :  { %v8497_v29 = vadd.f32 %v8436_v39, %v3484_v10  ;;  %v3590_v10 = vmul.f32 %v8507_v58, %v8489_v20 }
 0x3ab   :  { %v3519_v4 = vmul.f32 1.442695, %v8497_v29  ;;  %v4773_v12 = vpop.eup %4772  ;;  %v3591_v22 = vsub.f32 1.0, %v3590_v10 }
 0x3ad   :  { %4774 = vpow2.f32 %v3519_v4  ;;  %v8524_v4 = vadd.f32 2.0, %v3563_v25  ;;  %v8537_v25 = vadd.f32 2.0, %v3566_v59 }
 0x3ae   :  { %4776 = vpow2.f32 %v3515_v55  ;;  %v3553_v55 = vadd.f32 2.0, %v4773_v12 }
 0x3af   :  { %4778 = vrcp.f32 %v8501_v61  ;;  %vm3729_vm2 = vweird.f32 %v8537_v25 }
 0x3b0   :  { %v3487_v42 = vpop.f32.mrf.mxu3  ;;  %4780 = vrcp.f32 %v8503_v2  ;;  %v3569_v23 = vmul.f32 %v4773_v12, %v3553_v55  ;;  %v3592_v55 = vmul.f32 %v8507_v58, %v3591_v22 }
 0x3b1   :  { %v8516_v34 = vadd.f32 %v8436_v39, %v3487_v42  ;;  %4782 = vrcp.f32 %v8505_v49  ;;  %v3567_v42 = vmul.f32 %v4769_v46, %v3551_v45 }
 0x3b2   :  { %4784 = vrcp.f32 %v8509_v33  ;;  %v8574_v19 = vadd.f32 %v8507_v58, %v3592_v55 }
 0x3b3   :  { %v4775_v9 = vpop.eup %4774  ;;  %v3521_v52 = vmul.f32 1.442695, %v8516_v34  ;;  %4786 = vrcp.f32 %v8512_v48  ;;  %v8541_v0 = vadd.f32 2.0, %v3567_v42 }
 0x3b4   :  { %v4777_v26 = vpop.eup %4776  ;;  %v3554_v1 = vadd.f32 2.0, %v4775_v9  ;;  %9318 = vst [vmem:[#allocation36_spill] sm:$0xff] %v8574_v19 }
 0x3b5   :  { %4788 = vpow2.f32 %v3521_v52  ;;  %v8526_v8 = vpop.eup %4778  ;;  %v3552_v53 = vadd.f32 2.0, %v4777_v26  ;;  %vm3744_vm12 = vweird.f32 %v8541_v0 }
 0x3b6   :  { %v8530_v18 = vpop.eup %4780  ;;  %4790 = vrcp.f32 %v8524_v4  ;;  %v3570_v27 = vmul.f32 %v4775_v9, %v3554_v1  ;;  %v3605_v45 = vmul.f32 %v8526_v8, %v8501_v61  ;;  %v8555_v1 = vadd.f32 2.0, %v3569_v23 }
 0x3b7   :  { %v8534_v51 = vpop.eup %4782  ;;  %4792 = vrcp.f32 %v8528_v57  ;;  %v3635_v12 = vmul.f32 %v8530_v18, %v8503_v2  ;;  %v3568_v59 = vmul.f32 %v4777_v26, %v3552_v53 }
 0x3b8   :  { %v8539_v46 = vpop.eup %4784  ;;  %4794 = vrcp.f32 %v8532_v43  ;;  %v3650_v42 = vmul.f32 %v8534_v51, %v8505_v49  ;;  %v8560_v15 = vadd.f32 2.0, %v3570_v27  ;;  %v3606_v26 = vsub.f32 1.0, %v3605_v45 }
 0x3b9   :  { %v8547_v40 = vpop.eup %4786  ;;  %4796 = vrcp.f32 %v8537_v25  ;;  %v3620_v9 = vmul.f32 %v8539_v46, %v8509_v33  ;;  %v3636_v31 = vsub.f32 1.0, %v3635_v12  ;;  %v8576_v7 = vadd.f32 2.0, %v3568_v59 }
 0x3ba   :  { %4798 = vrcp.f32 %v8541_v0  ;;  %v3665_v27 = vmul.f32 %v8547_v40, %v8512_v48  ;;  %v8592_v50 = vmul.f32 %v8526_v8, %v3606_v26  ;;  %vm3774_vm7 = vweird.f32 %v8555_v1 }
 0x3bb   :  { %v4789_v52 = vpop.eup %4788  ;;  %4800 = vrcp.f32 %v8555_v1  ;;  %vm3759_vm0 = vweird.f32 %v8576_v7  ;;  %vm3789_vm15 = vweird.f32 %v8560_v15 }
 0x3bc   :  { %v3555_v10 = vadd.f32 2.0, %v4789_v52  ;;  %v8569_v53 = vpop.eup %4790  ;;  %4802 = vrcp.f32 %v8560_v15  ;;  %9319 = vst [vmem:[#allocation37_spill] sm:$0xff] %v8592_v50 }
 0x3bd   :  { %v8580_v45 = vpop.eup %4792  ;;  %v3680_v55 = vmul.f32 %v8569_v53, %v8524_v4 }
 0x3be   :  { %v3490_v32 = vpop.f32.mrf.mxu3  ;;  %v3571_v5 = vmul.f32 %v4789_v52, %v3555_v10  ;;  %v3621_v10 = vsub.f32 1.0, %v3620_v9  ;;  %v8586_v12 = vpop.eup %4794  ;;  %v3637_v9 = vmul.f32 %v8530_v18, %v3636_v31  ;;  %v3695_v26 = vmul.f32 %v8580_v45, %v8528_v57 }
 0x3bf   :  { %v8566_v22 = vadd.f32 %v8436_v39, %v3490_v32  ;;  %v3651_v39 = vsub.f32 1.0, %v3650_v42  ;;  %v8594_v42 = vpop.eup %4796  ;;  %v3710_v47 = vmul.f32 %v8586_v12, %v8532_v43  ;;  %v3681_v19 = vsub.f32 1.0, %v3680_v55 }
 0x3c0   :  { %v8583_v23 = vadd.f32 2.0, %v3571_v5  ;;  %v3666_v5 = vsub.f32 1.0, %v3665_v27  ;;  %v8599_v62 = vpop.eup %4798  ;;  %v8613_v52 = vmul.f32 %v8539_v46, %v3621_v10  ;;  %v3725_v37 = vmul.f32 %v8594_v42, %v8537_v25 }
 0x3c1   :  { %v3523_v32 = vmul.f32 1.442695, %v8566_v22  ;;  %v3652_v59 = vmul.f32 %v8534_v51, %v3651_v39  ;;  %v8615_v54 = vpop.eup %4800  ;;  %v3740_v27 = vmul.f32 %v8599_v62, %v8541_v0  ;;  %v8630_v38 = vadd.f32 %v8530_v18, %v3637_v9 }
 0x3c2   :  { %9321 = vst [vmem:[#allocation39_spill] sm:$0xff] %v8613_v52  ;;  %v8623_v14 = vpop.eup %4802  ;;  %v3667_v31 = vmul.f32 %v8547_v40, %v3666_v5  ;;  %v3696_v60 = vsub.f32 1.0, %v3695_v26  ;;  %v3770_v10 = vmul.f32 %v8615_v54, %v8555_v1  ;;  %vm3745_vm8 = vweird.f32 %v8599_v62 }
 0x3c3   :  { %4804 = vpow2.f32 %v3523_v32  ;;  %v8602_v32 = vmul.f32 2.0, %v8460_v28  ;;  %v8618_v28 = vmul.f32 2.0, %v8467_v41  ;;  %9323 = vst [vmem:[#allocation41_spill] sm:$0xff] %v8630_v38  ;;  %v8635_v39 = vadd.f32 %v8534_v51, %v3652_v59 }
 0x3c4   :  { %4806 = vrcp.f32 %v8583_v23  ;;  %v3785_v55 = vmul.f32 %v8623_v14, %v8560_v15  ;;  %v3682_v59 = vmul.f32 %v8569_v53, %v3681_v19  ;;  %v3741_v50 = vsub.f32 1.0, %v3740_v27 }
 0x3c5   :  { %9320 = vst [vmem:[#allocation38_spill] sm:$0xff] %v8602_v32  ;;  %4808 = vrcp.f32 %v8576_v7  ;;  %v3726_v32 = vsub.f32 1.0, %v3725_v37  ;;  %v8652_v38 = vadd.f32 %v8547_v40, %v3667_v31  ;;  %v3697_v17 = vmul.f32 %v8580_v45, %v3696_v60 }
 0x3c6   :  { %9322 = vst [vmem:[#allocation40_spill] sm:$0xff] %v8618_v28  ;;  %v3711_v28 = vsub.f32 1.0, %v3710_v47  ;;  %v3786_v27 = vsub.f32 1.0, %v3785_v55  ;;  %v8672_v60 = vmul.f32 2.0, %v8480_v21  ;;  %v3808_v55 = vand.u32 2147483647, %v8583_v23 }
 0x3c7   :  { %9324 = vst [vmem:[#allocation42_spill] sm:$0xff] %v8635_v39  ;;  %v8659_v39 = vmul.f32 2.0, %v8477_v3  ;;  %v3727_v31 = vmul.f32 %v8594_v42, %v3726_v32  ;;  %v8680_v32 = vadd.f32 %v8580_v45, %v3697_v17  ;;  %v8694_v17 = vmul.f32 2.0, %v8497_v29 }
 0x3c8   :  { %9326 = vst [vmem:[#allocation44_spill] sm:$0xff] %v8652_v38  ;;  %vm3804_vm9 = vweird.f32 %v8583_v23  ;;  %vm3790_vm10 = vweird.f32 %v8623_v14  ;;  %vm3730_vm13 = vweird.f32 %v8594_v42  ;;  %vm3775_vm1 = vweird.f32 %v8615_v54 }
 0x3c9   :  { %v4805_v41 = vpop.eup %4804  ;;  %v3793_v21 = vand.u32 2147483647, %v8560_v15  ;;  %vm3715_vm3 = vweird.f32 %v8586_v12  ;;  %vm3809_vm4 = vcmp.eq.f32.partialorder %v3808_v55, 8.507059e+37  ;;  %v3539_v55 = vmul.f32 2.0, %v8516_v34 }
 0x3ca   :  { %v8637_v63 = vpop.eup %4806  ;;  %v3556_v5 = vadd.f32 2.0, %v4805_v41 }
 0x3cb   :  { %v8643_v9 = vpop.eup %4808  ;;  %v3800_v26 = vmul.f32 %v8637_v63, %v8583_v23  ;;  %vm3805_vm6 = vweird.f32 %v8637_v63  ;;  %vm3794_vm11 = vcmp.eq.f32.partialorder %v3793_v21, 8.507059e+37 }
 0x3cc   :  { %v3572_v56 = vmul.f32 %v4805_v41, %v3556_v5  ;;  %v3755_v19 = vmul.f32 %v8643_v9, %v8576_v7  ;;  %v3712_v41 = vmul.f32 %v8586_v12, %v3711_v28  ;;  %v3771_v28 = vsub.f32 1.0, %v3770_v10  ;;  %vm8719_vm14 = vmor %vm3804_vm9, %vm3805_vm6 }
 0x3cd   :  { %v3801_v47 = vsub.f32 1.0, %v3800_v26  ;;  %v8669_v26 = vadd.f32 %v8569_v53, %v3682_v59  ;;  %v8691_v10 = vadd.f32 %v8594_v42, %v3727_v31  ;;  %vm3760_vm5 = vweird.f32 %v8643_v9  ;;  %vm8737_vm6 = vmor %vm3789_vm15, %vm3790_vm10 }
 0x3ce   :  { %v8661_v37 = vadd.f32 2.0, %v3572_v56  ;;  %v3742_v56 = vmul.f32 %v8599_v62, %v3741_v50  ;;  %v3756_v5 = vsub.f32 1.0, %v3755_v19  ;;  %v8685_v44 = vadd.f32 %v8586_v12, %v3712_v41  ;;  %vm8753_vm10 = vmor %vm3774_vm7, %vm3775_vm1 }
 0x3cf   :  { %v3802_v30 = vmul.f32 %v8637_v63, %v3801_v47  ;;  %v3787_v50 = vmul.f32 %v8623_v14, %v3786_v27  ;;  %v3772_v3 = vmul.f32 %v8615_v54, %v3771_v28  ;;  %v3810_v47 = vand.u32 2147483648, %v8583_v23  ;;  %vm8771_vm7 = vmor %vm3759_vm0, %vm3760_vm5 }
 0x3d0   :  { %4810 = vrcp.f32 %v8661_v37  ;;  %v8700_v41 = vadd.f32 %v8599_v62, %v3742_v56  ;;  %v3778_v59 = vand.u32 2147483647, %v8555_v1  ;;  %v3757_v56 = vmul.f32 %v8643_v9, %v3756_v5 }
 0x3d1   :  { %v3803_v27 = vadd.f32 %v8637_v63, %v3802_v30  ;;  %v3788_v30 = vadd.f32 %v8623_v14, %v3787_v50  ;;  %v3795_v5 = vand.u32 2147483648, %v8560_v15  ;;  %v3780_v23 = vand.u32 2147483648, %v8555_v1 }
 0x3d2   :  { %v3773_v11 = vadd.f32 %v8615_v54, %v3772_v3  ;;  %v3825_v20 = vand.u32 2147483648, %v8661_v37  ;;  %v3811_v38 = vor.u32 1.1754944e-38, %v3810_v47  ;;  %v3823_v3 = vand.u32 2147483647, %v8661_v37 }
 0x3d3   :  { %v3807_v19 = vsel %vm8719_vm14, %v8637_v63, %v3803_v27  ;;  %v3758_v63 = vadd.f32 %v8643_v9, %v3757_v56  ;;  %v3792_v27 = vsel %vm8737_vm6, %v8623_v14, %v3788_v30  ;;  %v3796_v28 = vor.u32 1.1754944e-38, %v3795_v5 }
 0x3d4   :  { %v3812_v47 = vsel %vm3809_vm4, %v3811_v38, %v3807_v19  ;;  %vm8757_vm15 = vcmp.eq.f32.partialorder %v3778_v59, 8.507059e+37  ;;  %vm3699_vm6 = vweird.f32 %v8528_v57  ;;  %vm3819_vm4 = vweird.f32 %v8661_v37 }
 0x3d5   :  { %v3777_v38 = vsel %vm8753_vm10, %v8615_v54, %v3773_v11  ;;  %v3826_v59 = vor.u32 1.1754944e-38, %v3825_v20  ;;  %v3797_v19 = vsel %vm3794_vm11, %v3796_v28, %v3792_v27  ;;  %v3781_v30 = vor.u32 1.1754944e-38, %v3780_v23  ;;  %vm8791_vm11 = vmor %vm3744_vm12, %vm3745_vm8 }
 0x3d6   :  { %v4811_v31 = vpop.eup %4810  ;;  %v3762_v21 = vsel %vm8771_vm7, %v8643_v9, %v3758_v63  ;;  %vm3684_vm9 = vweird.f32 %v8524_v4  ;;  %vm3670_vm10 = vweird.f32 %v8547_v40  ;;  %v3540_v11 = vmul.f32 2.0, %v8566_v22  ;;  %vm8813_vm12 = vmor %vm3729_vm2, %vm3730_vm13  ;;  %v9367_v9 = vld [vmem:[#allocation35_spill] sm:$0xff] }
 0x3d7   :  { %v3815_v52 = vmul.f32 %v4811_v31, %v8661_v37  ;;  %vm3820_vm14 = vweird.f32 %v4811_v31  ;;  %vm3824_vm0 = vcmp.eq.f32.partialorder %v3823_v3, 8.507059e+37  ;;  %v3813_v37 = vmul.f32 %v3812_v47, %v3539_v55 }
 0x3d8   :  { %vm3821_vm1 = vmor %vm3819_vm4, %vm3820_vm14  ;;  %v3537_v5 = vmul.f32 2.0, %v8485_v24  ;;  %v3782_v20 = vsel %vm8757_vm15, %v3781_v30, %v3777_v38  ;;  %v9337_v23 = vand.u32 2147483648, %v8576_v7  ;;  %vm3669_vm5 = vweird.f32 %v8512_v48 }
 0x3d9   :  { %v3816_v50 = vsub.f32 1.0, %v3815_v52  ;;  %vm3655_vm14 = vweird.f32 %v8534_v51  ;;  %v3798_v63 = vmul.f32 %v3797_v19, %v8694_v17  ;;  %v9340_v3 = vand.u32 2147483647, %v8576_v7 }
 0x3da   :  { %v3747_v27 = vsel %vm8791_vm11, %v8599_v62, %v8700_v41  ;;  %v3536_v55 = vmul.f32 2.0, %v8492_v36  ;;  %v9341_v28 = vand.u32 2147483647, %v8541_v0  ;;  %v9342_v56 = vand.u32 2147483648, %v8541_v0 }
 0x3db   :  { %v3817_v15 = vmul.f32 %v4811_v31, %v3816_v50  ;;  %vm3764_vm15 = vcmp.eq.f32.partialorder %v9340_v3, 8.507059e+37  ;;  %vm3654_vm4 = vweird.f32 %v8505_v49  ;;  %vm3640_vm7 = vweird.f32 %v8530_v18  ;;  %v9369_v3 = vld [vmem:[#allocation34_spill] sm:$0xff] }
 0x3dc   :  { %vm3749_vm8 = vcmp.eq.f32.partialorder %v9341_v28, 8.507059e+37  ;;  %v3751_v50 = vor.u32 1.1754944e-38, %v9342_v56  ;;  %v3843_v17 = vsub.f32 %v8516_v34, %v3813_v37  ;;  %v3783_v41 = vmul.f32 %v3782_v20, %v3537_v5 }
 0x3dd   :  { %v3818_v14 = vadd.f32 %v4811_v31, %v3817_v15  ;;  %v3766_v15 = vor.u32 1.1754944e-38, %v9337_v23  ;;  %v3732_v0 = vsel %vm8813_vm12, %v8594_v42, %v8691_v10  ;;  %v9345_v38 = vand.u32 2147483647, %v8537_v25 }
 0x3de   :  { %v9346_v1 = vand.u32 2147483648, %v8537_v25  ;;  %vm9347_vm2 = vweird.f32 %v8532_v43  ;;  %v9350_v34 = vand.u32 2147483647, %v8532_v43  ;;  %vm3639_vm11 = vweird.f32 %v8503_v2 }
 0x3df   :  { %v3822_v54 = vsel %vm3821_vm1, %v4811_v31, %v3818_v14  ;;  %v3767_v47 = vsel %vm3764_vm15, %v3766_v15, %v3762_v21  ;;  %v3752_v14 = vsel %vm3749_vm8, %v3751_v50, %v3747_v27  ;;  %vm3734_vm13 = vcmp.eq.f32.partialorder %v9345_v38, 8.507059e+37  ;;  %vm8833_vm1 = vmor %vm9347_vm2, %vm3715_vm3  ;;  %v9378_v38 = vld [vmem:[#allocation33_spill] sm:$0xff]  ;;  %v9385_v21 = vld [vmem:[#allocation22_spill] sm:$0xff] }
 0x3e0   :  { %v3827_v52 = vsel %vm3824_vm0, %v3826_v59, %v3822_v54  ;;  %v3736_v59 = vor.u32 1.1754944e-38, %v9346_v1  ;;  %vm8839_vm0 = vcmp.eq.f32.partialorder %v9350_v34, 8.507059e+37  ;;  %vm3625_vm15 = vweird.f32 %v8539_v46 }
 0x3e1   :  { %v3828_v31 = vmul.f32 %v3827_v52, %v3540_v11  ;;  %v3842_v42 = vsub.f32 %v8497_v29, %v3798_v63  ;;  %v3768_v10 = vmul.f32 %v3767_v47, %v3536_v55  ;;  %v3717_v30 = vsel %vm8833_vm1, %v8586_v12, %v8685_v44  ;;  %v9370_v55 = vld [vmem:[#allocation43_spill] sm:$0xff] }
 0x3e2   :  { %vm9353_vm3 = vweird.f32 %v8580_v45  ;;  %v3737_v11 = vsel %vm3734_vm13, %v3736_v59, %v3732_v0  ;;  %vm3624_vm12 = vweird.f32 %v8509_v33  ;;  %vm3610_vm2 = vweird.f32 %v8526_v8  ;;  %v9377_v0 = vld [vmem:[#allocation23_spill] sm:$0xff] }
 0x3e3   :  { %v3844_v62 = vsub.f32 %v8566_v22, %v3828_v31  ;;  %vm8855_vm8 = vmor %vm3699_vm6, %vm9353_vm3  ;;  %vm67_vm1 = vcmask 257024   ;;  %v3866_v44 = vmul.f32 %v3843_v17, %v8402_v35  ;;  %v3841_v12 = vsub.f32 %v8485_v24, %v3783_v41  ;;  %v9368_v31 = vld [vmem:[#allocation24_spill] sm:$0xff]  ;;  %v9376_v41 = vld [vmem:[#allocation39_spill] sm:$0xff] }
 0x3e4   :  { %v3702_v29 = vsel %vm8855_vm8, %v8580_v45, %v8680_v32  ;;  %v3753_v37 = vmul.f32 %v3752_v14, %v8672_v60  ;;  %vm9357_vm6 = vweird.f32 %v8569_v53  ;;  %v9360_v45 = vmov 0.0  }
 0x3e5   :  { %v3867_v25 = vmul.f32 %v3844_v62, %v8407_v13  ;;  %3892 = vmatpush.msra.mxu1 %v3844_v62  ;;  %v9356_v13 = vand.u32 2147483648, %v8532_v43  ;;  %vm8874_vm13 = vmor %vm3684_vm9, %vm9357_vm6  ;;  %70 = vst.msk [vmem:[#allocation4] sm:$0xf] %vm67_vm1, %v9360_v45  ;;  %v9361_v35 = vand.u32 2147483647, %v8528_v57  ;;  %v9362_v24 = vand.u32 2147483648, %v8528_v57 }
 0x3e6   :  { %v3687_v5 = vsel %vm8874_vm13, %v8569_v53, %v8669_v26  ;;  %vm3609_vm9 = vweird.f32 %v8501_v61  ;;  %vm3595_vm8 = vweird.f32 %v8507_v58  ;;  %68 = vst.msk [vmem:[#allocation2] sm:$0xf] %vm67_vm1, %v9360_v45  ;;  %v3865_v52 = vmul.f32 %v3842_v42, %v8385_v6  ;;  %v9375_v62 = vld [vmem:[#allocation42_spill] sm:$0xff]  ;;  %v4299_v53 = vld [vmem:[#allocation6] ss:$0 sm:$0xff] }
 0x3e7   :  { %v3721_v54 = vor.u32 1.1754944e-38, %v9356_v13  ;;  %3868 = vmatpush.msra.mxu0 %v3867_v25  ;;  %3893 = vmatpush.msra.mxu1 %v3843_v17  ;;  %vm3704_vm3 = vcmp.eq.f32.partialorder %v9361_v35, 8.507059e+37  ;;  %v3706_v60 = vor.u32 1.1754944e-38, %v9362_v24  ;;  %v3840_v20 = vsub.f32 %v8492_v36, %v3768_v10  ;;  %69 = vst.msk [vmem:[#allocation3] sm:$0xf] %vm67_vm1, %v9360_v45  ;;  %v9366_v36 = vld [vmem:[#allocation44_spill] sm:$0xff] }
 0x3e8   :  { %v3738_v57 = vmul.f32 %v3737_v11, %v8659_v39  ;;  %v3532_v26 = vmul.f32 2.0, %v8470_v16  ;;  %v9365_v6 = vand.u32 2147483648, %v8524_v4  ;;  %vm3594_vm6 = vweird.f32 %v9367_v9  ;;  %v9386_v13 = vld [vmem:[#allocation32_spill] sm:$0xff] }
 0x3e9   :  { %v3722_v32 = vsel %vm8839_vm0, %v3721_v54, %v3717_v30  ;;  %3869 = vmatpush.msra.mxu0 %v3866_v44  ;;  %3894 = vmatpush.msra.mxu1 %v3842_v42  ;;  %vm8901_vm0 = vmor %vm3669_vm5, %vm3670_vm10  ;;  %v3707_v23 = vsel %vm3704_vm3, %v3706_v60, %v3702_v29  ;;  %v3864_v63 = vmul.f32 %v3841_v12, %v9368_v31  ;;  %v9371_v28 = vand.u32 2147483647, %v8524_v4  ;;  %v9383_v42 = vld [vmem:[#allocation41_spill] sm:$0xff]  ;;  %v9387_v29 = vld [vmem:[#allocation40_spill] sm:$0xff] }
 0x3ea   :  { %v3691_v15 = vor.u32 1.1754944e-38, %v9365_v6  ;;  %v3672_v39 = vsel %vm8901_vm0, %v8547_v40, %v9366_v36  ;;  %v3839_v27 = vsub.f32 %v9369_v3, %v3753_v37  ;;  %v3723_v47 = vmul.f32 %v3722_v32, %v9370_v55  ;;  %vm8924_vm5 = vmor %vm3654_vm4, %vm3655_vm14  ;;  %v9384_v30 = vld [vmem:[#allocation37_spill] sm:$0xff]  ;;  %v9391_v37 = vld [vmem:[#allocation28_spill] sm:$0xff] }
 0x3eb   :  { %3870 = vmatpush.msra.mxu0 %v3865_v52  ;;  %3895 = vmatpush.msra.mxu1 %v3841_v12  ;;  %vm3689_vm10 = vcmp.eq.f32.partialorder %v9371_v28, 8.507059e+37  ;;  %v9374_v50 = vand.u32 2147483648, %v8512_v48  ;;  %v3657_v17 = vsel %vm8924_vm5, %v8534_v51, %v9375_v62  ;;  %v3623_v4 = vadd.f32 %v8539_v46, %v9376_v41  ;;  %vm8944_vm4 = vmor %vm3639_vm11, %vm3640_vm7  ;;  %v9394_v52 = vld [vmem:[#allocation38_spill] sm:$0xff]  ;;  %v9405_v55 = vld [vmem:[#allocation29_spill] sm:$0xff] }
 0x3ec   :  { %v3692_v40 = vsel %vm3689_vm10, %v3691_v15, %v3687_v5  ;;  %v3863_v14 = vmul.f32 %v3840_v20, %v9377_v0  ;;  %v3838_v1 = vsub.f32 %v9378_v38, %v3738_v57  ;;  %v3708_v59 = vmul.f32 %v3707_v23, %v3532_v26  ;;  %vm8965_vm11 = vmor %vm3624_vm12, %vm3625_vm15  ;;  %v9409_v62 = vld [vmem:[#allocation30_spill] sm:$0xff] }
 0x3ed   :  { %v3676_v7 = vor.u32 1.1754944e-38, %v9374_v50  ;;  %3871 = vmatpush.msra.mxu0 %v3864_v63  ;;  %3896 = vmatpush.msra.mxu1 %v3840_v20  ;;  %v9379_v22 = vand.u32 2147483647, %v8512_v48  ;;  %v9382_v19 = vand.u32 2147483648, %v8505_v49  ;;  %v3642_v10 = vsel %vm8944_vm4, %v8530_v18, %v9383_v42  ;;  %vm8984_vm12 = vmor %vm3609_vm9, %vm3610_vm2  ;;  %v9408_v50 = vld [vmem:[#allocation21_spill] sm:$0xff]  ;;  %v9411_v0 = vld [vmem:[#allocation26_spill] sm:$0xff] }
 0x3ee   :  { %v3608_v48 = vadd.f32 %v8526_v8, %v9384_v30  ;;  %v3862_v11 = vmul.f32 %v3839_v27, %v9385_v21  ;;  %v3837_v54 = vsub.f32 %v9386_v13, %v3723_v47  ;;  %v3693_v44 = vmul.f32 %v3692_v40, %v9387_v29  ;;  %vm9002_vm13 = vmor %vm3594_vm6, %vm3595_vm8  ;;  %v9407_v40 = vld [vmem:[#allocation36_spill] sm:$0xff]  ;;  %v9415_v42 = vld [vmem:[#allocation25_spill] sm:$0xff] }
 0x3ef   :  { %vm3674_vm14 = vcmp.eq.f32.partialorder %v9379_v22, 8.507059e+37  ;;  %v3661_v25 = vor.u32 1.1754944e-38, %v9382_v19  ;;  %3872 = vmatpush.msra.mxu0 %v3863_v14  ;;  %3897 = vmatpush.msra.mxu1 %v3839_v27  ;;  %v9388_v12 = vand.u32 2147483647, %v8505_v49  ;;  %v3529_v43 = vmul.f32 2.0, %v9391_v37  ;;  %v9393_v49 = vld [vmem:[#allocation20_spill] sm:$0xff] }
 0x3f0   :  { %v3677_v51 = vsel %vm3674_vm14, %v3676_v7, %v3672_v39  ;;  %v9392_v32 = vand.u32 2147483648, %v8503_v2  ;;  %v3627_v24 = vsel %vm8965_vm11, %v8539_v46, %v3623_v4  ;;  %v3861_v60 = vmul.f32 %v3838_v1, %v9393_v49  ;;  %v9398_v46 = vld [vmem:[#allocation27_spill] sm:$0xff]  ;;  %v9413_v22 = vld [vmem:[#allocation18_spill] sm:$0xff]  ;;  %v3914_v49 = vld [vmem:[#allocation4] sm:$0xf] }
 0x3f1   :  { %vm3659_vm7 = vcmp.eq.f32.partialorder %v9388_v12, 8.507059e+37  ;;  %3873 = vmatpush.msra.mxu0 %v3862_v11  ;;  %3898 = vmatpush.msra.mxu1 %v3838_v1  ;;  %v3836_v5 = vsub.f32 %v8470_v16, %v3708_v59  ;;  %v3678_v20 = vmul.f32 %v3677_v51, %v9394_v52  ;;  %v9395_v57 = vand.u32 2147483647, %v8503_v2  ;;  %v9400_v2 = vld [vmem:[#allocation19_spill] sm:$0xff]  ;;  %v9417_v11 = vld [vmem:[#allocation16_spill] sm:$0xff]  ;;  %v9419_v18 = vld [vmem:[#allocation14_spill] sm:$0xff] }
 0x3f2   :  { %v3662_v45 = vsel %vm3659_vm7, %v3661_v25, %v3657_v17  ;;  %v3646_v35 = vor.u32 1.1754944e-38, %v9392_v32  ;;  %v3528_v26 = vmul.f32 2.0, %v9398_v46  ;;  %v9399_v6 = vand.u32 2147483648, %v8509_v33  ;;  %v9401_v39 = vld [vmem:[#allocation31_spill] sm:$0xff]  ;;  %v9424_v52 = vld [vmem:[#allocation10_spill] sm:$0xff] }
 0x3f3   :  { %vm3644_vm15 = vcmp.eq.f32.partialorder %v9395_v57, 8.507059e+37  ;;  %v3612_v16 = vsel %vm8984_vm12, %v8526_v8, %v3608_v48  ;;  %3874 = vmatpush.msra.mxu0 %v3861_v60  ;;  %3899 = vmatpush.msra.mxu1 %v3837_v54  ;;  %v3860_v36 = vmul.f32 %v3837_v54, %v9400_v2  ;;  %v3835_v31 = vsub.f32 %v9401_v39, %v3693_v44  ;;  %v3891_v2 = vld [vmem:[#allocation3] sm:$0xf] }
 0x3f4   :  { %v3647_v23 = vsel %vm3644_vm15, %v3646_v35, %v3642_v10  ;;  %v3631_v15 = vor.u32 1.1754944e-38, %v9399_v6  ;;  %v3663_v63 = vmul.f32 %v3662_v45, %v3529_v43  ;;  %v9402_v3 = vand.u32 2147483647, %v8509_v33  ;;  %v9416_v10 = vld [vmem:[#allocation17_spill] sm:$0xff]  ;;  %v9421_v35 = vld [vmem:[#allocation12_spill] sm:$0xff] }
 0x3f5   :  { %v3527_v8 = vmul.f32 2.0, %v9405_v55  ;;  %v9406_v28 = vand.u32 2147483648, %v8501_v61  ;;  %v3597_v33 = vsel %vm9002_vm13, %v8507_v58, %v9407_v40  ;;  %3875 = vmatpush.msra.mxu0 %v3860_v36  ;;  %3900 = vmatpush.msra.mxu1 %v3836_v5  ;;  %v3859_v7 = vmul.f32 %v3836_v5, %v9408_v50  ;;  %v9420_v45 = vld [vmem:[#allocation13_spill] sm:$0xff]  ;;  %v9423_v5 = vld [vmem:[#allocation11_spill] sm:$0xff] }
 0x3f6   :  { %vm3629_vm2 = vcmp.eq.f32.partialorder %v9402_v3, 8.507059e+37  ;;  %v3834_v17 = vsub.f32 %v9409_v62, %v3678_v20  ;;  %v3648_v41 = vmul.f32 %v3647_v23, %v3528_v26  ;;  %v9410_v4 = vand.u32 2147483647, %v8501_v61 }
 0x3f7   :  { %v3632_v47 = vsel %vm3629_vm2, %v3631_v15, %v3627_v24  ;;  %v3616_v56 = vor.u32 1.1754944e-38, %v9406_v28  ;;  %v3526_v14 = vmul.f32 2.0, %v9411_v0  ;;  %v9412_v1 = vand.u32 2147483648, %v9367_v9  ;;  %3876 = vmatpush.msra.mxu0 %v3859_v7  ;;  %3901 = vmatpush.msra.mxu1 %v3835_v31 }
 0x3f8   :  { %vm3614_vm3 = vcmp.eq.f32.partialorder %v9410_v4, 8.507059e+37  ;;  %v3858_v58 = vmul.f32 %v3835_v31, %v9413_v22  ;;  %v3833_v34 = vsub.f32 %v9391_v37, %v3663_v63  ;;  %v3633_v51 = vmul.f32 %v3632_v47, %v3527_v8  ;;  %v3851_v31 = vld [vmem:[#allocation2] sm:$0xf] }
 0x3f9   :  { %v3617_v38 = vsel %vm3614_vm3, %v3616_v56, %v3612_v16  ;;  %v3601_v59 = vor.u32 1.1754944e-38, %v9412_v1  ;;  %v9414_v19 = vand.u32 2147483647, %v9367_v9  ;;  %v3525_v61 = vmul.f32 2.0, %v9415_v42  ;;  %3902 = vmatpush.msra.mxu1 %v3834_v17  ;;  %v9418_v9 = vld [vmem:[#allocation15_spill] sm:$0xff] }
 0x3fa   :  { %3877 = vmatpush.msra.mxu0 %v3858_v58  ;;  %v3857_v30 = vmul.f32 %v3834_v17, %v9416_v10  ;;  %v3832_v48 = vsub.f32 %v9398_v46, %v3648_v41  ;;  %v3618_v21 = vmul.f32 %v3617_v38, %v3526_v14  ;;  %v3856_v13 = vmul.f32 %v3833_v34, %v9417_v11  ;;  %v4114_v46 = vpop.permute.xlu0 %4113 }
 0x3fb   :  { %vm3599_vm9 = vcmp.eq.f32.partialorder %v9414_v19, 8.507059e+37  ;;  %3903 = vmatpush.msra.mxu1 %v3833_v34  ;;  %v3831_v54 = vsub.f32 %v9405_v55, %v3633_v51  ;;  %v9422_v60 = vmov 1.0   ;;  %vm9425_vm8 = vcmp.eq.s32.totalorder %v9423_v5, %v9424_v52 }
 0x3fc   :  { %v3602_v25 = vsel %vm3599_vm9, %v3601_v59, %v3597_v33  ;;  %3878 = vmatpush.msra.mxu0 %v3857_v30  ;;  %v3855_v44 = vmul.f32 %v3832_v48, %v9418_v9  ;;  %v3830_v12 = vsub.f32 %v9411_v0, %v3618_v21  ;;  %vm9426_vm0 = vmmov %vm9425_vm8  ;;  %v4116_v23 = vmul.f32 %v4299_v53, %v4114_v46 }
 0x3fd   :  { %v3603_v29 = vmul.f32 %v3602_v25, %v3525_v61  ;;  %3904 = vmatpush.msra.mxu1 %v3832_v48  ;;  %v3854_v37 = vmul.f32 %v3831_v54, %v9419_v18 }
 0x3fe   :  { %3879 = vmatpush.msra.mxu0 %v3856_v13  ;;  %v3853_v32 = vmul.f32 %v3830_v12, %v9420_v45 }
 0x3ff   :  { %3905 = vmatpush.msra.mxu1 %v3831_v54  ;;  %v3829_v43 = vsub.f32 %v9415_v42, %v3603_v29 }
 0x400   :  { %3880 = vmatpush.msra.mxu0 %v3855_v44 }
 0x401   :  { %3906 = vmatpush.msra.mxu1 %v3830_v12  ;;  %v3852_v24 = vmul.f32 %v3829_v43, %v9421_v35 }
 0x402   :  { %3881 = vmatpush.msra.mxu0 %v3854_v37 }
 0x403   :  { %3907 = vmatpush.msra.mxu1 %v3829_v43 }
 0x404   :  { %3882 = vmatpush.msra.mxu0 %v3853_v32  ;;  %4280 = vmatmul.msk.f32.vlgmr.msra.gmra.mxu1 %vm9425_vm8, %v9422_v60 }
 0x406   :  { %3883 = vmatpush.msra.mxu0 %v3852_v24  ;;  %v3932_v20 = vpop.f32.mrf.mxu2 }
 0x407   :  { %4279 = vmatmul.msk.f32.vlgmr.msra.gmra.mxu0 %vm9426_vm0, %v9422_v60  ;;  %v3935_v57 = vadd.f32 %v3932_v20, %v3914_v49 }
 0x409   :  { %3936 = vst.msk [vmem:[#allocation4] sm:$0xf] %vm67_vm1, %v3935_v57 }
 0x410   :  { %v4109_v26 = vld [vmem:[#allocation4] sm:$0xf] }
 0x411   :  { %v4117_v6 = vsub.f32 %v4109_v26, %v4116_v23 }
 0x413   :  { %4812 = vrcp.f32 %v4117_v6  ;;  %v4129_v47 = vand.u32 2147483648, %v4117_v6  ;;  %vm4123_vm10 = vweird.f32 %v4117_v6  ;;  %v4127_v28 = vand.u32 2147483647, %v4117_v6 }
 0x415   :  { %v4130_v7 = vor.u32 1.1754944e-38, %v4129_v47  ;;  %vm4128_vm14 = vcmp.eq.f32.partialorder %v4127_v28, 8.507059e+37 }
 0x419   :  { %v4813_v15 = vpop.eup %4812 }
 0x41a   :  { %v4119_v16 = vmul.f32 %v4813_v15, %v4117_v6  ;;  %vm4124_vm6 = vweird.f32 %v4813_v15 }
 0x41b   :  { %vm4125_vm5 = vmor %vm4123_vm10, %vm4124_vm6 }
 0x41c   :  { %v4120_v36 = vsub.f32 1.0, %v4119_v16 }
 0x41e   :  { %v4121_v55 = vmul.f32 %v4813_v15, %v4120_v36 }
 0x420   :  { %v4122_v8 = vadd.f32 %v4813_v15, %v4121_v55 }
 0x422   :  { %v4126_v33 = vsel %vm4125_vm5, %v4813_v15, %v4122_v8 }
 0x423   :  { %v4131_v17 = vsel %vm4128_vm14, %v4130_v7, %v4126_v33 }
 0x481   :  { %v3909_v39 = vpop.f32.mrf.mxu1 }
 0x482   :  { %v3912_v63 = vadd.f32 %v3909_v39, %v3891_v2 }
 0x484   :  { %v3885_v3 = vpop.f32.mrf.mxu0  ;;  %3913 = vst.msk [vmem:[#allocation3] sm:$0xf] %vm67_vm1, %v3912_v63 }
 0x485   :  { %v3888_v27 = vadd.f32 %v3885_v3, %v3851_v31 }
 0x487   :  { %3890 = vst.msk [vmem:[#allocation2] sm:$0xf] %vm67_vm1, %v3888_v27 }
 0x48b   :  { %v4103_v56 = vld [vmem:[#allocation3] sm:$0xf] }
 0x48c   :  { %v4107_v40 = vmul.f32 %v4299_v53, %v4103_v56 }
 0x48e   :  { %v4102_v50 = vld [vmem:[#allocation2] sm:$0xf] }
 0x48f   :  { %v4108_v62 = vsub.f32 %v4102_v50, %v4107_v40 }
 0x491   :  { %v4132_v41 = vmul.f32 %v4131_v17, %v4108_v62 }
 0x493   :  { %4133 = vst.msk [vmem:[#allocation7] sm:$0xf] %vm67_vm1, %v4132_v41 }
 0x494   :  { %4144 = dma.vmem_to_hbm [thread:$0]  %s4140_s12, 64, %s4142_s6, [#allocation8]  }
 0x495   :  { %4844 = dma.done.wait [#allocation8], 64  }
 0x496   :  { %4845 = vsyncadd [#allocation8], 4294967232 }
 0x497   :  { %4149 = vsyncpa [#allocation8], 1 }

</bundles_post_ra>
